<compile_context>
chip_gen: v7x
topology: tpu7x:2x2x1
jax: 0.10.0
libtpu: 0.0.40
codegen_flags: <defaults>
</compile_context>

<pallas_src>
import functools

import jax
import jax.numpy as jnp
from jax import lax
from jax.experimental import pallas as pl
from jax.experimental.pallas import tpu as pltpu

DILATIONS = (1, 2, 4, 8, 16)
NUM_BRANCHES = len(DILATIONS)


# ----------------------------------------------------------------------------- #
# Pallas kernel
# ----------------------------------------------------------------------------- #
def _esp_block_kernel(x_ref, wcol_ref, wrt_ref, wf_ref, scale_ref, shift_ref,
                      alpha_ref, out_ref, ypad_ref, slab_ref,
                      *, H, W, off, taps, chunk, b_tile, cmid_pad, mm_dtype):
    HW = H * W

    # ---- hoisted once per grid step -----------------------------------------
    wcol = wcol_ref[...]                               # (1, HW) int32: pixel % W
    # column-wrap masks, one per distinct nonzero dw among the surviving taps
    col_mask = {}
    for _, dw in taps:
        if dw != 0 and dw not in col_mask:
            col_mask[dw] = (wcol < W - dw) if dw > 0 else (wcol >= -dw)

    # zero halos once per step (per-image y stores only touch the middle region);
    # rewritten each step so batch sharding across TensorCores stays correct.
    zero_halo = jnp.zeros((cmid_pad, off), mm_dtype)
    ypad_ref[:, :off] = zero_halo
    ypad_ref[:, off + HW:] = zero_halo

    wrt = wrt_ref[...]                                 # (cmid_pad, Cin)   mm_dtype
    wf = wf_ref[...]                                   # (Cout, T*cmid_pad) mm_dtype
    scale = scale_ref[...]                             # (Cout, 1) f32
    shift = shift_ref[...]
    alpha = alpha_ref[...]

    for b in range(b_tile):                            # static unroll; weights resident
        x = x_ref[b]                                   # (Cin, HW) f32, pixels on lanes

        # ---- reduce_conv: 1x1 conv == one channel matmul over all pixels -----
        y = jnp.dot(wrt, x.astype(mm_dtype), preferred_element_type=jnp.float32)
        ypad_ref[:, off:off + HW] = y.astype(mm_dtype)

        # ---- pixel-chunked slab build + branch matmul + epilogue -------------
        for c0 in range(0, HW, chunk):
            # im2col slab for all surviving dilated-3x3 taps (8/16-sublane aligned
            # row blocks, full-lane stores)
            for t, (dh, dw) in enumerate(taps):
                start = off + c0 + dh * W + dw         # static lane offset
                tap = ypad_ref[:, start:start + chunk]  # (cmid_pad, chunk)
                if dw != 0:
                    m = col_mask[dw][:, c0:c0 + chunk]
                    tap = jnp.where(m, tap, jnp.zeros_like(tap))
                slab_ref[t * cmid_pad:(t + 1) * cmid_pad, :] = tap

            # all 5 branches + hierarchical (exclude_first) prefix sums: ONE matmul
            yb = jnp.dot(wf, slab_ref[...],
                         preferred_element_type=jnp.float32)   # (Cout, chunk) f32

            # residual + BatchNorm(eval, folded) + per-channel PReLU, f32 on VPU
            z = yb + x[:, c0:c0 + chunk]               # Cin == Cout
            z = z * scale + shift
            z = jnp.where(z >= 0.0, z, alpha * z)
            out_ref[b, :, c0:c0 + chunk] = z.astype(jnp.float32)


# ----------------------------------------------------------------------------- #
# Wrapper helpers
# ----------------------------------------------------------------------------- #
def _pick_chunk(HW, target=2048):
    """Largest multiple of 128 that divides HW and is <= target (or HW if small)."""
    if HW <= target:
        return HW
    for c in range(target - target % 128, 127, -128):
        if HW % c == 0:
            return c
    return HW


def _pick_batch_tile(N, per_image_bytes, budget=8 << 20):
    """Biggest small divisor of N whose in/out blocks stay under a VMEM budget."""
    for bt in (8, 4, 2, 1):
        if N % bt == 0 and bt * per_image_bytes <= budget:
            return bt
    return 1


# ----------------------------------------------------------------------------- #
# Wrapper
# ----------------------------------------------------------------------------- #
def esp_block(x_nchw, params, *, bn_eps=1e-5, matmul_dtype=jnp.bfloat16):
    """ESPBlock forward.  x_nchw: (N, Cin, H, W) float32, returns (N, Cout, H, W)."""
    N, Cin, H, W = x_nchw.shape
    Cmid = params['wr'].shape[1]
    Cout = NUM_BRANCHES * Cmid
    HW = H * W
    assert Cin == Cout, "residual=True requires in_channels == out_channels"
    assert Cout % NUM_BRANCHES == 0, "demo assumes equal-width branches"
    assert HW % 128 == 0, "H*W must be a multiple of 128 (lane-dense layout premise)"

    itemsize = jnp.dtype(matmul_dtype).itemsize
    pack = 8 * (4 // itemsize)                         # sublane packing: 8 f32 / 16 bf16
    cmid_pad = ((Cmid + pack - 1) // pack) * pack

    # surviving taps: statically drop taps entirely inside the conv zero padding
    taps = []                                          # (branch j, kh, kw, dh, dw)
    for j, d in enumerate(DILATIONS):
        for kh in range(3):
            for kw in range(3):
                dh, dw = (kh - 1) * d, (kw - 1) * d
                if abs(dh) < H and abs(dw) < W:
                    taps.append((j, kh, kw, dh, dw))
    num_taps = len(taps)

    # flat halo big enough for every surviving (dh, dw) offset, 128-lane aligned
    max_off = max((abs(dh) * W + abs(dw) for (_, _, _, dh, dw) in taps), default=0)
    off = max(128, ((max_off + 127) // 128) * 128)
    wpad = HW + 2 * off

    chunk = _pick_chunk(HW)
    per_image_io = (Cin + Cout) * HW * 4 * 2           # x + out blocks, double-buffered
    b_tile = _pick_batch_tile(N, per_image_io)

    x_flat = x_nchw.reshape(N, Cin, HW).astype(jnp.float32)     # NCHW -> (N,C,HW), free
    wcol = (jnp.arange(HW, dtype=jnp.int32) % W).reshape(1, HW)

    # reduce conv weight, transposed, zero-padded to cmid_pad rows
    wrt = jnp.zeros((cmid_pad, Cin), jnp.float32)
    wrt = wrt.at[:Cmid, :].set(params['wr'].astype(jnp.float32).T)

    # fused block-lower-triangular branch weight over SURVIVING taps only
    # (dead taps are dropped from both the slab and these columns)
    wb = params['wb'].astype(jnp.float32)              # (5, kh, kw, ci, co)
    wf = jnp.zeros((Cout, num_taps * cmid_pad), jnp.float32)
    for t, (j, kh, kw, _, _) in enumerate(taps):
        blk = wb[j, kh, kw].T                          # (co=Cmid, ci=Cmid)
        for i in range(NUM_BRANCHES):
            if j == i or (1 <= j < i):                 # HierarchicalConcurrent(exclude_first)
                wf = wf.at[i * Cmid:(i + 1) * Cmid,
                           t * cmid_pad:t * cmid_pad + Cmid].set(blk)

    scale = (params['gamma'] / jnp.sqrt(params['var'] + bn_eps)).astype(jnp.float32)
    shift = (params['beta'] - params['mean'] * scale).astype(jnp.float32)
    scale = scale.reshape(Cout, 1)
    shift = shift.reshape(Cout, 1)
    alpha = params['alpha'].astype(jnp.float32).reshape(Cout, 1)

    kernel = functools.partial(
        _esp_block_kernel, H=H, W=W, off=off,
        taps=tuple((dh, dw) for (_, _, _, dh, dw) in taps),
        chunk=chunk, b_tile=b_tile, cmid_pad=cmid_pad, mm_dtype=matmul_dtype)

    flops = 2 * N * HW * (cmid_pad * Cin + Cout * num_taps * cmid_pad)
    bytes_accessed = (4 * N * HW * (Cin + Cout)
                      + itemsize * (wrt.size + wf.size)
                      + 4 * 3 * Cout)

    out_flat = pl.pallas_call(
        kernel,
        out_shape=jax.ShapeDtypeStruct((N, Cout, HW), jnp.float32),
        grid_spec=pltpu.PrefetchScalarGridSpec(
            num_scalar_prefetch=0,
            grid=(N // b_tile,),
            in_specs=[
                pl.BlockSpec((b_tile, Cin, HW), lambda n: (n, 0, 0)),             # x
                pl.BlockSpec((1, HW), lambda n: (0, 0)),                          # pixel % W
                pl.BlockSpec((cmid_pad, Cin), lambda n: (0, 0)),                  # reduce w^T
                pl.BlockSpec((Cout, num_taps * cmid_pad), lambda n: (0, 0)),      # fused w
                pl.BlockSpec((Cout, 1), lambda n: (0, 0)),                        # BN scale
                pl.BlockSpec((Cout, 1), lambda n: (0, 0)),                        # BN shift
                pl.BlockSpec((Cout, 1), lambda n: (0, 0)),                        # PReLU alpha
            ],
            out_specs=pl.BlockSpec((b_tile, Cout, HW), lambda n: (n, 0, 0)),
            scratch_shapes=[
                pltpu.VMEM((cmid_pad, wpad), matmul_dtype),                 # flat padded y
                pltpu.VMEM((num_taps * cmid_pad, chunk), matmul_dtype),     # im2col slab
            ],
        ),
        compiler_params=pltpu.CompilerParams(dimension_semantics=("parallel",)),
        cost_estimate=pl.CostEstimate(flops=int(flops), transcendentals=0,
                                      bytes_accessed=int(bytes_accessed)),
    )(x_flat, wcol, wrt.astype(matmul_dtype), wf.astype(matmul_dtype),
      scale, shift, alpha)

    return out_flat.reshape(N, Cout, H, W)


# ----------------------------------------------------------------------------- #
# Deterministic parameter construction (shapes as in ESPBlock.__init__)
# ----------------------------------------------------------------------------- #
def make_params(key, in_channels, out_channels):
    assert out_channels % NUM_BRANCHES == 0, "demo assumes equal-width branches"
    mid = out_channels // NUM_BRANCHES
    k = jax.random.split(key, 6)
    return dict(
        wr=jax.random.normal(k[0], (in_channels, mid), jnp.float32) * 0.2,
        wb=jax.random.normal(k[1], (NUM_BRANCHES, 3, 3, mid, mid), jnp.float32) * 0.2,
        gamma=jax.random.uniform(k[2], (out_channels,), jnp.float32, 0.5, 1.5),
        beta=jax.random.normal(k[3], (out_channels,), jnp.float32) * 0.1,
        mean=jax.random.normal(k[4], (out_channels,), jnp.float32) * 0.1,
        var=jax.random.uniform(k[5], (out_channels,), jnp.float32, 0.5, 1.5),
        alpha=jnp.full((out_channels,), 0.25, jnp.float32),
    )


# ----------------------------------------------------------------------------- #
# Pure-JAX reference (for in-script verification)
# ----------------------------------------------------------------------------- #
def esp_block_reference(x_nchw, params, *, bn_eps=1e-5, matmul_dtype=jnp.float32):
    dn = ('NHWC', 'HWIO', 'NHWC')
    md = matmul_dtype
    prec = lax.Precision.HIGHEST if jnp.dtype(md) == jnp.dtype(jnp.float32) else None
    x = jnp.transpose(x_nchw, (0, 2, 3, 1)).astype(jnp.float32)
    y = lax.conv_general_dilated(x.astype(md), params['wr'][None, None].astype(md),
                                 (1, 1), 'VALID', dimension_numbers=dn,
                                 precision=prec, preferred_element_type=jnp.float32)
    y_md = y.astype(md)
    outs, y_prev = [], None
    for i, d in enumerate(DILATIONS):
        b = lax.conv_general_dilated(y_md, params['wb'][i].astype(md), (1, 1),
                                     ((d, d), (d, d)), rhs_dilation=(d, d),
                                     dimension_numbers=dn, precision=prec,
                                     preferred_element_type=jnp.float32)
        if y_prev is not None:
            b = b + y_prev
        outs.append(b)
        if i > 0:
            y_prev = b
    z = jnp.concatenate(outs, axis=-1) + x
    scale = params['gamma'] / jnp.sqrt(params['var'] + bn_eps)
    shift = params['beta'] - params['mean'] * scale
    z = z * scale + shift
    z = jnp.where(z >= 0.0, z, params['alpha'] * z)
    return jnp.transpose(z, (0, 3, 1, 2))


# ----------------------------------------------------------------------------- #
if __name__ == "__main__":
    # TODO(synk): downsample=True (stride-2 3x3 reduce conv), training-mode BN
    # batch statistics, and out_channels not divisible by 5 (unequal branch-0
    # width) are not implemented; this covers downsample=False / residual=True /
    # eval-mode-BN.
    key = jax.random.PRNGKey(0)
    kx, kp = jax.random.split(key)

    in_channels = out_channels = 20
    N, H, W = 2, 16, 16
    bn_eps = 1e-5

    x = jax.random.normal(kx, (N, in_channels, H, W), jnp.float32)
    params = make_params(kp, in_channels, out_channels)

    out = jax.block_until_ready(jax.jit(esp_block)(x, params))
    assert out.shape == (N, out_channels, H, W), out.shape

    # Primary check: reference with the same bf16 matmul-operand rounding
    # (validates halo / wrap / hierarchical-sum / BN / PReLU logic tightly).
    ref_bf16 = jax.block_until_ready(
        esp_block_reference(x, params, bn_eps=bn_eps, matmul_dtype=jnp.bfloat16))
    if not bool(jnp.allclose(out, ref_bf16, rtol=1e-2, atol=1e-2)):
        raise AssertionError(
            "Pallas ESPBlock mismatch vs bf16-matched JAX reference: "
            f"max abs err = {float(jnp.max(jnp.abs(out - ref_bf16)))}")

    # Loose sanity check against the full-f32 reference (bf16 MXU operand rounding
    # accounts for the tolerance).
    ref_f32 = jax.block_until_ready(esp_block_reference(x, params, bn_eps=bn_eps))
    if not bool(jnp.allclose(out, ref_f32, rtol=1e-1, atol=1e-1)):
        raise AssertionError(
            "Pallas ESPBlock mismatch vs f32 JAX reference: "
            f"max abs err = {float(jnp.max(jnp.abs(out - ref_f32)))}")

    print("KERNEL_OK")
</pallas_src>

<mosaic_0001>
module attributes {stable_mosaic.version = 11 : i64} {
  func.func @_esp_block_kernel(%arg0: i32, %arg1: memref<2x20x256xf32, #tpu.memory_space<vmem>>, %arg2: memref<1x256xi32, #tpu.memory_space<vmem>>, %arg3: memref<16x20xbf16, #tpu.memory_space<vmem>>, %arg4: memref<20x592xbf16, #tpu.memory_space<vmem>>, %arg5: memref<20x1xf32, #tpu.memory_space<vmem>>, %arg6: memref<20x1xf32, #tpu.memory_space<vmem>>, %arg7: memref<20x1xf32, #tpu.memory_space<vmem>>, %arg8: memref<2x20x256xf32, #tpu.memory_space<vmem>>, %arg9: memref<16x768xbf16, #tpu.memory_space<vmem>>, %arg10: memref<592x256xbf16, #tpu.memory_space<vmem>>) attributes {dimension_semantics = [#tpu.dimension_semantics<parallel>], iteration_bounds = array<i64: 1>, scalar_prefetch = 0 : i64, scratch_operands = 2 : i64, tpu.core_type = #tpu.core_type<tc>, window_params = [{transform_indices = @transform_0, window_bounds = array<i64: 2, 20, 256>}, {pipeline_mode = #tpu.pipeline_mode<synchronous>, transform_indices = @transform_1, window_bounds = array<i64: 1, 256>}, {pipeline_mode = #tpu.pipeline_mode<synchronous>, transform_indices = @transform_2, window_bounds = array<i64: 16, 20>}, {pipeline_mode = #tpu.pipeline_mode<synchronous>, transform_indices = @transform_3, window_bounds = array<i64: 20, 592>}, {pipeline_mode = #tpu.pipeline_mode<synchronous>, transform_indices = @transform_4, window_bounds = array<i64: 20, 1>}, {pipeline_mode = #tpu.pipeline_mode<synchronous>, transform_indices = @transform_5, window_bounds = array<i64: 20, 1>}, {pipeline_mode = #tpu.pipeline_mode<synchronous>, transform_indices = @transform_6, window_bounds = array<i64: 20, 1>}, {transform_indices = @transform_7, window_bounds = array<i64: 2, 20, 256>}]} {
    %c0 = arith.constant 0 : index
    %c0_0 = arith.constant 0 : index
    %0 = vector.load %arg2[%c0, %c0_0] : memref<1x256xi32, #tpu.memory_space<vmem>>, vector<1x256xi32>
    %c1_i32 = arith.constant 1 : i32
    %1 = vector.broadcast %c1_i32 : i32 to vector<1x256xi32>
    %2 = arith.cmpi sge, %0, %1 : vector<1x256xi32>
    %c15_i32 = arith.constant 15 : i32
    %3 = vector.broadcast %c15_i32 : i32 to vector<1x256xi32>
    %4 = arith.cmpi slt, %0, %3 : vector<1x256xi32>
    %c2_i32 = arith.constant 2 : i32
    %5 = vector.broadcast %c2_i32 : i32 to vector<1x256xi32>
    %6 = arith.cmpi sge, %0, %5 : vector<1x256xi32>
    %c14_i32 = arith.constant 14 : i32
    %7 = vector.broadcast %c14_i32 : i32 to vector<1x256xi32>
    %8 = arith.cmpi slt, %0, %7 : vector<1x256xi32>
    %c4_i32 = arith.constant 4 : i32
    %9 = vector.broadcast %c4_i32 : i32 to vector<1x256xi32>
    %10 = arith.cmpi sge, %0, %9 : vector<1x256xi32>
    %c12_i32 = arith.constant 12 : i32
    %11 = vector.broadcast %c12_i32 : i32 to vector<1x256xi32>
    %12 = arith.cmpi slt, %0, %11 : vector<1x256xi32>
    %c8_i32 = arith.constant 8 : i32
    %13 = vector.broadcast %c8_i32 : i32 to vector<1x256xi32>
    %14 = arith.cmpi sge, %0, %13 : vector<1x256xi32>
    %c8_i32_1 = arith.constant 8 : i32
    %15 = vector.broadcast %c8_i32_1 : i32 to vector<1x256xi32>
    %16 = arith.cmpi slt, %0, %15 : vector<1x256xi32>
    %cst = arith.constant 0.000000e+00 : bf16
    %17 = vector.broadcast %cst : bf16 to vector<16x256xbf16>
    %c0_2 = arith.constant 0 : index
    %c0_3 = arith.constant 0 : index
    %18 = vector.load %arg9[%c0_2, %c0_3] : memref<16x768xbf16, #tpu.memory_space<vmem>>, vector<16x256xbf16>
    tpu.vector_store %arg9[%c0_2, %c0_3], %17 {strides = array<i32>} : memref<16x768xbf16, #tpu.memory_space<vmem>>, vector<16x256xbf16>,
    %c0_4 = arith.constant 0 : index
    %c512 = arith.constant 512 : index
    %19 = vector.load %arg9[%c0_4, %c512] : memref<16x768xbf16, #tpu.memory_space<vmem>>, vector<16x256xbf16>
    tpu.vector_store %arg9[%c0_4, %c512], %17 {strides = array<i32>} : memref<16x768xbf16, #tpu.memory_space<vmem>>, vector<16x256xbf16>,
    %c0_5 = arith.constant 0 : index
    %c0_6 = arith.constant 0 : index
    %20 = vector.load %arg3[%c0_5, %c0_6] : memref<16x20xbf16, #tpu.memory_space<vmem>>, vector<16x20xbf16>
    %c0_7 = arith.constant 0 : index
    %c0_8 = arith.constant 0 : index
    %21 = vector.load %arg4[%c0_7, %c0_8] : memref<20x592xbf16, #tpu.memory_space<vmem>>, vector<20x592xbf16>
    %c0_9 = arith.constant 0 : index
    %c0_10 = arith.constant 0 : index
    %22 = vector.load %arg5[%c0_9, %c0_10] : memref<20x1xf32, #tpu.memory_space<vmem>>, vector<20x1xf32>
    %c0_11 = arith.constant 0 : index
    %c0_12 = arith.constant 0 : index
    %23 = vector.load %arg6[%c0_11, %c0_12] : memref<20x1xf32, #tpu.memory_space<vmem>>, vector<20x1xf32>
    %c0_13 = arith.constant 0 : index
    %c0_14 = arith.constant 0 : index
    %24 = vector.load %arg7[%c0_13, %c0_14] : memref<20x1xf32, #tpu.memory_space<vmem>>, vector<20x1xf32>
    %c0_15 = arith.constant 0 : index
    %c0_16 = arith.constant 0 : index
    %c0_17 = arith.constant 0 : index
    %25 = vector.load %arg1[%c0_15, %c0_16, %c0_17] : memref<2x20x256xf32, #tpu.memory_space<vmem>>, vector<1x20x256xf32>
    %26 = vector.shape_cast %25 : vector<1x20x256xf32> to vector<20x256xf32>
    %27 = arith.truncf %26 : vector<20x256xf32> to vector<20x256xbf16>
    %cst_18 = arith.constant dense<0.000000e+00> : vector<16x256xf32>
    %28 = tpu.matmul %20, %27, %cst_18 {dimension_numbers = #tpu.dot_dimension_numbers<[1], [0], [0], [1], [0, 0, 1, 1], [], []>} : vector<16x20xbf16>, vector<20x256xbf16>, vector<16x256xf32> -> vector<16x256xf32>
    %29 = arith.truncf %28 : vector<16x256xf32> to vector<16x256xbf16>
    %c0_19 = arith.constant 0 : index
    %c256 = arith.constant 256 : index
    %30 = vector.load %arg9[%c0_19, %c256] : memref<16x768xbf16, #tpu.memory_space<vmem>>, vector<16x256xbf16>
    tpu.vector_store %arg9[%c0_19, %c256], %29 {strides = array<i32>} : memref<16x768xbf16, #tpu.memory_space<vmem>>, vector<16x256xbf16>,
    %c0_20 = arith.constant 0 : index
    %c239 = arith.constant 239 : index
    %31 = vector.load %arg9[%c0_20, %c239] : memref<16x768xbf16, #tpu.memory_space<vmem>>, vector<16x256xbf16>
    %cst_21 = arith.constant 0.000000e+00 : bf16
    %32 = vector.broadcast %cst_21 : bf16 to vector<16x256xbf16>
    %33 = vector.shape_cast %2 : vector<1x256xi1> to vector<1x256xi1>
    %34 = vector.broadcast %33 : vector<1x256xi1> to vector<16x256xi1>
    %35 = arith.select %34, %31, %32 : vector<16x256xi1>, vector<16x256xbf16>
    %c0_22 = arith.constant 0 : index
    %c0_23 = arith.constant 0 : index
    %36 = vector.load %arg10[%c0_22, %c0_23] : memref<592x256xbf16, #tpu.memory_space<vmem>>, vector<16x256xbf16>
    tpu.vector_store %arg10[%c0_22, %c0_23], %35 {strides = array<i32>} : memref<592x256xbf16, #tpu.memory_space<vmem>>, vector<16x256xbf16>,
    %c0_24 = arith.constant 0 : index
    %c240 = arith.constant 240 : index
    %37 = vector.load %arg9[%c0_24, %c240] : memref<16x768xbf16, #tpu.memory_space<vmem>>, vector<16x256xbf16>
    %c16 = arith.constant 16 : index
    %c0_25 = arith.constant 0 : index
    %38 = vector.load %arg10[%c16, %c0_25] : memref<592x256xbf16, #tpu.memory_space<vmem>>, vector<16x256xbf16>
    tpu.vector_store %arg10[%c16, %c0_25], %37 {strides = array<i32>} : memref<592x256xbf16, #tpu.memory_space<vmem>>, vector<16x256xbf16>,
    %c0_26 = arith.constant 0 : index
    %c241 = arith.constant 241 : index
    %39 = vector.load %arg9[%c0_26, %c241] : memref<16x768xbf16, #tpu.memory_space<vmem>>, vector<16x256xbf16>
    %cst_27 = arith.constant 0.000000e+00 : bf16
    %40 = vector.broadcast %cst_27 : bf16 to vector<16x256xbf16>
    %41 = vector.shape_cast %4 : vector<1x256xi1> to vector<1x256xi1>
    %42 = vector.broadcast %41 : vector<1x256xi1> to vector<16x256xi1>
    %43 = arith.select %42, %39, %40 : vector<16x256xi1>, vector<16x256xbf16>
    %c32 = arith.constant 32 : index
    %c0_28 = arith.constant 0 : index
    %44 = vector.load %arg10[%c32, %c0_28] : memref<592x256xbf16, #tpu.memory_space<vmem>>, vector<16x256xbf16>
    tpu.vector_store %arg10[%c32, %c0_28], %43 {strides = array<i32>} : memref<592x256xbf16, #tpu.memory_space<vmem>>, vector<16x256xbf16>,
    %c0_29 = arith.constant 0 : index
    %c255 = arith.constant 255 : index
    %45 = vector.load %arg9[%c0_29, %c255] : memref<16x768xbf16, #tpu.memory_space<vmem>>, vector<16x256xbf16>
    %cst_30 = arith.constant 0.000000e+00 : bf16
    %46 = vector.broadcast %cst_30 : bf16 to vector<16x256xbf16>
    %47 = vector.shape_cast %2 : vector<1x256xi1> to vector<1x256xi1>
    %48 = vector.broadcast %47 : vector<1x256xi1> to vector<16x256xi1>
    %49 = arith.select %48, %45, %46 : vector<16x256xi1>, vector<16x256xbf16>
    %c48 = arith.constant 48 : index
    %c0_31 = arith.constant 0 : index
    %50 = vector.load %arg10[%c48, %c0_31] : memref<592x256xbf16, #tpu.memory_space<vmem>>, vector<16x256xbf16>
    tpu.vector_store %arg10[%c48, %c0_31], %49 {strides = array<i32>} : memref<592x256xbf16, #tpu.memory_space<vmem>>, vector<16x256xbf16>,
    %c0_32 = arith.constant 0 : index
    %c256_33 = arith.constant 256 : index
    %51 = vector.load %arg9[%c0_32, %c256_33] : memref<16x768xbf16, #tpu.memory_space<vmem>>, vector<16x256xbf16>
    %c64 = arith.constant 64 : index
    %c0_34 = arith.constant 0 : index
    %52 = vector.load %arg10[%c64, %c0_34] : memref<592x256xbf16, #tpu.memory_space<vmem>>, vector<16x256xbf16>
    tpu.vector_store %arg10[%c64, %c0_34], %51 {strides = array<i32>} : memref<592x256xbf16, #tpu.memory_space<vmem>>, vector<16x256xbf16>,
    %c0_35 = arith.constant 0 : index
    %c257 = arith.constant 257 : index
    %53 = vector.load %arg9[%c0_35, %c257] : memref<16x768xbf16, #tpu.memory_space<vmem>>, vector<16x256xbf16>
    %cst_36 = arith.constant 0.000000e+00 : bf16
    %54 = vector.broadcast %cst_36 : bf16 to vector<16x256xbf16>
    %55 = vector.shape_cast %4 : vector<1x256xi1> to vector<1x256xi1>
    %56 = vector.broadcast %55 : vector<1x256xi1> to vector<16x256xi1>
    %57 = arith.select %56, %53, %54 : vector<16x256xi1>, vector<16x256xbf16>
    %c80 = arith.constant 80 : index
    %c0_37 = arith.constant 0 : index
    %58 = vector.load %arg10[%c80, %c0_37] : memref<592x256xbf16, #tpu.memory_space<vmem>>, vector<16x256xbf16>
    tpu.vector_store %arg10[%c80, %c0_37], %57 {strides = array<i32>} : memref<592x256xbf16, #tpu.memory_space<vmem>>, vector<16x256xbf16>,
    %c0_38 = arith.constant 0 : index
    %c271 = arith.constant 271 : index
    %59 = vector.load %arg9[%c0_38, %c271] : memref<16x768xbf16, #tpu.memory_space<vmem>>, vector<16x256xbf16>
    %cst_39 = arith.constant 0.000000e+00 : bf16
    %60 = vector.broadcast %cst_39 : bf16 to vector<16x256xbf16>
    %61 = vector.shape_cast %2 : vector<1x256xi1> to vector<1x256xi1>
    %62 = vector.broadcast %61 : vector<1x256xi1> to vector<16x256xi1>
    %63 = arith.select %62, %59, %60 : vector<16x256xi1>, vector<16x256xbf16>
    %c96 = arith.constant 96 : index
    %c0_40 = arith.constant 0 : index
    %64 = vector.load %arg10[%c96, %c0_40] : memref<592x256xbf16, #tpu.memory_space<vmem>>, vector<16x256xbf16>
    tpu.vector_store %arg10[%c96, %c0_40], %63 {strides = array<i32>} : memref<592x256xbf16, #tpu.memory_space<vmem>>, vector<16x256xbf16>,
    %c0_41 = arith.constant 0 : index
    %c272 = arith.constant 272 : index
    %65 = vector.load %arg9[%c0_41, %c272] : memref<16x768xbf16, #tpu.memory_space<vmem>>, vector<16x256xbf16>
    %c112 = arith.constant 112 : index
    %c0_42 = arith.constant 0 : index
    %66 = vector.load %arg10[%c112, %c0_42] : memref<592x256xbf16, #tpu.memory_space<vmem>>, vector<16x256xbf16>
    tpu.vector_store %arg10[%c112, %c0_42], %65 {strides = array<i32>} : memref<592x256xbf16, #tpu.memory_space<vmem>>, vector<16x256xbf16>,
    %c0_43 = arith.constant 0 : index
    %c273 = arith.constant 273 : index
    %67 = vector.load %arg9[%c0_43, %c273] : memref<16x768xbf16, #tpu.memory_space<vmem>>, vector<16x256xbf16>
    %cst_44 = arith.constant 0.000000e+00 : bf16
    %68 = vector.broadcast %cst_44 : bf16 to vector<16x256xbf16>
    %69 = vector.shape_cast %4 : vector<1x256xi1> to vector<1x256xi1>
    %70 = vector.broadcast %69 : vector<1x256xi1> to vector<16x256xi1>
    %71 = arith.select %70, %67, %68 : vector<16x256xi1>, vector<16x256xbf16>
    %c128 = arith.constant 128 : index
    %c0_45 = arith.constant 0 : index
    %72 = vector.load %arg10[%c128, %c0_45] : memref<592x256xbf16, #tpu.memory_space<vmem>>, vector<16x256xbf16>
    tpu.vector_store %arg10[%c128, %c0_45], %71 {strides = array<i32>} : memref<592x256xbf16, #tpu.memory_space<vmem>>, vector<16x256xbf16>,
    %c0_46 = arith.constant 0 : index
    %c222 = arith.constant 222 : index
    %73 = vector.load %arg9[%c0_46, %c222] : memref<16x768xbf16, #tpu.memory_space<vmem>>, vector<16x256xbf16>
    %cst_47 = arith.constant 0.000000e+00 : bf16
    %74 = vector.broadcast %cst_47 : bf16 to vector<16x256xbf16>
    %75 = vector.shape_cast %6 : vector<1x256xi1> to vector<1x256xi1>
    %76 = vector.broadcast %75 : vector<1x256xi1> to vector<16x256xi1>
    %77 = arith.select %76, %73, %74 : vector<16x256xi1>, vector<16x256xbf16>
    %c144 = arith.constant 144 : index
    %c0_48 = arith.constant 0 : index
    %78 = vector.load %arg10[%c144, %c0_48] : memref<592x256xbf16, #tpu.memory_space<vmem>>, vector<16x256xbf16>
    tpu.vector_store %arg10[%c144, %c0_48], %77 {strides = array<i32>} : memref<592x256xbf16, #tpu.memory_space<vmem>>, vector<16x256xbf16>,
    %c0_49 = arith.constant 0 : index
    %c224 = arith.constant 224 : index
    %79 = vector.load %arg9[%c0_49, %c224] : memref<16x768xbf16, #tpu.memory_space<vmem>>, vector<16x256xbf16>
    %c160 = arith.constant 160 : index
    %c0_50 = arith.constant 0 : index
    %80 = vector.load %arg10[%c160, %c0_50] : memref<592x256xbf16, #tpu.memory_space<vmem>>, vector<16x256xbf16>
    tpu.vector_store %arg10[%c160, %c0_50], %79 {strides = array<i32>} : memref<592x256xbf16, #tpu.memory_space<vmem>>, vector<16x256xbf16>,
    %c0_51 = arith.constant 0 : index
    %c226 = arith.constant 226 : index
    %81 = vector.load %arg9[%c0_51, %c226] : memref<16x768xbf16, #tpu.memory_space<vmem>>, vector<16x256xbf16>
    %cst_52 = arith.constant 0.000000e+00 : bf16
    %82 = vector.broadcast %cst_52 : bf16 to vector<16x256xbf16>
    %83 = vector.shape_cast %8 : vector<1x256xi1> to vector<1x256xi1>
    %84 = vector.broadcast %83 : vector<1x256xi1> to vector<16x256xi1>
    %85 = arith.select %84, %81, %82 : vector<16x256xi1>, vector<16x256xbf16>
    %c176 = arith.constant 176 : index
    %c0_53 = arith.constant 0 : index
    %86 = vector.load %arg10[%c176, %c0_53] : memref<592x256xbf16, #tpu.memory_space<vmem>>, vector<16x256xbf16>
    tpu.vector_store %arg10[%c176, %c0_53], %85 {strides = array<i32>} : memref<592x256xbf16, #tpu.memory_space<vmem>>, vector<16x256xbf16>,
    %c0_54 = arith.constant 0 : index
    %c254 = arith.constant 254 : index
    %87 = vector.load %arg9[%c0_54, %c254] : memref<16x768xbf16, #tpu.memory_space<vmem>>, vector<16x256xbf16>
    %cst_55 = arith.constant 0.000000e+00 : bf16
    %88 = vector.broadcast %cst_55 : bf16 to vector<16x256xbf16>
    %89 = vector.shape_cast %6 : vector<1x256xi1> to vector<1x256xi1>
    %90 = vector.broadcast %89 : vector<1x256xi1> to vector<16x256xi1>
    %91 = arith.select %90, %87, %88 : vector<16x256xi1>, vector<16x256xbf16>
    %c192 = arith.constant 192 : index
    %c0_56 = arith.constant 0 : index
    %92 = vector.load %arg10[%c192, %c0_56] : memref<592x256xbf16, #tpu.memory_space<vmem>>, vector<16x256xbf16>
    tpu.vector_store %arg10[%c192, %c0_56], %91 {strides = array<i32>} : memref<592x256xbf16, #tpu.memory_space<vmem>>, vector<16x256xbf16>,
    %c0_57 = arith.constant 0 : index
    %c256_58 = arith.constant 256 : index
    %93 = vector.load %arg9[%c0_57, %c256_58] : memref<16x768xbf16, #tpu.memory_space<vmem>>, vector<16x256xbf16>
    %c208 = arith.constant 208 : index
    %c0_59 = arith.constant 0 : index
    %94 = vector.load %arg10[%c208, %c0_59] : memref<592x256xbf16, #tpu.memory_space<vmem>>, vector<16x256xbf16>
    tpu.vector_store %arg10[%c208, %c0_59], %93 {strides = array<i32>} : memref<592x256xbf16, #tpu.memory_space<vmem>>, vector<16x256xbf16>,
    %c0_60 = arith.constant 0 : index
    %c258 = arith.constant 258 : index
    %95 = vector.load %arg9[%c0_60, %c258] : memref<16x768xbf16, #tpu.memory_space<vmem>>, vector<16x256xbf16>
    %cst_61 = arith.constant 0.000000e+00 : bf16
    %96 = vector.broadcast %cst_61 : bf16 to vector<16x256xbf16>
    %97 = vector.shape_cast %8 : vector<1x256xi1> to vector<1x256xi1>
    %98 = vector.broadcast %97 : vector<1x256xi1> to vector<16x256xi1>
    %99 = arith.select %98, %95, %96 : vector<16x256xi1>, vector<16x256xbf16>
    %c224_62 = arith.constant 224 : index
    %c0_63 = arith.constant 0 : index
    %100 = vector.load %arg10[%c224_62, %c0_63] : memref<592x256xbf16, #tpu.memory_space<vmem>>, vector<16x256xbf16>
    tpu.vector_store %arg10[%c224_62, %c0_63], %99 {strides = array<i32>} : memref<592x256xbf16, #tpu.memory_space<vmem>>, vector<16x256xbf16>,
    %c0_64 = arith.constant 0 : index
    %c286 = arith.constant 286 : index
    %101 = vector.load %arg9[%c0_64, %c286] : memref<16x768xbf16, #tpu.memory_space<vmem>>, vector<16x256xbf16>
    %cst_65 = arith.constant 0.000000e+00 : bf16
    %102 = vector.broadcast %cst_65 : bf16 to vector<16x256xbf16>
    %103 = vector.shape_cast %6 : vector<1x256xi1> to vector<1x256xi1>
    %104 = vector.broadcast %103 : vector<1x256xi1> to vector<16x256xi1>
    %105 = arith.select %104, %101, %102 : vector<16x256xi1>, vector<16x256xbf16>
    %c240_66 = arith.constant 240 : index
    %c0_67 = arith.constant 0 : index
    %106 = vector.load %arg10[%c240_66, %c0_67] : memref<592x256xbf16, #tpu.memory_space<vmem>>, vector<16x256xbf16>
    tpu.vector_store %arg10[%c240_66, %c0_67], %105 {strides = array<i32>} : memref<592x256xbf16, #tpu.memory_space<vmem>>, vector<16x256xbf16>,
    %c0_68 = arith.constant 0 : index
    %c288 = arith.constant 288 : index
    %107 = vector.load %arg9[%c0_68, %c288] : memref<16x768xbf16, #tpu.memory_space<vmem>>, vector<16x256xbf16>
    %c256_69 = arith.constant 256 : index
    %c0_70 = arith.constant 0 : index
    %108 = vector.load %arg10[%c256_69, %c0_70] : memref<592x256xbf16, #tpu.memory_space<vmem>>, vector<16x256xbf16>
    tpu.vector_store %arg10[%c256_69, %c0_70], %107 {strides = array<i32>} : memref<592x256xbf16, #tpu.memory_space<vmem>>, vector<16x256xbf16>,
    %c0_71 = arith.constant 0 : index
    %c290 = arith.constant 290 : index
    %109 = vector.load %arg9[%c0_71, %c290] : memref<16x768xbf16, #tpu.memory_space<vmem>>, vector<16x256xbf16>
    %cst_72 = arith.constant 0.000000e+00 : bf16
    %110 = vector.broadcast %cst_72 : bf16 to vector<16x256xbf16>
    %111 = vector.shape_cast %8 : vector<1x256xi1> to vector<1x256xi1>
    %112 = vector.broadcast %111 : vector<1x256xi1> to vector<16x256xi1>
    %113 = arith.select %112, %109, %110 : vector<16x256xi1>, vector<16x256xbf16>
    %c272_73 = arith.constant 272 : index
    %c0_74 = arith.constant 0 : index
    %114 = vector.load %arg10[%c272_73, %c0_74] : memref<592x256xbf16, #tpu.memory_space<vmem>>, vector<16x256xbf16>
    tpu.vector_store %arg10[%c272_73, %c0_74], %113 {strides = array<i32>} : memref<592x256xbf16, #tpu.memory_space<vmem>>, vector<16x256xbf16>,
    %c0_75 = arith.constant 0 : index
    %c188 = arith.constant 188 : index
    %115 = vector.load %arg9[%c0_75, %c188] : memref<16x768xbf16, #tpu.memory_space<vmem>>, vector<16x256xbf16>
    %cst_76 = arith.constant 0.000000e+00 : bf16
    %116 = vector.broadcast %cst_76 : bf16 to vector<16x256xbf16>
    %117 = vector.shape_cast %10 : vector<1x256xi1> to vector<1x256xi1>
    %118 = vector.broadcast %117 : vector<1x256xi1> to vector<16x256xi1>
    %119 = arith.select %118, %115, %116 : vector<16x256xi1>, vector<16x256xbf16>
    %c288_77 = arith.constant 288 : index
    %c0_78 = arith.constant 0 : index
    %120 = vector.load %arg10[%c288_77, %c0_78] : memref<592x256xbf16, #tpu.memory_space<vmem>>, vector<16x256xbf16>
    tpu.vector_store %arg10[%c288_77, %c0_78], %119 {strides = array<i32>} : memref<592x256xbf16, #tpu.memory_space<vmem>>, vector<16x256xbf16>,
    %c0_79 = arith.constant 0 : index
    %c192_80 = arith.constant 192 : index
    %121 = vector.load %arg9[%c0_79, %c192_80] : memref<16x768xbf16, #tpu.memory_space<vmem>>, vector<16x256xbf16>
    %c304 = arith.constant 304 : index
    %c0_81 = arith.constant 0 : index
    %122 = vector.load %arg10[%c304, %c0_81] : memref<592x256xbf16, #tpu.memory_space<vmem>>, vector<16x256xbf16>
    tpu.vector_store %arg10[%c304, %c0_81], %121 {strides = array<i32>} : memref<592x256xbf16, #tpu.memory_space<vmem>>, vector<16x256xbf16>,
    %c0_82 = arith.constant 0 : index
    %c196 = arith.constant 196 : index
    %123 = vector.load %arg9[%c0_82, %c196] : memref<16x768xbf16, #tpu.memory_space<vmem>>, vector<16x256xbf16>
    %cst_83 = arith.constant 0.000000e+00 : bf16
    %124 = vector.broadcast %cst_83 : bf16 to vector<16x256xbf16>
    %125 = vector.shape_cast %12 : vector<1x256xi1> to vector<1x256xi1>
    %126 = vector.broadcast %125 : vector<1x256xi1> to vector<16x256xi1>
    %127 = arith.select %126, %123, %124 : vector<16x256xi1>, vector<16x256xbf16>
    %c320 = arith.constant 320 : index
    %c0_84 = arith.constant 0 : index
    %128 = vector.load %arg10[%c320, %c0_84] : memref<592x256xbf16, #tpu.memory_space<vmem>>, vector<16x256xbf16>
    tpu.vector_store %arg10[%c320, %c0_84], %127 {strides = array<i32>} : memref<592x256xbf16, #tpu.memory_space<vmem>>, vector<16x256xbf16>,
    %c0_85 = arith.constant 0 : index
    %c252 = arith.constant 252 : index
    %129 = vector.load %arg9[%c0_85, %c252] : memref<16x768xbf16, #tpu.memory_space<vmem>>, vector<16x256xbf16>
    %cst_86 = arith.constant 0.000000e+00 : bf16
    %130 = vector.broadcast %cst_86 : bf16 to vector<16x256xbf16>
    %131 = vector.shape_cast %10 : vector<1x256xi1> to vector<1x256xi1>
    %132 = vector.broadcast %131 : vector<1x256xi1> to vector<16x256xi1>
    %133 = arith.select %132, %129, %130 : vector<16x256xi1>, vector<16x256xbf16>
    %c336 = arith.constant 336 : index
    %c0_87 = arith.constant 0 : index
    %134 = vector.load %arg10[%c336, %c0_87] : memref<592x256xbf16, #tpu.memory_space<vmem>>, vector<16x256xbf16>
    tpu.vector_store %arg10[%c336, %c0_87], %133 {strides = array<i32>} : memref<592x256xbf16, #tpu.memory_space<vmem>>, vector<16x256xbf16>,
    %c0_88 = arith.constant 0 : index
    %c256_89 = arith.constant 256 : index
    %135 = vector.load %arg9[%c0_88, %c256_89] : memref<16x768xbf16, #tpu.memory_space<vmem>>, vector<16x256xbf16>
    %c352 = arith.constant 352 : index
    %c0_90 = arith.constant 0 : index
    %136 = vector.load %arg10[%c352, %c0_90] : memref<592x256xbf16, #tpu.memory_space<vmem>>, vector<16x256xbf16>
    tpu.vector_store %arg10[%c352, %c0_90], %135 {strides = array<i32>} : memref<592x256xbf16, #tpu.memory_space<vmem>>, vector<16x256xbf16>,
    %c0_91 = arith.constant 0 : index
    %c260 = arith.constant 260 : index
    %137 = vector.load %arg9[%c0_91, %c260] : memref<16x768xbf16, #tpu.memory_space<vmem>>, vector<16x256xbf16>
    %cst_92 = arith.constant 0.000000e+00 : bf16
    %138 = vector.broadcast %cst_92 : bf16 to vector<16x256xbf16>
    %139 = vector.shape_cast %12 : vector<1x256xi1> to vector<1x256xi1>
    %140 = vector.broadcast %139 : vector<1x256xi1> to vector<16x256xi1>
    %141 = arith.select %140, %137, %138 : vector<16x256xi1>, vector<16x256xbf16>
    %c368 = arith.constant 368 : index
    %c0_93 = arith.constant 0 : index
    %142 = vector.load %arg10[%c368, %c0_93] : memref<592x256xbf16, #tpu.memory_space<vmem>>, vector<16x256xbf16>
    tpu.vector_store %arg10[%c368, %c0_93], %141 {strides = array<i32>} : memref<592x256xbf16, #tpu.memory_space<vmem>>, vector<16x256xbf16>,
    %c0_94 = arith.constant 0 : index
    %c316 = arith.constant 316 : index
    %143 = vector.load %arg9[%c0_94, %c316] : memref<16x768xbf16, #tpu.memory_space<vmem>>, vector<16x256xbf16>
    %cst_95 = arith.constant 0.000000e+00 : bf16
    %144 = vector.broadcast %cst_95 : bf16 to vector<16x256xbf16>
    %145 = vector.shape_cast %10 : vector<1x256xi1> to vector<1x256xi1>
    %146 = vector.broadcast %145 : vector<1x256xi1> to vector<16x256xi1>
    %147 = arith.select %146, %143, %144 : vector<16x256xi1>, vector<16x256xbf16>
    %c384 = arith.constant 384 : index
    %c0_96 = arith.constant 0 : index
    %148 = vector.load %arg10[%c384, %c0_96] : memref<592x256xbf16, #tpu.memory_space<vmem>>, vector<16x256xbf16>
    tpu.vector_store %arg10[%c384, %c0_96], %147 {strides = array<i32>} : memref<592x256xbf16, #tpu.memory_space<vmem>>, vector<16x256xbf16>,
    %c0_97 = arith.constant 0 : index
    %c320_98 = arith.constant 320 : index
    %149 = vector.load %arg9[%c0_97, %c320_98] : memref<16x768xbf16, #tpu.memory_space<vmem>>, vector<16x256xbf16>
    %c400 = arith.constant 400 : index
    %c0_99 = arith.constant 0 : index
    %150 = vector.load %arg10[%c400, %c0_99] : memref<592x256xbf16, #tpu.memory_space<vmem>>, vector<16x256xbf16>
    tpu.vector_store %arg10[%c400, %c0_99], %149 {strides = array<i32>} : memref<592x256xbf16, #tpu.memory_space<vmem>>, vector<16x256xbf16>,
    %c0_100 = arith.constant 0 : index
    %c324 = arith.constant 324 : index
    %151 = vector.load %arg9[%c0_100, %c324] : memref<16x768xbf16, #tpu.memory_space<vmem>>, vector<16x256xbf16>
    %cst_101 = arith.constant 0.000000e+00 : bf16
    %152 = vector.broadcast %cst_101 : bf16 to vector<16x256xbf16>
    %153 = vector.shape_cast %12 : vector<1x256xi1> to vector<1x256xi1>
    %154 = vector.broadcast %153 : vector<1x256xi1> to vector<16x256xi1>
    %155 = arith.select %154, %151, %152 : vector<16x256xi1>, vector<16x256xbf16>
    %c416 = arith.constant 416 : index
    %c0_102 = arith.constant 0 : index
    %156 = vector.load %arg10[%c416, %c0_102] : memref<592x256xbf16, #tpu.memory_space<vmem>>, vector<16x256xbf16>
    tpu.vector_store %arg10[%c416, %c0_102], %155 {strides = array<i32>} : memref<592x256xbf16, #tpu.memory_space<vmem>>, vector<16x256xbf16>,
    %c0_103 = arith.constant 0 : index
    %c120 = arith.constant 120 : index
    %157 = vector.load %arg9[%c0_103, %c120] : memref<16x768xbf16, #tpu.memory_space<vmem>>, vector<16x256xbf16>
    %cst_104 = arith.constant 0.000000e+00 : bf16
    %158 = vector.broadcast %cst_104 : bf16 to vector<16x256xbf16>
    %159 = vector.shape_cast %14 : vector<1x256xi1> to vector<1x256xi1>
    %160 = vector.broadcast %159 : vector<1x256xi1> to vector<16x256xi1>
    %161 = arith.select %160, %157, %158 : vector<16x256xi1>, vector<16x256xbf16>
    %c432 = arith.constant 432 : index
    %c0_105 = arith.constant 0 : index
    %162 = vector.load %arg10[%c432, %c0_105] : memref<592x256xbf16, #tpu.memory_space<vmem>>, vector<16x256xbf16>
    tpu.vector_store %arg10[%c432, %c0_105], %161 {strides = array<i32>} : memref<592x256xbf16, #tpu.memory_space<vmem>>, vector<16x256xbf16>,
    %c0_106 = arith.constant 0 : index
    %c128_107 = arith.constant 128 : index
    %163 = vector.load %arg9[%c0_106, %c128_107] : memref<16x768xbf16, #tpu.memory_space<vmem>>, vector<16x256xbf16>
    %c448 = arith.constant 448 : index
    %c0_108 = arith.constant 0 : index
    %164 = vector.load %arg10[%c448, %c0_108] : memref<592x256xbf16, #tpu.memory_space<vmem>>, vector<16x256xbf16>
    tpu.vector_store %arg10[%c448, %c0_108], %163 {strides = array<i32>} : memref<592x256xbf16, #tpu.memory_space<vmem>>, vector<16x256xbf16>,
    %c0_109 = arith.constant 0 : index
    %c136 = arith.constant 136 : index
    %165 = vector.load %arg9[%c0_109, %c136] : memref<16x768xbf16, #tpu.memory_space<vmem>>, vector<16x256xbf16>
    %cst_110 = arith.constant 0.000000e+00 : bf16
    %166 = vector.broadcast %cst_110 : bf16 to vector<16x256xbf16>
    %167 = vector.shape_cast %16 : vector<1x256xi1> to vector<1x256xi1>
    %168 = vector.broadcast %167 : vector<1x256xi1> to vector<16x256xi1>
    %169 = arith.select %168, %165, %166 : vector<16x256xi1>, vector<16x256xbf16>
    %c464 = arith.constant 464 : index
    %c0_111 = arith.constant 0 : index
    %170 = vector.load %arg10[%c464, %c0_111] : memref<592x256xbf16, #tpu.memory_space<vmem>>, vector<16x256xbf16>
    tpu.vector_store %arg10[%c464, %c0_111], %169 {strides = array<i32>} : memref<592x256xbf16, #tpu.memory_space<vmem>>, vector<16x256xbf16>,
    %c0_112 = arith.constant 0 : index
    %c248 = arith.constant 248 : index
    %171 = vector.load %arg9[%c0_112, %c248] : memref<16x768xbf16, #tpu.memory_space<vmem>>, vector<16x256xbf16>
    %cst_113 = arith.constant 0.000000e+00 : bf16
    %172 = vector.broadcast %cst_113 : bf16 to vector<16x256xbf16>
    %173 = vector.shape_cast %14 : vector<1x256xi1> to vector<1x256xi1>
    %174 = vector.broadcast %173 : vector<1x256xi1> to vector<16x256xi1>
    %175 = arith.select %174, %171, %172 : vector<16x256xi1>, vector<16x256xbf16>
    %c480 = arith.constant 480 : index
    %c0_114 = arith.constant 0 : index
    %176 = vector.load %arg10[%c480, %c0_114] : memref<592x256xbf16, #tpu.memory_space<vmem>>, vector<16x256xbf16>
    tpu.vector_store %arg10[%c480, %c0_114], %175 {strides = array<i32>} : memref<592x256xbf16, #tpu.memory_space<vmem>>, vector<16x256xbf16>,
    %c0_115 = arith.constant 0 : index
    %c256_116 = arith.constant 256 : index
    %177 = vector.load %arg9[%c0_115, %c256_116] : memref<16x768xbf16, #tpu.memory_space<vmem>>, vector<16x256xbf16>
    %c496 = arith.constant 496 : index
    %c0_117 = arith.constant 0 : index
    %178 = vector.load %arg10[%c496, %c0_117] : memref<592x256xbf16, #tpu.memory_space<vmem>>, vector<16x256xbf16>
    tpu.vector_store %arg10[%c496, %c0_117], %177 {strides = array<i32>} : memref<592x256xbf16, #tpu.memory_space<vmem>>, vector<16x256xbf16>,
    %c0_118 = arith.constant 0 : index
    %c264 = arith.constant 264 : index
    %179 = vector.load %arg9[%c0_118, %c264] : memref<16x768xbf16, #tpu.memory_space<vmem>>, vector<16x256xbf16>
    %cst_119 = arith.constant 0.000000e+00 : bf16
    %180 = vector.broadcast %cst_119 : bf16 to vector<16x256xbf16>
    %181 = vector.shape_cast %16 : vector<1x256xi1> to vector<1x256xi1>
    %182 = vector.broadcast %181 : vector<1x256xi1> to vector<16x256xi1>
    %183 = arith.select %182, %179, %180 : vector<16x256xi1>, vector<16x256xbf16>
    %c512_120 = arith.constant 512 : index
    %c0_121 = arith.constant 0 : index
    %184 = vector.load %arg10[%c512_120, %c0_121] : memref<592x256xbf16, #tpu.memory_space<vmem>>, vector<16x256xbf16>
    tpu.vector_store %arg10[%c512_120, %c0_121], %183 {strides = array<i32>} : memref<592x256xbf16, #tpu.memory_space<vmem>>, vector<16x256xbf16>,
    %c0_122 = arith.constant 0 : index
    %c376 = arith.constant 376 : index
    %185 = vector.load %arg9[%c0_122, %c376] : memref<16x768xbf16, #tpu.memory_space<vmem>>, vector<16x256xbf16>
    %cst_123 = arith.constant 0.000000e+00 : bf16
    %186 = vector.broadcast %cst_123 : bf16 to vector<16x256xbf16>
    %187 = vector.shape_cast %14 : vector<1x256xi1> to vector<1x256xi1>
    %188 = vector.broadcast %187 : vector<1x256xi1> to vector<16x256xi1>
    %189 = arith.select %188, %185, %186 : vector<16x256xi1>, vector<16x256xbf16>
    %c528 = arith.constant 528 : index
    %c0_124 = arith.constant 0 : index
    %190 = vector.load %arg10[%c528, %c0_124] : memref<592x256xbf16, #tpu.memory_space<vmem>>, vector<16x256xbf16>
    tpu.vector_store %arg10[%c528, %c0_124], %189 {strides = array<i32>} : memref<592x256xbf16, #tpu.memory_space<vmem>>, vector<16x256xbf16>,
    %c0_125 = arith.constant 0 : index
    %c384_126 = arith.constant 384 : index
    %191 = vector.load %arg9[%c0_125, %c384_126] : memref<16x768xbf16, #tpu.memory_space<vmem>>, vector<16x256xbf16>
    %c544 = arith.constant 544 : index
    %c0_127 = arith.constant 0 : index
    %192 = vector.load %arg10[%c544, %c0_127] : memref<592x256xbf16, #tpu.memory_space<vmem>>, vector<16x256xbf16>
    tpu.vector_store %arg10[%c544, %c0_127], %191 {strides = array<i32>} : memref<592x256xbf16, #tpu.memory_space<vmem>>, vector<16x256xbf16>,
    %c0_128 = arith.constant 0 : index
    %c392 = arith.constant 392 : index
    %193 = vector.load %arg9[%c0_128, %c392] : memref<16x768xbf16, #tpu.memory_space<vmem>>, vector<16x256xbf16>
    %cst_129 = arith.constant 0.000000e+00 : bf16
    %194 = vector.broadcast %cst_129 : bf16 to vector<16x256xbf16>
    %195 = vector.shape_cast %16 : vector<1x256xi1> to vector<1x256xi1>
    %196 = vector.broadcast %195 : vector<1x256xi1> to vector<16x256xi1>
    %197 = arith.select %196, %193, %194 : vector<16x256xi1>, vector<16x256xbf16>
    %c560 = arith.constant 560 : index
    %c0_130 = arith.constant 0 : index
    %198 = vector.load %arg10[%c560, %c0_130] : memref<592x256xbf16, #tpu.memory_space<vmem>>, vector<16x256xbf16>
    tpu.vector_store %arg10[%c560, %c0_130], %197 {strides = array<i32>} : memref<592x256xbf16, #tpu.memory_space<vmem>>, vector<16x256xbf16>,
    %c0_131 = arith.constant 0 : index
    %c256_132 = arith.constant 256 : index
    %199 = vector.load %arg9[%c0_131, %c256_132] : memref<16x768xbf16, #tpu.memory_space<vmem>>, vector<16x256xbf16>
    %c576 = arith.constant 576 : index
    %c0_133 = arith.constant 0 : index
    %200 = vector.load %arg10[%c576, %c0_133] : memref<592x256xbf16, #tpu.memory_space<vmem>>, vector<16x256xbf16>
    tpu.vector_store %arg10[%c576, %c0_133], %199 {strides = array<i32>} : memref<592x256xbf16, #tpu.memory_space<vmem>>, vector<16x256xbf16>,
    %c0_134 = arith.constant 0 : index
    %c0_135 = arith.constant 0 : index
    %201 = vector.load %arg10[%c0_134, %c0_135] : memref<592x256xbf16, #tpu.memory_space<vmem>>, vector<592x256xbf16>
    %cst_136 = arith.constant dense<0.000000e+00> : vector<20x256xf32>
    %202 = tpu.matmul %21, %201, %cst_136 {dimension_numbers = #tpu.dot_dimension_numbers<[1], [0], [0], [1], [0, 0, 1, 1], [], []>} : vector<20x592xbf16>, vector<592x256xbf16>, vector<20x256xf32> -> vector<20x256xf32>
    %203 = arith.addf %202, %26 : vector<20x256xf32>
    %204 = vector.broadcast %22 : vector<20x1xf32> to vector<20x256xf32>
    %205 = arith.mulf %203, %204 : vector<20x256xf32>
    %206 = vector.broadcast %23 : vector<20x1xf32> to vector<20x256xf32>
    %207 = arith.addf %205, %206 : vector<20x256xf32>
    %cst_137 = arith.constant 0.000000e+00 : f32
    %208 = vector.broadcast %cst_137 : f32 to vector<20x256xf32>
    %209 = arith.cmpf oge, %207, %208 : vector<20x256xf32>
    %210 = vector.broadcast %24 : vector<20x1xf32> to vector<20x256xf32>
    %211 = arith.mulf %210, %207 : vector<20x256xf32>
    %212 = arith.select %209, %207, %211 : vector<20x256xi1>, vector<20x256xf32>
    %c0_138 = arith.constant 0 : index
    %c0_139 = arith.constant 0 : index
    %c0_140 = arith.constant 0 : index
    %213 = vector.load %arg8[%c0_138, %c0_139, %c0_140] : memref<2x20x256xf32, #tpu.memory_space<vmem>>, vector<1x20x256xf32>
    %214 = vector.shape_cast %213 : vector<1x20x256xf32> to vector<20x256xf32>
    %215 = vector.shape_cast %212 : vector<20x256xf32> to vector<1x20x256xf32>
    tpu.vector_store %arg8[%c0_138, %c0_139, %c0_140], %215 {strides = array<i32>} : memref<2x20x256xf32, #tpu.memory_space<vmem>>, vector<1x20x256xf32>,
    %c1 = arith.constant 1 : index
    %c0_141 = arith.constant 0 : index
    %c0_142 = arith.constant 0 : index
    %216 = vector.load %arg1[%c1, %c0_141, %c0_142] : memref<2x20x256xf32, #tpu.memory_space<vmem>>, vector<1x20x256xf32>
    %217 = vector.shape_cast %216 : vector<1x20x256xf32> to vector<20x256xf32>
    %218 = arith.truncf %217 : vector<20x256xf32> to vector<20x256xbf16>
    %cst_143 = arith.constant dense<0.000000e+00> : vector<16x256xf32>
    %219 = tpu.matmul %20, %218, %cst_143 {dimension_numbers = #tpu.dot_dimension_numbers<[1], [0], [0], [1], [0, 0, 1, 1], [], []>} : vector<16x20xbf16>, vector<20x256xbf16>, vector<16x256xf32> -> vector<16x256xf32>
    %220 = arith.truncf %219 : vector<16x256xf32> to vector<16x256xbf16>
    %c0_144 = arith.constant 0 : index
    %c256_145 = arith.constant 256 : index
    %221 = vector.load %arg9[%c0_144, %c256_145] : memref<16x768xbf16, #tpu.memory_space<vmem>>, vector<16x256xbf16>
    tpu.vector_store %arg9[%c0_144, %c256_145], %220 {strides = array<i32>} : memref<16x768xbf16, #tpu.memory_space<vmem>>, vector<16x256xbf16>,
    %c0_146 = arith.constant 0 : index
    %c239_147 = arith.constant 239 : index
    %222 = vector.load %arg9[%c0_146, %c239_147] : memref<16x768xbf16, #tpu.memory_space<vmem>>, vector<16x256xbf16>
    %cst_148 = arith.constant 0.000000e+00 : bf16
    %223 = vector.broadcast %cst_148 : bf16 to vector<16x256xbf16>
    %224 = vector.shape_cast %2 : vector<1x256xi1> to vector<1x256xi1>
    %225 = vector.broadcast %224 : vector<1x256xi1> to vector<16x256xi1>
    %226 = arith.select %225, %222, %223 : vector<16x256xi1>, vector<16x256xbf16>
    %c0_149 = arith.constant 0 : index
    %c0_150 = arith.constant 0 : index
    %227 = vector.load %arg10[%c0_149, %c0_150] : memref<592x256xbf16, #tpu.memory_space<vmem>>, vector<16x256xbf16>
    tpu.vector_store %arg10[%c0_149, %c0_150], %226 {strides = array<i32>} : memref<592x256xbf16, #tpu.memory_space<vmem>>, vector<16x256xbf16>,
    %c0_151 = arith.constant 0 : index
    %c240_152 = arith.constant 240 : index
    %228 = vector.load %arg9[%c0_151, %c240_152] : memref<16x768xbf16, #tpu.memory_space<vmem>>, vector<16x256xbf16>
    %c16_153 = arith.constant 16 : index
    %c0_154 = arith.constant 0 : index
    %229 = vector.load %arg10[%c16_153, %c0_154] : memref<592x256xbf16, #tpu.memory_space<vmem>>, vector<16x256xbf16>
    tpu.vector_store %arg10[%c16_153, %c0_154], %228 {strides = array<i32>} : memref<592x256xbf16, #tpu.memory_space<vmem>>, vector<16x256xbf16>,
    %c0_155 = arith.constant 0 : index
    %c241_156 = arith.constant 241 : index
    %230 = vector.load %arg9[%c0_155, %c241_156] : memref<16x768xbf16, #tpu.memory_space<vmem>>, vector<16x256xbf16>
    %cst_157 = arith.constant 0.000000e+00 : bf16
    %231 = vector.broadcast %cst_157 : bf16 to vector<16x256xbf16>
    %232 = vector.shape_cast %4 : vector<1x256xi1> to vector<1x256xi1>
    %233 = vector.broadcast %232 : vector<1x256xi1> to vector<16x256xi1>
    %234 = arith.select %233, %230, %231 : vector<16x256xi1>, vector<16x256xbf16>
    %c32_158 = arith.constant 32 : index
    %c0_159 = arith.constant 0 : index
    %235 = vector.load %arg10[%c32_158, %c0_159] : memref<592x256xbf16, #tpu.memory_space<vmem>>, vector<16x256xbf16>
    tpu.vector_store %arg10[%c32_158, %c0_159], %234 {strides = array<i32>} : memref<592x256xbf16, #tpu.memory_space<vmem>>, vector<16x256xbf16>,
    %c0_160 = arith.constant 0 : index
    %c255_161 = arith.constant 255 : index
    %236 = vector.load %arg9[%c0_160, %c255_161] : memref<16x768xbf16, #tpu.memory_space<vmem>>, vector<16x256xbf16>
    %cst_162 = arith.constant 0.000000e+00 : bf16
    %237 = vector.broadcast %cst_162 : bf16 to vector<16x256xbf16>
    %238 = vector.shape_cast %2 : vector<1x256xi1> to vector<1x256xi1>
    %239 = vector.broadcast %238 : vector<1x256xi1> to vector<16x256xi1>
    %240 = arith.select %239, %236, %237 : vector<16x256xi1>, vector<16x256xbf16>
    %c48_163 = arith.constant 48 : index
    %c0_164 = arith.constant 0 : index
    %241 = vector.load %arg10[%c48_163, %c0_164] : memref<592x256xbf16, #tpu.memory_space<vmem>>, vector<16x256xbf16>
    tpu.vector_store %arg10[%c48_163, %c0_164], %240 {strides = array<i32>} : memref<592x256xbf16, #tpu.memory_space<vmem>>, vector<16x256xbf16>,
    %c0_165 = arith.constant 0 : index
    %c256_166 = arith.constant 256 : index
    %242 = vector.load %arg9[%c0_165, %c256_166] : memref<16x768xbf16, #tpu.memory_space<vmem>>, vector<16x256xbf16>
    %c64_167 = arith.constant 64 : index
    %c0_168 = arith.constant 0 : index
    %243 = vector.load %arg10[%c64_167, %c0_168] : memref<592x256xbf16, #tpu.memory_space<vmem>>, vector<16x256xbf16>
    tpu.vector_store %arg10[%c64_167, %c0_168], %242 {strides = array<i32>} : memref<592x256xbf16, #tpu.memory_space<vmem>>, vector<16x256xbf16>,
    %c0_169 = arith.constant 0 : index
    %c257_170 = arith.constant 257 : index
    %244 = vector.load %arg9[%c0_169, %c257_170] : memref<16x768xbf16, #tpu.memory_space<vmem>>, vector<16x256xbf16>
    %cst_171 = arith.constant 0.000000e+00 : bf16
    %245 = vector.broadcast %cst_171 : bf16 to vector<16x256xbf16>
    %246 = vector.shape_cast %4 : vector<1x256xi1> to vector<1x256xi1>
    %247 = vector.broadcast %246 : vector<1x256xi1> to vector<16x256xi1>
    %248 = arith.select %247, %244, %245 : vector<16x256xi1>, vector<16x256xbf16>
    %c80_172 = arith.constant 80 : index
    %c0_173 = arith.constant 0 : index
    %249 = vector.load %arg10[%c80_172, %c0_173] : memref<592x256xbf16, #tpu.memory_space<vmem>>, vector<16x256xbf16>
    tpu.vector_store %arg10[%c80_172, %c0_173], %248 {strides = array<i32>} : memref<592x256xbf16, #tpu.memory_space<vmem>>, vector<16x256xbf16>,
    %c0_174 = arith.constant 0 : index
    %c271_175 = arith.constant 271 : index
    %250 = vector.load %arg9[%c0_174, %c271_175] : memref<16x768xbf16, #tpu.memory_space<vmem>>, vector<16x256xbf16>
    %cst_176 = arith.constant 0.000000e+00 : bf16
    %251 = vector.broadcast %cst_176 : bf16 to vector<16x256xbf16>
    %252 = vector.shape_cast %2 : vector<1x256xi1> to vector<1x256xi1>
    %253 = vector.broadcast %252 : vector<1x256xi1> to vector<16x256xi1>
    %254 = arith.select %253, %250, %251 : vector<16x256xi1>, vector<16x256xbf16>
    %c96_177 = arith.constant 96 : index
    %c0_178 = arith.constant 0 : index
    %255 = vector.load %arg10[%c96_177, %c0_178] : memref<592x256xbf16, #tpu.memory_space<vmem>>, vector<16x256xbf16>
    tpu.vector_store %arg10[%c96_177, %c0_178], %254 {strides = array<i32>} : memref<592x256xbf16, #tpu.memory_space<vmem>>, vector<16x256xbf16>,
    %c0_179 = arith.constant 0 : index
    %c272_180 = arith.constant 272 : index
    %256 = vector.load %arg9[%c0_179, %c272_180] : memref<16x768xbf16, #tpu.memory_space<vmem>>, vector<16x256xbf16>
    %c112_181 = arith.constant 112 : index
    %c0_182 = arith.constant 0 : index
    %257 = vector.load %arg10[%c112_181, %c0_182] : memref<592x256xbf16, #tpu.memory_space<vmem>>, vector<16x256xbf16>
    tpu.vector_store %arg10[%c112_181, %c0_182], %256 {strides = array<i32>} : memref<592x256xbf16, #tpu.memory_space<vmem>>, vector<16x256xbf16>,
    %c0_183 = arith.constant 0 : index
    %c273_184 = arith.constant 273 : index
    %258 = vector.load %arg9[%c0_183, %c273_184] : memref<16x768xbf16, #tpu.memory_space<vmem>>, vector<16x256xbf16>
    %cst_185 = arith.constant 0.000000e+00 : bf16
    %259 = vector.broadcast %cst_185 : bf16 to vector<16x256xbf16>
    %260 = vector.shape_cast %4 : vector<1x256xi1> to vector<1x256xi1>
    %261 = vector.broadcast %260 : vector<1x256xi1> to vector<16x256xi1>
    %262 = arith.select %261, %258, %259 : vector<16x256xi1>, vector<16x256xbf16>
    %c128_186 = arith.constant 128 : index
    %c0_187 = arith.constant 0 : index
    %263 = vector.load %arg10[%c128_186, %c0_187] : memref<592x256xbf16, #tpu.memory_space<vmem>>, vector<16x256xbf16>
    tpu.vector_store %arg10[%c128_186, %c0_187], %262 {strides = array<i32>} : memref<592x256xbf16, #tpu.memory_space<vmem>>, vector<16x256xbf16>,
    %c0_188 = arith.constant 0 : index
    %c222_189 = arith.constant 222 : index
    %264 = vector.load %arg9[%c0_188, %c222_189] : memref<16x768xbf16, #tpu.memory_space<vmem>>, vector<16x256xbf16>
    %cst_190 = arith.constant 0.000000e+00 : bf16
    %265 = vector.broadcast %cst_190 : bf16 to vector<16x256xbf16>
    %266 = vector.shape_cast %6 : vector<1x256xi1> to vector<1x256xi1>
    %267 = vector.broadcast %266 : vector<1x256xi1> to vector<16x256xi1>
    %268 = arith.select %267, %264, %265 : vector<16x256xi1>, vector<16x256xbf16>
    %c144_191 = arith.constant 144 : index
    %c0_192 = arith.constant 0 : index
    %269 = vector.load %arg10[%c144_191, %c0_192] : memref<592x256xbf16, #tpu.memory_space<vmem>>, vector<16x256xbf16>
    tpu.vector_store %arg10[%c144_191, %c0_192], %268 {strides = array<i32>} : memref<592x256xbf16, #tpu.memory_space<vmem>>, vector<16x256xbf16>,
    %c0_193 = arith.constant 0 : index
    %c224_194 = arith.constant 224 : index
    %270 = vector.load %arg9[%c0_193, %c224_194] : memref<16x768xbf16, #tpu.memory_space<vmem>>, vector<16x256xbf16>
    %c160_195 = arith.constant 160 : index
    %c0_196 = arith.constant 0 : index
    %271 = vector.load %arg10[%c160_195, %c0_196] : memref<592x256xbf16, #tpu.memory_space<vmem>>, vector<16x256xbf16>
    tpu.vector_store %arg10[%c160_195, %c0_196], %270 {strides = array<i32>} : memref<592x256xbf16, #tpu.memory_space<vmem>>, vector<16x256xbf16>,
    %c0_197 = arith.constant 0 : index
    %c226_198 = arith.constant 226 : index
    %272 = vector.load %arg9[%c0_197, %c226_198] : memref<16x768xbf16, #tpu.memory_space<vmem>>, vector<16x256xbf16>
    %cst_199 = arith.constant 0.000000e+00 : bf16
    %273 = vector.broadcast %cst_199 : bf16 to vector<16x256xbf16>
    %274 = vector.shape_cast %8 : vector<1x256xi1> to vector<1x256xi1>
    %275 = vector.broadcast %274 : vector<1x256xi1> to vector<16x256xi1>
    %276 = arith.select %275, %272, %273 : vector<16x256xi1>, vector<16x256xbf16>
    %c176_200 = arith.constant 176 : index
    %c0_201 = arith.constant 0 : index
    %277 = vector.load %arg10[%c176_200, %c0_201] : memref<592x256xbf16, #tpu.memory_space<vmem>>, vector<16x256xbf16>
    tpu.vector_store %arg10[%c176_200, %c0_201], %276 {strides = array<i32>} : memref<592x256xbf16, #tpu.memory_space<vmem>>, vector<16x256xbf16>,
    %c0_202 = arith.constant 0 : index
    %c254_203 = arith.constant 254 : index
    %278 = vector.load %arg9[%c0_202, %c254_203] : memref<16x768xbf16, #tpu.memory_space<vmem>>, vector<16x256xbf16>
    %cst_204 = arith.constant 0.000000e+00 : bf16
    %279 = vector.broadcast %cst_204 : bf16 to vector<16x256xbf16>
    %280 = vector.shape_cast %6 : vector<1x256xi1> to vector<1x256xi1>
    %281 = vector.broadcast %280 : vector<1x256xi1> to vector<16x256xi1>
    %282 = arith.select %281, %278, %279 : vector<16x256xi1>, vector<16x256xbf16>
    %c192_205 = arith.constant 192 : index
    %c0_206 = arith.constant 0 : index
    %283 = vector.load %arg10[%c192_205, %c0_206] : memref<592x256xbf16, #tpu.memory_space<vmem>>, vector<16x256xbf16>
    tpu.vector_store %arg10[%c192_205, %c0_206], %282 {strides = array<i32>} : memref<592x256xbf16, #tpu.memory_space<vmem>>, vector<16x256xbf16>,
    %c0_207 = arith.constant 0 : index
    %c256_208 = arith.constant 256 : index
    %284 = vector.load %arg9[%c0_207, %c256_208] : memref<16x768xbf16, #tpu.memory_space<vmem>>, vector<16x256xbf16>
    %c208_209 = arith.constant 208 : index
    %c0_210 = arith.constant 0 : index
    %285 = vector.load %arg10[%c208_209, %c0_210] : memref<592x256xbf16, #tpu.memory_space<vmem>>, vector<16x256xbf16>
    tpu.vector_store %arg10[%c208_209, %c0_210], %284 {strides = array<i32>} : memref<592x256xbf16, #tpu.memory_space<vmem>>, vector<16x256xbf16>,
    %c0_211 = arith.constant 0 : index
    %c258_212 = arith.constant 258 : index
    %286 = vector.load %arg9[%c0_211, %c258_212] : memref<16x768xbf16, #tpu.memory_space<vmem>>, vector<16x256xbf16>
    %cst_213 = arith.constant 0.000000e+00 : bf16
    %287 = vector.broadcast %cst_213 : bf16 to vector<16x256xbf16>
    %288 = vector.shape_cast %8 : vector<1x256xi1> to vector<1x256xi1>
    %289 = vector.broadcast %288 : vector<1x256xi1> to vector<16x256xi1>
    %290 = arith.select %289, %286, %287 : vector<16x256xi1>, vector<16x256xbf16>
    %c224_214 = arith.constant 224 : index
    %c0_215 = arith.constant 0 : index
    %291 = vector.load %arg10[%c224_214, %c0_215] : memref<592x256xbf16, #tpu.memory_space<vmem>>, vector<16x256xbf16>
    tpu.vector_store %arg10[%c224_214, %c0_215], %290 {strides = array<i32>} : memref<592x256xbf16, #tpu.memory_space<vmem>>, vector<16x256xbf16>,
    %c0_216 = arith.constant 0 : index
    %c286_217 = arith.constant 286 : index
    %292 = vector.load %arg9[%c0_216, %c286_217] : memref<16x768xbf16, #tpu.memory_space<vmem>>, vector<16x256xbf16>
    %cst_218 = arith.constant 0.000000e+00 : bf16
    %293 = vector.broadcast %cst_218 : bf16 to vector<16x256xbf16>
    %294 = vector.shape_cast %6 : vector<1x256xi1> to vector<1x256xi1>
    %295 = vector.broadcast %294 : vector<1x256xi1> to vector<16x256xi1>
    %296 = arith.select %295, %292, %293 : vector<16x256xi1>, vector<16x256xbf16>
    %c240_219 = arith.constant 240 : index
    %c0_220 = arith.constant 0 : index
    %297 = vector.load %arg10[%c240_219, %c0_220] : memref<592x256xbf16, #tpu.memory_space<vmem>>, vector<16x256xbf16>
    tpu.vector_store %arg10[%c240_219, %c0_220], %296 {strides = array<i32>} : memref<592x256xbf16, #tpu.memory_space<vmem>>, vector<16x256xbf16>,
    %c0_221 = arith.constant 0 : index
    %c288_222 = arith.constant 288 : index
    %298 = vector.load %arg9[%c0_221, %c288_222] : memref<16x768xbf16, #tpu.memory_space<vmem>>, vector<16x256xbf16>
    %c256_223 = arith.constant 256 : index
    %c0_224 = arith.constant 0 : index
    %299 = vector.load %arg10[%c256_223, %c0_224] : memref<592x256xbf16, #tpu.memory_space<vmem>>, vector<16x256xbf16>
    tpu.vector_store %arg10[%c256_223, %c0_224], %298 {strides = array<i32>} : memref<592x256xbf16, #tpu.memory_space<vmem>>, vector<16x256xbf16>,
    %c0_225 = arith.constant 0 : index
    %c290_226 = arith.constant 290 : index
    %300 = vector.load %arg9[%c0_225, %c290_226] : memref<16x768xbf16, #tpu.memory_space<vmem>>, vector<16x256xbf16>
    %cst_227 = arith.constant 0.000000e+00 : bf16
    %301 = vector.broadcast %cst_227 : bf16 to vector<16x256xbf16>
    %302 = vector.shape_cast %8 : vector<1x256xi1> to vector<1x256xi1>
    %303 = vector.broadcast %302 : vector<1x256xi1> to vector<16x256xi1>
    %304 = arith.select %303, %300, %301 : vector<16x256xi1>, vector<16x256xbf16>
    %c272_228 = arith.constant 272 : index
    %c0_229 = arith.constant 0 : index
    %305 = vector.load %arg10[%c272_228, %c0_229] : memref<592x256xbf16, #tpu.memory_space<vmem>>, vector<16x256xbf16>
    tpu.vector_store %arg10[%c272_228, %c0_229], %304 {strides = array<i32>} : memref<592x256xbf16, #tpu.memory_space<vmem>>, vector<16x256xbf16>,
    %c0_230 = arith.constant 0 : index
    %c188_231 = arith.constant 188 : index
    %306 = vector.load %arg9[%c0_230, %c188_231] : memref<16x768xbf16, #tpu.memory_space<vmem>>, vector<16x256xbf16>
    %cst_232 = arith.constant 0.000000e+00 : bf16
    %307 = vector.broadcast %cst_232 : bf16 to vector<16x256xbf16>
    %308 = vector.shape_cast %10 : vector<1x256xi1> to vector<1x256xi1>
    %309 = vector.broadcast %308 : vector<1x256xi1> to vector<16x256xi1>
    %310 = arith.select %309, %306, %307 : vector<16x256xi1>, vector<16x256xbf16>
    %c288_233 = arith.constant 288 : index
    %c0_234 = arith.constant 0 : index
    %311 = vector.load %arg10[%c288_233, %c0_234] : memref<592x256xbf16, #tpu.memory_space<vmem>>, vector<16x256xbf16>
    tpu.vector_store %arg10[%c288_233, %c0_234], %310 {strides = array<i32>} : memref<592x256xbf16, #tpu.memory_space<vmem>>, vector<16x256xbf16>,
    %c0_235 = arith.constant 0 : index
    %c192_236 = arith.constant 192 : index
    %312 = vector.load %arg9[%c0_235, %c192_236] : memref<16x768xbf16, #tpu.memory_space<vmem>>, vector<16x256xbf16>
    %c304_237 = arith.constant 304 : index
    %c0_238 = arith.constant 0 : index
    %313 = vector.load %arg10[%c304_237, %c0_238] : memref<592x256xbf16, #tpu.memory_space<vmem>>, vector<16x256xbf16>
    tpu.vector_store %arg10[%c304_237, %c0_238], %312 {strides = array<i32>} : memref<592x256xbf16, #tpu.memory_space<vmem>>, vector<16x256xbf16>,
    %c0_239 = arith.constant 0 : index
    %c196_240 = arith.constant 196 : index
    %314 = vector.load %arg9[%c0_239, %c196_240] : memref<16x768xbf16, #tpu.memory_space<vmem>>, vector<16x256xbf16>
    %cst_241 = arith.constant 0.000000e+00 : bf16
    %315 = vector.broadcast %cst_241 : bf16 to vector<16x256xbf16>
    %316 = vector.shape_cast %12 : vector<1x256xi1> to vector<1x256xi1>
    %317 = vector.broadcast %316 : vector<1x256xi1> to vector<16x256xi1>
    %318 = arith.select %317, %314, %315 : vector<16x256xi1>, vector<16x256xbf16>
    %c320_242 = arith.constant 320 : index
    %c0_243 = arith.constant 0 : index
    %319 = vector.load %arg10[%c320_242, %c0_243] : memref<592x256xbf16, #tpu.memory_space<vmem>>, vector<16x256xbf16>
    tpu.vector_store %arg10[%c320_242, %c0_243], %318 {strides = array<i32>} : memref<592x256xbf16, #tpu.memory_space<vmem>>, vector<16x256xbf16>,
    %c0_244 = arith.constant 0 : index
    %c252_245 = arith.constant 252 : index
    %320 = vector.load %arg9[%c0_244, %c252_245] : memref<16x768xbf16, #tpu.memory_space<vmem>>, vector<16x256xbf16>
    %cst_246 = arith.constant 0.000000e+00 : bf16
    %321 = vector.broadcast %cst_246 : bf16 to vector<16x256xbf16>
    %322 = vector.shape_cast %10 : vector<1x256xi1> to vector<1x256xi1>
    %323 = vector.broadcast %322 : vector<1x256xi1> to vector<16x256xi1>
    %324 = arith.select %323, %320, %321 : vector<16x256xi1>, vector<16x256xbf16>
    %c336_247 = arith.constant 336 : index
    %c0_248 = arith.constant 0 : index
    %325 = vector.load %arg10[%c336_247, %c0_248] : memref<592x256xbf16, #tpu.memory_space<vmem>>, vector<16x256xbf16>
    tpu.vector_store %arg10[%c336_247, %c0_248], %324 {strides = array<i32>} : memref<592x256xbf16, #tpu.memory_space<vmem>>, vector<16x256xbf16>,
    %c0_249 = arith.constant 0 : index
    %c256_250 = arith.constant 256 : index
    %326 = vector.load %arg9[%c0_249, %c256_250] : memref<16x768xbf16, #tpu.memory_space<vmem>>, vector<16x256xbf16>
    %c352_251 = arith.constant 352 : index
    %c0_252 = arith.constant 0 : index
    %327 = vector.load %arg10[%c352_251, %c0_252] : memref<592x256xbf16, #tpu.memory_space<vmem>>, vector<16x256xbf16>
    tpu.vector_store %arg10[%c352_251, %c0_252], %326 {strides = array<i32>} : memref<592x256xbf16, #tpu.memory_space<vmem>>, vector<16x256xbf16>,
    %c0_253 = arith.constant 0 : index
    %c260_254 = arith.constant 260 : index
    %328 = vector.load %arg9[%c0_253, %c260_254] : memref<16x768xbf16, #tpu.memory_space<vmem>>, vector<16x256xbf16>
    %cst_255 = arith.constant 0.000000e+00 : bf16
    %329 = vector.broadcast %cst_255 : bf16 to vector<16x256xbf16>
    %330 = vector.shape_cast %12 : vector<1x256xi1> to vector<1x256xi1>
    %331 = vector.broadcast %330 : vector<1x256xi1> to vector<16x256xi1>
    %332 = arith.select %331, %328, %329 : vector<16x256xi1>, vector<16x256xbf16>
    %c368_256 = arith.constant 368 : index
    %c0_257 = arith.constant 0 : index
    %333 = vector.load %arg10[%c368_256, %c0_257] : memref<592x256xbf16, #tpu.memory_space<vmem>>, vector<16x256xbf16>
    tpu.vector_store %arg10[%c368_256, %c0_257], %332 {strides = array<i32>} : memref<592x256xbf16, #tpu.memory_space<vmem>>, vector<16x256xbf16>,
    %c0_258 = arith.constant 0 : index
    %c316_259 = arith.constant 316 : index
    %334 = vector.load %arg9[%c0_258, %c316_259] : memref<16x768xbf16, #tpu.memory_space<vmem>>, vector<16x256xbf16>
    %cst_260 = arith.constant 0.000000e+00 : bf16
    %335 = vector.broadcast %cst_260 : bf16 to vector<16x256xbf16>
    %336 = vector.shape_cast %10 : vector<1x256xi1> to vector<1x256xi1>
    %337 = vector.broadcast %336 : vector<1x256xi1> to vector<16x256xi1>
    %338 = arith.select %337, %334, %335 : vector<16x256xi1>, vector<16x256xbf16>
    %c384_261 = arith.constant 384 : index
    %c0_262 = arith.constant 0 : index
    %339 = vector.load %arg10[%c384_261, %c0_262] : memref<592x256xbf16, #tpu.memory_space<vmem>>, vector<16x256xbf16>
    tpu.vector_store %arg10[%c384_261, %c0_262], %338 {strides = array<i32>} : memref<592x256xbf16, #tpu.memory_space<vmem>>, vector<16x256xbf16>,
    %c0_263 = arith.constant 0 : index
    %c320_264 = arith.constant 320 : index
    %340 = vector.load %arg9[%c0_263, %c320_264] : memref<16x768xbf16, #tpu.memory_space<vmem>>, vector<16x256xbf16>
    %c400_265 = arith.constant 400 : index
    %c0_266 = arith.constant 0 : index
    %341 = vector.load %arg10[%c400_265, %c0_266] : memref<592x256xbf16, #tpu.memory_space<vmem>>, vector<16x256xbf16>
    tpu.vector_store %arg10[%c400_265, %c0_266], %340 {strides = array<i32>} : memref<592x256xbf16, #tpu.memory_space<vmem>>, vector<16x256xbf16>,
    %c0_267 = arith.constant 0 : index
    %c324_268 = arith.constant 324 : index
    %342 = vector.load %arg9[%c0_267, %c324_268] : memref<16x768xbf16, #tpu.memory_space<vmem>>, vector<16x256xbf16>
    %cst_269 = arith.constant 0.000000e+00 : bf16
    %343 = vector.broadcast %cst_269 : bf16 to vector<16x256xbf16>
    %344 = vector.shape_cast %12 : vector<1x256xi1> to vector<1x256xi1>
    %345 = vector.broadcast %344 : vector<1x256xi1> to vector<16x256xi1>
    %346 = arith.select %345, %342, %343 : vector<16x256xi1>, vector<16x256xbf16>
    %c416_270 = arith.constant 416 : index
    %c0_271 = arith.constant 0 : index
    %347 = vector.load %arg10[%c416_270, %c0_271] : memref<592x256xbf16, #tpu.memory_space<vmem>>, vector<16x256xbf16>
    tpu.vector_store %arg10[%c416_270, %c0_271], %346 {strides = array<i32>} : memref<592x256xbf16, #tpu.memory_space<vmem>>, vector<16x256xbf16>,
    %c0_272 = arith.constant 0 : index
    %c120_273 = arith.constant 120 : index
    %348 = vector.load %arg9[%c0_272, %c120_273] : memref<16x768xbf16, #tpu.memory_space<vmem>>, vector<16x256xbf16>
    %cst_274 = arith.constant 0.000000e+00 : bf16
    %349 = vector.broadcast %cst_274 : bf16 to vector<16x256xbf16>
    %350 = vector.shape_cast %14 : vector<1x256xi1> to vector<1x256xi1>
    %351 = vector.broadcast %350 : vector<1x256xi1> to vector<16x256xi1>
    %352 = arith.select %351, %348, %349 : vector<16x256xi1>, vector<16x256xbf16>
    %c432_275 = arith.constant 432 : index
    %c0_276 = arith.constant 0 : index
    %353 = vector.load %arg10[%c432_275, %c0_276] : memref<592x256xbf16, #tpu.memory_space<vmem>>, vector<16x256xbf16>
    tpu.vector_store %arg10[%c432_275, %c0_276], %352 {strides = array<i32>} : memref<592x256xbf16, #tpu.memory_space<vmem>>, vector<16x256xbf16>,
    %c0_277 = arith.constant 0 : index
    %c128_278 = arith.constant 128 : index
    %354 = vector.load %arg9[%c0_277, %c128_278] : memref<16x768xbf16, #tpu.memory_space<vmem>>, vector<16x256xbf16>
    %c448_279 = arith.constant 448 : index
    %c0_280 = arith.constant 0 : index
    %355 = vector.load %arg10[%c448_279, %c0_280] : memref<592x256xbf16, #tpu.memory_space<vmem>>, vector<16x256xbf16>
    tpu.vector_store %arg10[%c448_279, %c0_280], %354 {strides = array<i32>} : memref<592x256xbf16, #tpu.memory_space<vmem>>, vector<16x256xbf16>,
    %c0_281 = arith.constant 0 : index
    %c136_282 = arith.constant 136 : index
    %356 = vector.load %arg9[%c0_281, %c136_282] : memref<16x768xbf16, #tpu.memory_space<vmem>>, vector<16x256xbf16>
    %cst_283 = arith.constant 0.000000e+00 : bf16
    %357 = vector.broadcast %cst_283 : bf16 to vector<16x256xbf16>
    %358 = vector.shape_cast %16 : vector<1x256xi1> to vector<1x256xi1>
    %359 = vector.broadcast %358 : vector<1x256xi1> to vector<16x256xi1>
    %360 = arith.select %359, %356, %357 : vector<16x256xi1>, vector<16x256xbf16>
    %c464_284 = arith.constant 464 : index
    %c0_285 = arith.constant 0 : index
    %361 = vector.load %arg10[%c464_284, %c0_285] : memref<592x256xbf16, #tpu.memory_space<vmem>>, vector<16x256xbf16>
    tpu.vector_store %arg10[%c464_284, %c0_285], %360 {strides = array<i32>} : memref<592x256xbf16, #tpu.memory_space<vmem>>, vector<16x256xbf16>,
    %c0_286 = arith.constant 0 : index
    %c248_287 = arith.constant 248 : index
    %362 = vector.load %arg9[%c0_286, %c248_287] : memref<16x768xbf16, #tpu.memory_space<vmem>>, vector<16x256xbf16>
    %cst_288 = arith.constant 0.000000e+00 : bf16
    %363 = vector.broadcast %cst_288 : bf16 to vector<16x256xbf16>
    %364 = vector.shape_cast %14 : vector<1x256xi1> to vector<1x256xi1>
    %365 = vector.broadcast %364 : vector<1x256xi1> to vector<16x256xi1>
    %366 = arith.select %365, %362, %363 : vector<16x256xi1>, vector<16x256xbf16>
    %c480_289 = arith.constant 480 : index
    %c0_290 = arith.constant 0 : index
    %367 = vector.load %arg10[%c480_289, %c0_290] : memref<592x256xbf16, #tpu.memory_space<vmem>>, vector<16x256xbf16>
    tpu.vector_store %arg10[%c480_289, %c0_290], %366 {strides = array<i32>} : memref<592x256xbf16, #tpu.memory_space<vmem>>, vector<16x256xbf16>,
    %c0_291 = arith.constant 0 : index
    %c256_292 = arith.constant 256 : index
    %368 = vector.load %arg9[%c0_291, %c256_292] : memref<16x768xbf16, #tpu.memory_space<vmem>>, vector<16x256xbf16>
    %c496_293 = arith.constant 496 : index
    %c0_294 = arith.constant 0 : index
    %369 = vector.load %arg10[%c496_293, %c0_294] : memref<592x256xbf16, #tpu.memory_space<vmem>>, vector<16x256xbf16>
    tpu.vector_store %arg10[%c496_293, %c0_294], %368 {strides = array<i32>} : memref<592x256xbf16, #tpu.memory_space<vmem>>, vector<16x256xbf16>,
    %c0_295 = arith.constant 0 : index
    %c264_296 = arith.constant 264 : index
    %370 = vector.load %arg9[%c0_295, %c264_296] : memref<16x768xbf16, #tpu.memory_space<vmem>>, vector<16x256xbf16>
    %cst_297 = arith.constant 0.000000e+00 : bf16
    %371 = vector.broadcast %cst_297 : bf16 to vector<16x256xbf16>
    %372 = vector.shape_cast %16 : vector<1x256xi1> to vector<1x256xi1>
    %373 = vector.broadcast %372 : vector<1x256xi1> to vector<16x256xi1>
    %374 = arith.select %373, %370, %371 : vector<16x256xi1>, vector<16x256xbf16>
    %c512_298 = arith.constant 512 : index
    %c0_299 = arith.constant 0 : index
    %375 = vector.load %arg10[%c512_298, %c0_299] : memref<592x256xbf16, #tpu.memory_space<vmem>>, vector<16x256xbf16>
    tpu.vector_store %arg10[%c512_298, %c0_299], %374 {strides = array<i32>} : memref<592x256xbf16, #tpu.memory_space<vmem>>, vector<16x256xbf16>,
    %c0_300 = arith.constant 0 : index
    %c376_301 = arith.constant 376 : index
    %376 = vector.load %arg9[%c0_300, %c376_301] : memref<16x768xbf16, #tpu.memory_space<vmem>>, vector<16x256xbf16>
    %cst_302 = arith.constant 0.000000e+00 : bf16
    %377 = vector.broadcast %cst_302 : bf16 to vector<16x256xbf16>
    %378 = vector.shape_cast %14 : vector<1x256xi1> to vector<1x256xi1>
    %379 = vector.broadcast %378 : vector<1x256xi1> to vector<16x256xi1>
    %380 = arith.select %379, %376, %377 : vector<16x256xi1>, vector<16x256xbf16>
    %c528_303 = arith.constant 528 : index
    %c0_304 = arith.constant 0 : index
    %381 = vector.load %arg10[%c528_303, %c0_304] : memref<592x256xbf16, #tpu.memory_space<vmem>>, vector<16x256xbf16>
    tpu.vector_store %arg10[%c528_303, %c0_304], %380 {strides = array<i32>} : memref<592x256xbf16, #tpu.memory_space<vmem>>, vector<16x256xbf16>,
    %c0_305 = arith.constant 0 : index
    %c384_306 = arith.constant 384 : index
    %382 = vector.load %arg9[%c0_305, %c384_306] : memref<16x768xbf16, #tpu.memory_space<vmem>>, vector<16x256xbf16>
    %c544_307 = arith.constant 544 : index
    %c0_308 = arith.constant 0 : index
    %383 = vector.load %arg10[%c544_307, %c0_308] : memref<592x256xbf16, #tpu.memory_space<vmem>>, vector<16x256xbf16>
    tpu.vector_store %arg10[%c544_307, %c0_308], %382 {strides = array<i32>} : memref<592x256xbf16, #tpu.memory_space<vmem>>, vector<16x256xbf16>,
    %c0_309 = arith.constant 0 : index
    %c392_310 = arith.constant 392 : index
    %384 = vector.load %arg9[%c0_309, %c392_310] : memref<16x768xbf16, #tpu.memory_space<vmem>>, vector<16x256xbf16>
    %cst_311 = arith.constant 0.000000e+00 : bf16
    %385 = vector.broadcast %cst_311 : bf16 to vector<16x256xbf16>
    %386 = vector.shape_cast %16 : vector<1x256xi1> to vector<1x256xi1>
    %387 = vector.broadcast %386 : vector<1x256xi1> to vector<16x256xi1>
    %388 = arith.select %387, %384, %385 : vector<16x256xi1>, vector<16x256xbf16>
    %c560_312 = arith.constant 560 : index
    %c0_313 = arith.constant 0 : index
    %389 = vector.load %arg10[%c560_312, %c0_313] : memref<592x256xbf16, #tpu.memory_space<vmem>>, vector<16x256xbf16>
    tpu.vector_store %arg10[%c560_312, %c0_313], %388 {strides = array<i32>} : memref<592x256xbf16, #tpu.memory_space<vmem>>, vector<16x256xbf16>,
    %c0_314 = arith.constant 0 : index
    %c256_315 = arith.constant 256 : index
    %390 = vector.load %arg9[%c0_314, %c256_315] : memref<16x768xbf16, #tpu.memory_space<vmem>>, vector<16x256xbf16>
    %c576_316 = arith.constant 576 : index
    %c0_317 = arith.constant 0 : index
    %391 = vector.load %arg10[%c576_316, %c0_317] : memref<592x256xbf16, #tpu.memory_space<vmem>>, vector<16x256xbf16>
    tpu.vector_store %arg10[%c576_316, %c0_317], %390 {strides = array<i32>} : memref<592x256xbf16, #tpu.memory_space<vmem>>, vector<16x256xbf16>,
    %c0_318 = arith.constant 0 : index
    %c0_319 = arith.constant 0 : index
    %392 = vector.load %arg10[%c0_318, %c0_319] : memref<592x256xbf16, #tpu.memory_space<vmem>>, vector<592x256xbf16>
    %cst_320 = arith.constant dense<0.000000e+00> : vector<20x256xf32>
    %393 = tpu.matmul %21, %392, %cst_320 {dimension_numbers = #tpu.dot_dimension_numbers<[1], [0], [0], [1], [0, 0, 1, 1], [], []>} : vector<20x592xbf16>, vector<592x256xbf16>, vector<20x256xf32> -> vector<20x256xf32>
    %394 = arith.addf %393, %217 : vector<20x256xf32>
    %395 = vector.broadcast %22 : vector<20x1xf32> to vector<20x256xf32>
    %396 = arith.mulf %394, %395 : vector<20x256xf32>
    %397 = vector.broadcast %23 : vector<20x1xf32> to vector<20x256xf32>
    %398 = arith.addf %396, %397 : vector<20x256xf32>
    %cst_321 = arith.constant 0.000000e+00 : f32
    %399 = vector.broadcast %cst_321 : f32 to vector<20x256xf32>
    %400 = arith.cmpf oge, %398, %399 : vector<20x256xf32>
    %401 = vector.broadcast %24 : vector<20x1xf32> to vector<20x256xf32>
    %402 = arith.mulf %401, %398 : vector<20x256xf32>
    %403 = arith.select %400, %398, %402 : vector<20x256xi1>, vector<20x256xf32>
    %c1_322 = arith.constant 1 : index
    %c0_323 = arith.constant 0 : index
    %c0_324 = arith.constant 0 : index
    %404 = vector.load %arg8[%c1_322, %c0_323, %c0_324] : memref<2x20x256xf32, #tpu.memory_space<vmem>>, vector<1x20x256xf32>
    %405 = vector.shape_cast %404 : vector<1x20x256xf32> to vector<20x256xf32>
    %406 = vector.shape_cast %403 : vector<20x256xf32> to vector<1x20x256xf32>
    tpu.vector_store %arg8[%c1_322, %c0_323, %c0_324], %406 {strides = array<i32>} : memref<2x20x256xf32, #tpu.memory_space<vmem>>, vector<1x20x256xf32>,
    return
  }
  func.func @transform_0(%arg0: i32) -> (i32, i32, i32) {
    %c0_i32 = arith.constant 0 : i32
    %c0_i32_0 = arith.constant 0 : i32
    %c0_i32_1 = arith.constant 0 : i32
    return %arg0, %c0_i32, %c0_i32_0 : i32, i32, i32
  }
  func.func @transform_1(%arg0: i32) -> (i32, i32) {
    %c0_i32 = arith.constant 0 : i32
    %c0_i32_0 = arith.constant 0 : i32
    %c0_i32_1 = arith.constant 0 : i32
    return %c0_i32, %c0_i32_0 : i32, i32
  }
  func.func @transform_2(%arg0: i32) -> (i32, i32) {
    %c0_i32 = arith.constant 0 : i32
    %c0_i32_0 = arith.constant 0 : i32
    %c0_i32_1 = arith.constant 0 : i32
    return %c0_i32, %c0_i32_0 : i32, i32
  }
  func.func @transform_3(%arg0: i32) -> (i32, i32) {
    %c0_i32 = arith.constant 0 : i32
    %c0_i32_0 = arith.constant 0 : i32
    %c0_i32_1 = arith.constant 0 : i32
    return %c0_i32, %c0_i32_0 : i32, i32
  }
  func.func @transform_4(%arg0: i32) -> (i32, i32) {
    %c0_i32 = arith.constant 0 : i32
    %c0_i32_0 = arith.constant 0 : i32
    %c0_i32_1 = arith.constant 0 : i32
    return %c0_i32, %c0_i32_0 : i32, i32
  }
  func.func @transform_5(%arg0: i32) -> (i32, i32) {
    %c0_i32 = arith.constant 0 : i32
    %c0_i32_0 = arith.constant 0 : i32
    %c0_i32_1 = arith.constant 0 : i32
    return %c0_i32, %c0_i32_0 : i32, i32
  }
  func.func @transform_6(%arg0: i32) -> (i32, i32) {
    %c0_i32 = arith.constant 0 : i32
    %c0_i32_0 = arith.constant 0 : i32
    %c0_i32_1 = arith.constant 0 : i32
    return %c0_i32, %c0_i32_0 : i32, i32
  }
  func.func @transform_7(%arg0: i32) -> (i32, i32, i32) {
    %c0_i32 = arith.constant 0 : i32
    %c0_i32_0 = arith.constant 0 : i32
    %c0_i32_1 = arith.constant 0 : i32
    return %arg0, %c0_i32, %c0_i32_0 : i32, i32, i32
  }
}

</mosaic_0001>

<bundles_post_ra>
// kernel: esp_block.1
= control target key start
LH: loop header
LB: loop body
LE: loop exit
PB: predicated region body
PF: predicated region fallthrough
CT: control target
= control target key end

     0   :  { %v139_v0 = vlaneseq  ;;  %v4159_v4 = vmov 0   ;;  %vm81_vm0 = vcmask 1041408   ;;  %vm77_vm3 = vcmask 162816   ;;  %s2728_s29 = smov 127   ;;  %s2729_s30 = smov 1   ;;  %s4144_s0 = inlined_call_operand.vmem [shape: f32[2,20,256], index: 0, kind: input, shape index: {}]   ;;  %s4145_s1 = inlined_call_operand.vmem [shape: s32[1,256], index: 1, kind: input, shape index: {}]   ;;  %s4146_s2 = inlined_call_operand.vmem [shape: bf16[16,20], index: 2, kind: input, shape index: {}]   ;;  %s4147_s3 = inlined_call_operand.vmem [shape: bf16[20,592], index: 3, kind: input, shape index: {}]   ;;  %s4148_s4 = inlined_call_operand.vmem [shape: f32[20,1], index: 4, kind: input, shape index: {}]   ;;  %s4149_s5 = inlined_call_operand.vmem [shape: f32[20,1], index: 5, kind: input, shape index: {}]   ;;  %s4150_s6 = inlined_call_operand.vmem [shape: f32[20,1], index: 6, kind: input, shape index: {}]   ;;  %s4151_s7 = inlined_call_operand.vmem [shape: f32[2,20,256], index: 7, kind: output, shape index: {}]  }
   0x1   :  { %v63_v1 = vld [vmem:[%s4144_s0 + $0x8] sm:$0xff]  ;;  %v65_v2 = vld [vmem:[%s4144_s0 + $0x18] sm:$0xff]  ;;  %120 = vmatprep.mubr.bf16.mxu1 %v4159_v4  ;;  %1516 = vmatprep.mubr.bf16.mxu0 %v4159_v4  ;;  %v62_v7 = vld [vmem:[%s4144_s0] sm:$0xff]  ;;  %s2730_s8 = smov 15   ;;  %s2731_s9 = smov 17  }
   0x2   :  { %v2455_v3 = vld [vmem:[%s4144_s0 + $0x38] sm:$0xff]  ;;  %v69_v5 = vpack.c.bf16 %v65_v2, %v63_v1  ;;  %v2457_v6 = vld [vmem:[%s4144_s0 + $0x48] sm:$0xff]  ;;  %v64_v8 = vld [vmem:[%s4144_s0 + $0x10] sm:$0xff]  ;;  %v140_v9 = vshrl.u32 %v139_v0, 7  ;;  %2699 = vset.pattern.permute.xlu1 %v4159_v4  ;;  %2698 = vset.pattern.permute.xlu0 %v4159_v4  ;;  %s2732_s10 = smov 94   ;;  %s2733_s11 = smov 98  }
   0x3   :  { %v1475_v10 = vpack.c.bf16 %v2457_v6, %v2455_v3  ;;  %v68_v11 = vpack.c.bf16 %v64_v8, %v62_v7  ;;  %v2454_v12 = vld [vmem:[%s4144_s0 + $0x30] sm:$0xff]  ;;  %v2456_v13 = vld [vmem:[%s4144_s0 + $0x40] sm:$0xff]  ;;  %v67_v14 = vld [vmem:[%s4144_s0 + $0x28] sm:$0xf]  ;;  %s2734_s12 = smov 126   ;;  %s2735_s13 = smov 2  }
   0x4   :  { %88 = vmatprep.subr.bf16.mxu1 %v69_v5  ;;  %v1474_v15 = vpack.c.bf16 %v2456_v13, %v2454_v12  ;;  %v71_v16 = vpack.c.bf16 %v67_v14, %v67_v14  ;;  %v2459_v17 = vld [vmem:[%s4144_s0 + $0x58] sm:$0xf]  ;;  %v66_v18 = vld [vmem:[%s4144_s0 + $0x20] sm:$0xf]  ;;  %v2458_v19 = vld [vmem:[%s4144_s0 + $0x50] sm:$0xf] }
   0x5   :  { %1484 = vmatprep.subr.bf16.mxu0 %v1475_v10  ;;  %89 = vmatpush1.bf16.msra.mxu1 %v68_v11  ;;  %v1477_v20 = vpack.c.bf16 %v2459_v17, %v2459_v17  ;;  %v70_v21 = vpack.c.bf16 %v66_v18, %v66_v18  ;;  %v1476_v22 = vpack.c.bf16 %v2458_v19, %v2458_v19  ;;  %v2829_v23 = vsub.s32 0, %v140_v9  ;;  %v2835_v24 = vld [vmem:[%s4145_s1] sm:$0x3]  ;;  %s2726_s1 = smov 111   ;;  %s2736_s14 = smov 30  }
   0x6   :  { %1485 = vmatpush1.bf16.msra.mxu0 %v1474_v15  ;;  %2440 = vmatprep.subr.msk.bf16.mxu1 %vm81_vm0, %v71_v16  ;;  %v2837_v25 = vsub.s32 1, %v140_v9  ;;  %vm30_vm1 = vcmp.ge.s32.totalorder %v2835_v24, 1  ;;  %vm31_vm2 = vcmp.lt.s32.totalorder %v2835_v24, 15  ;;  %v2700_v28 = vld [vmem:[%s4146_s2] sm:$0xff]   ;;  %v2854_v35 = vsub.s32 4, %v140_v9  ;;  %s2727_s2 = smov 113  }
   0x7   :  { %2460 = vmatprep.subr.msk.bf16.mxu0 %vm81_vm0, %v1477_v20  ;;  %v83_v26 = vsel %vm81_vm0, %v70_v21, 0  ;;  %v1479_v27 = vsel %vm81_vm0, %v1476_v22, 0  ;;  %v138_v29 = vsel %vm30_vm1, 1, %v4159_v4  ;;  %v209_v30 = vsel %vm31_vm2, 1, %v4159_v4  ;;  %s2737_s15 = smov 16   ;;  %s2738_s16 = smov 34  }
   0x8   :  { %v142_v31 = vrot.slane %v138_v29, %v2829_v23  ;;  %v146_v32 = vrot.slane %v138_v29, %v2837_v25  ;;  %v213_v33 = vrot.slane %v209_v30, %v2829_v23  ;;  %v217_v34 = vrot.slane %v209_v30, %v2837_v25  ;;  %s2739_s17 = smov 60   ;;  %s2740_s18 = smov 68  }
   0x9   :  { %91 = vmatpush1.bf16.msra.mxu1 %v83_v26  ;;  %vm32_vm10 = vcmp.ge.s32.totalorder %v2835_v24, 2  ;;  %vm37_vm11 = vcmp.lt.s32.totalorder %v2835_v24, 8  ;;  %vm36_vm12 = vcmp.ge.s32.totalorder %v2835_v24, 8  ;;  %vm33_vm13 = vcmp.lt.s32.totalorder %v2835_v24, 14  ;;  %s2741_s19 = smov 124   ;;  %s2742_s20 = smov 4  }
   0xa   :  { %1487 = vmatpush1.bf16.msra.mxu0 %v1479_v27  ;;  %vm147_vm4 = vcmp.eq.s32.totalorder %v142_v31, 1  ;;  %vm148_vm5 = vcmp.eq.s32.totalorder %v146_v32, 1  ;;  %vm218_vm6 = vcmp.eq.s32.totalorder %v213_v33, 1  ;;  %vm219_vm7 = vcmp.eq.s32.totalorder %v217_v34, 1  ;;  %s2743_s21 = smov 112   ;;  %s2744_s22 = smov 32  }
   0xb   :  { %vm149_vm8 = vmpackc.low %vm148_vm5, %vm147_vm4  ;;  %v402_v42 = vsel %vm32_vm10, 1, %v4159_v4  ;;  %v967_v43 = vsel %vm37_vm11, 1, %v4159_v4  ;;  %v911_v44 = vsel %vm36_vm12, 1, %v4159_v4  ;;  %v473_v48 = vsel %vm33_vm13, 1, %v4159_v4  ;;  %s2745_s23 = smov 120   ;;  %s2746_s24 = smov 8  }
   0xc   :  { %2441 = vmatmul.mubr.msk.bf16.vlgmr.msra.gmra.mrb[0].mxu1 %vm77_vm3, %v2700_v28  ;;  %v150_v36 = vsel %vm149_vm8, 65537, %v4159_v4  ;;  %vm220_vm9 = vmpackc.low %vm219_vm7, %vm218_vm6  ;;  %v971_v45 = vrot.slane %v967_v43, %v2829_v23  ;;  %v975_v46 = vrot.slane %v967_v43, %v2837_v25  ;;  %v915_v47 = vrot.slane %v911_v44, %v2829_v23  ;;  %s2747_s25 = smov 96   ;;  %s2748_s26 = smov 64  }
   0xd   :  { %2461 = vmatmul.mubr.msk.bf16.vlgmr.msra.gmra.mrb[0].mxu0 %vm77_vm3, %v2700_v28  ;;  %v154_v37 = vrot.slane %v150_v36, %v2829_v23  ;;  %v221_v38 = vsel %vm220_vm9, 65537, %v4159_v4  ;;  %v158_v40 = vrot.slane %v150_v36, %v2854_v35  ;;  %v919_v49 = vrot.slane %v911_v44, %v2837_v25 }
   0xe   :  { %v225_v39 = vrot.slane %v221_v38, %v2829_v23  ;;  %v229_v41 = vrot.slane %v221_v38, %v2854_v35  ;;  %v406_v50 = vrot.slane %v402_v42, %v2829_v23  ;;  %v410_v51 = vrot.slane %v402_v42, %v2837_v25 }
   0xf   :  { %159 = vrot.lane.b32.xlu0 %v154_v37, %s2726_s1  ;;  %vm976_vm14 = vcmp.eq.s32.totalorder %v971_v45, 1  ;;  %vm977_vm15 = vcmp.eq.s32.totalorder %v975_v46, 1  ;;  %vm920_vm1 = vcmp.eq.s32.totalorder %v915_v47, 1  ;;  %vm921_vm2 = vcmp.eq.s32.totalorder %v919_v49, 1 }
  0x10   :  { %230 = vrot.lane.b32.xlu1 %v225_v39, %s2727_s2  ;;  %vm978_vm0 = vmpackc.low %vm977_vm15, %vm976_vm14  ;;  %v477_v52 = vrot.slane %v473_v48, %v2829_v23  ;;  %v481_v54 = vrot.slane %v473_v48, %v2837_v25  ;;  %vm411_vm4 = vcmp.eq.s32.totalorder %v406_v50, 1  ;;  %vm412_vm5 = vcmp.eq.s32.totalorder %v410_v51, 1 }
  0x11   :  { %v2885_v53 = vsel %vm978_vm0, 65537, %v4159_v4  ;;  %vm922_vm3 = vmpackc.low %vm921_vm2, %vm920_vm1  ;;  %vm34_vm10 = vcmp.ge.s32.totalorder %v2835_v24, 4  ;;  %vm35_vm11 = vcmp.lt.s32.totalorder %v2835_v24, 12  ;;  %vm163_vm2 = vcmask 908288  }
  0x12   :  { %v987_v55 = vrot.slane %v2885_v53, %v2854_v35  ;;  %v2891_v56 = vsel %vm922_vm3, 65537, %v4159_v4  ;;  %v983_v57 = vrot.slane %v2885_v53, %v2829_v23  ;;  %vm413_vm6 = vmpackc.low %vm412_vm5, %vm411_vm4  ;;  %vm482_vm7 = vcmp.eq.s32.totalorder %v477_v52, 1 }
  0x13   :  { %161 = vrot.lane.b32.xlu0 %v158_v40, %s2726_s1  ;;  %v931_v58 = vrot.slane %v2891_v56, %v2854_v35  ;;  %v927_v59 = vrot.slane %v2891_v56, %v2829_v23  ;;  %vm483_vm8 = vcmp.eq.s32.totalorder %v481_v54, 1  ;;  %v414_v60 = vsel %vm413_vm6, 65537, %v4159_v4 }
  0x14   :  { %232 = vrot.lane.b32.xlu1 %v229_v41, %s2727_s2  ;;  %vm484_vm9 = vmpackc.low %vm483_vm8, %vm482_vm7  ;;  %v418_v61 = vrot.slane %v414_v60, %v2829_v23  ;;  %v422_v63 = vrot.slane %v414_v60, %v2854_v35  ;;  %v666_v2 = vsel %vm34_vm10, 1, %v4159_v4  ;;  %v737_v6 = vsel %vm35_vm11, 1, %v4159_v4 }
  0x15   :  { %v485_v62 = vsel %vm484_vm9, 65537, %v4159_v4  ;;  %v670_v3 = vrot.slane %v666_v2, %v2829_v23  ;;  %v674_v5 = vrot.slane %v666_v2, %v2837_v25  ;;  %v741_v7 = vrot.slane %v737_v6, %v2829_v23 }
  0x16   :  { %v489_v0 = vrot.slane %v485_v62, %v2829_v23  ;;  %v493_v1 = vrot.slane %v485_v62, %v2854_v35  ;;  %v745_v8 = vrot.slane %v737_v6, %v2837_v25  ;;  %vm265_vm4 = vcmask 1039360  }
  0x17   :  { %261 = vrot.lane.b32.xlu0 %v154_v37, %s2728_s29  ;;  %vm675_vm12 = vcmp.eq.s32.totalorder %v670_v3, 1  ;;  %vm676_vm13 = vcmp.eq.s32.totalorder %v674_v5, 1  ;;  %vm746_vm15 = vcmp.eq.s32.totalorder %v741_v7, 1  ;;  %vm234_vm5 = vcmask 924672  }
  0x18   :  { %263 = vrot.lane.b32.xlu1 %v158_v40, %s2728_s29  ;;  %vm677_vm14 = vmpackc.low %vm676_vm13, %vm675_vm12  ;;  %vm747_vm0 = vcmp.eq.s32.totalorder %v745_v8, 1  ;;  %vm4156_vm10 = vcmask 1031168   ;;  %vm4152_vm13 = vcmask 769024  }
  0x19   :  { %v678_v9 = vsel %vm677_vm14, 65537, %v4159_v4  ;;  %vm748_vm1 = vmpackc.low %vm747_vm0, %vm746_vm15 }
  0x1a   :  { %v682_v10 = vrot.slane %v678_v9, %v2829_v23  ;;  %v686_v11 = vrot.slane %v678_v9, %v2854_v35  ;;  %v749_v12 = vsel %vm748_vm1, 65537, %v4159_v4 }
  0x1b   :  { %296 = vrot.lane.b32.xlu0 %v225_v39, %s2729_s30  ;;  %v753_v13 = vrot.slane %v749_v12, %v2829_v23  ;;  %v757_v14 = vrot.slane %v749_v12, %v2854_v35 }
  0x1c   :  { %298 = vrot.lane.b32.xlu1 %v229_v41, %s2729_s30 }
  0x1f   :  { %325 = vrot.lane.b32.xlu0 %v154_v37, %s2730_s8 }
  0x20   :  { %327 = vrot.lane.b32.xlu1 %v158_v40, %s2730_s8 }
  0x23   :  { %373 = vrot.lane.b32.xlu0 %v225_v39, %s2731_s9 }
  0x24   :  { %375 = vrot.lane.b32.xlu1 %v229_v41, %s2731_s9 }
  0x27   :  { %423 = vrot.lane.b32.xlu0 %v418_v61, %s2732_s10 }
  0x28   :  { %425 = vrot.lane.b32.xlu1 %v422_v63, %s2732_s10 }
  0x2b   :  { %494 = vrot.lane.b32.xlu0 %v489_v0, %s2733_s11 }
  0x2c   :  { %496 = vrot.lane.b32.xlu1 %v493_v1, %s2733_s11 }
  0x2f   :  { %525 = vrot.lane.b32.xlu0 %v418_v61, %s2734_s12 }
  0x30   :  { %527 = vrot.lane.b32.xlu1 %v422_v63, %s2734_s12 }
  0x33   :  { %560 = vrot.lane.b32.xlu0 %v489_v0, %s2735_s13 }
  0x34   :  { %562 = vrot.lane.b32.xlu1 %v493_v1, %s2735_s13 }
  0x37   :  { %589 = vrot.lane.b32.xlu0 %v418_v61, %s2736_s14 }
  0x38   :  { %591 = vrot.lane.b32.xlu1 %v422_v63, %s2736_s14 }
  0x3b   :  { %2539 = vrot.lane.b32.xlu0 %v4159_v4, %s2731_s9 }
  0x3c   :  { %2544 = vrot.lane.b32.xlu1 %v4159_v4, %s2737_s15 }
  0x3f   :  { %637 = vrot.lane.b32.xlu0 %v489_v0, %s2738_s16 }
  0x40   :  { %639 = vrot.lane.b32.xlu1 %v493_v1, %s2738_s16 }
  0x43   :  { %2549 = vrot.lane.b32.xlu0 %v4159_v4, %s2730_s8 }
  0x44   :  { %687 = vrot.lane.b32.xlu1 %v682_v10, %s2739_s17 }
  0x47   :  { %689 = vrot.lane.b32.xlu0 %v686_v11, %s2739_s17 }
  0x48   :  { %2554 = vrot.lane.b32.xlu1 %v4159_v4, %s2729_s30 }
  0x4b   :  { %758 = vrot.lane.b32.xlu0 %v753_v13, %s2740_s18 }
  0x4c   :  { %760 = vrot.lane.b32.xlu1 %v757_v14, %s2740_s18 }
  0x4f   :  { %789 = vrot.lane.b32.xlu0 %v686_v11, %s2741_s19 }
  0x50   :  { %2559 = vrot.lane.b32.xlu1 %v4159_v4, %s2728_s29 }
  0x53   :  { %2564 = vrot.lane.b32.xlu0 %v4159_v4, %s2727_s2 }
  0x54   :  { %787 = vrot.lane.b32.xlu1 %v682_v10, %s2741_s19 }
  0x57   :  { %824 = vrot.lane.b32.xlu0 %v757_v14, %s2742_s20 }
  0x58   :  { %2569 = vrot.lane.b32.xlu1 %v4159_v4, %s2743_s21 }
  0x5b   :  { %2574 = vrot.lane.b32.xlu0 %v4159_v4, %s2726_s1 }
  0x5c   :  { %822 = vrot.lane.b32.xlu1 %v753_v13, %s2742_s20 }
  0x5f   :  { %2579 = vrot.lane.b32.xlu0 %v4159_v4, %s2738_s16 }
  0x60   :  { %2584 = vrot.lane.b32.xlu1 %v4159_v4, %s2744_s22 }
  0x63   :  { %2589 = vrot.lane.b32.xlu0 %v4159_v4, %s2736_s14 }
  0x64   :  { %934 = vrot.lane.b32.xlu1 %v931_v58, %s2745_s23 }
  0x67   :  { %2594 = vrot.lane.b32.xlu0 %v4159_v4, %s2735_s13 }
  0x68   :  { %988 = vrot.lane.b32.xlu1 %v983_v57, %s2746_s24 }
  0x6b   :  { %990 = vrot.lane.b32.xlu0 %v987_v55, %s2746_s24 }
  0x6c   :  { %2609 = vrot.lane.b32.xlu1 %v4159_v4, %s2747_s25 }
  0x6f   :  { %2599 = vrot.lane.b32.xlu0 %v4159_v4, %s2734_s12 }
  0x73   :  { %932 = vrot.lane.b32.xlu0 %v927_v59, %s2745_s23 }
  0x77   :  { %2604 = vrot.lane.b32.xlu0 %v4159_v4, %s2733_s11 }
  0x7b   :  { %2614 = vrot.lane.b32.xlu0 %v4159_v4, %s2732_s10 }
  0x81   :  { %v160_v15 = vpop.permute.xlu0 %159 }
  0x82   :  { %v231_v19 = vpop.permute.xlu1 %230 }
  0x85   :  { %v2993_v16 = vpop.permute.xlu0 %161 }
  0x86   :  { %v2999_v21 = vpop.permute.xlu1 %232  ;;  %v164_v42 = vsel %vm163_vm2, %v160_v15, %v2993_v16 }
  0x87   :  { %vm166_vm3 = vcmp.ne.s16.totalorder %v164_v42, 0  ;;  %v235_v51 = vsel %vm234_vm5, %v231_v19, %v2999_v21 }
  0x88   :  { %vm237_vm7 = vcmp.ne.s16.totalorder %v235_v51, 0 }
  0x89   :  { %v262_v17 = vpop.permute.xlu0 %261 }
  0x8a   :  { %v3003_v23 = vpop.permute.xlu1 %263 }
  0x8b   :  { %v266_v50 = vsel %vm265_vm4, %v262_v17, %v3003_v23 }
  0x8c   :  { %vm268_vm6 = vcmp.ne.s16.totalorder %v266_v50, 0 }
  0x8d   :  { %v2995_v18 = vpop.permute.xlu0 %296 }
  0x8e   :  { %v3007_v25 = vpop.permute.xlu1 %298  ;;  %vm301_vm8 = vcmp.ne.s16.totalorder %v2995_v18, 0 }
  0x91   :  { %v2997_v20 = vpop.permute.xlu0 %325 }
  0x92   :  { %v3011_v27 = vpop.permute.xlu1 %327  ;;  %vm330_vm9 = vcmp.ne.s16.totalorder %v2997_v20, 0 }
  0x95   :  { %v3001_v22 = vpop.permute.xlu0 %373 }
  0x96   :  { %v3027_v41 = vpop.permute.xlu1 %375  ;;  %vm378_vm11 = vcmp.ne.s16.totalorder %v3001_v22, 0 }
  0x99   :  { %v3005_v24 = vpop.permute.xlu0 %423 }
  0x9a   :  { %v3037_v44 = vpop.permute.xlu1 %425 }
  0x9b   :  { %v428_v10 = vsel %vm4152_vm13, %v3005_v24, %v3037_v44  ;;  %vm444_vm13 = vcmask 277504  }
  0x9c   :  { %vm430_vm15 = vcmp.ne.s16.totalorder %v428_v10, 0 }
  0x9d   :  { %v3009_v26 = vpop.permute.xlu0 %494 }
  0x9e   :  { %v3049_v48 = vpop.permute.xlu1 %496 }
  0xa1   :  { %v3013_v28 = vpop.permute.xlu0 %525 }
  0xa2   :  { %v3061_v52 = vpop.permute.xlu1 %527 }
  0xa3   :  { %v3098_v2 = vsel %vm4156_vm10, %v3013_v28, %v3061_v52 }
  0xa4   :  { %vm532_vm12 = vcmp.ne.s16.totalorder %v3098_v2, 0 }
  0xa5   :  { %v3031_v43 = vpop.permute.xlu0 %560 }
  0xa6   :  { %v3073_v56 = vpop.permute.xlu1 %562  ;;  %vm565_vm14 = vcmp.ne.s16.totalorder %v3031_v43, 0 }
  0xa9   :  { %v3042_v46 = vpop.permute.xlu0 %589 }
  0xaa   :  { %v3083_v61 = vpop.permute.xlu1 %591  ;;  %vm594_vm0 = vcmp.ne.s16.totalorder %v3042_v46, 0 }
  0xad   :  { %v3051_v49 = vpop.permute.xlu0 %2539 }
  0xae   :  { %v3100_v3 = vpop.permute.xlu1 %2544 }
  0xb1   :  { %v3065_v53 = vpop.permute.xlu0 %637 }
  0xb2   :  { %v3115_v8 = vpop.permute.xlu1 %639  ;;  %vm642_vm1 = vcmp.ne.s16.totalorder %v3065_v53, 0 }
  0xb5   :  { %v3075_v57 = vpop.permute.xlu0 %2549 }
  0xb6   :  { %v3134_v13 = vpop.permute.xlu1 %687 }
  0xb9   :  { %v3087_v63 = vpop.permute.xlu0 %689 }
  0xba   :  { %v3149_v24 = vpop.permute.xlu1 %2554 }
  0xbd   :  { %v3103_v5 = vpop.permute.xlu0 %758 }
  0xc1   :  { %v3118_v9 = vpop.permute.xlu0 %789 }
  0xc5   :  { %v3137_v14 = vpop.permute.xlu0 %2564 }
  0xdf   :  { %v122_v29 = vpop.f32.mrb[0].mxu1 }
  0xe0   :  { %v1518_v30 = vpop.f32.mrb[0].mxu0  ;;  %v124_v31 = vpop.f32.mrb[1].mxu1 }
  0xe1   :  { %v1520_v32 = vpop.f32.mrb[1].mxu0  ;;  %v126_v33 = vpop.f32.mrb[2].mxu1 }
  0xe2   :  { %v3015_v34 = vpack.c.bf16 %v126_v33, %v122_v29  ;;  %v1522_v35 = vpop.f32.mrb[2].mxu0  ;;  %v128_v37 = vpop.f32.mrb[3].mxu1 }
  0xe3   :  { %v3017_v36 = vpack.c.bf16 %v1522_v35, %v1518_v30  ;;  %v1524_v38 = vpop.f32.mrb[3].mxu0  ;;  %v3019_v39 = vpack.c.bf16 %v128_v37, %v124_v31  ;;  %v3154_v29 = vpop.permute.xlu0 %824 }
  0xe4   :  { %v3021_v40 = vpack.c.bf16 %v1524_v38, %v1520_v32  ;;  %195 = vrot.lane.b32.xlu1 %v3015_v34, %s2737_s15  ;;  %v169_v45 = vsel %vm166_vm3, %v3015_v34, 0  ;;  %v271_v54 = vsel %vm268_vm6, %v3015_v34, 0  ;;  %v240_v55 = vsel %vm237_vm7, %v3015_v34, 0  ;;  %v3161_v31 = vpop.permute.xlu1 %760 }
  0xe5   :  { %1664 = vrot.lane.b32.xlu0 %v3017_v36, %s2743_s21  ;;  %v1535_v47 = vsel %vm166_vm3, %v3017_v36, 0  ;;  %v1595_v58 = vsel %vm268_vm6, %v3017_v36, 0  ;;  %v1574_v59 = vsel %vm237_vm7, %v3017_v36, 0  ;;  %v304_v60 = vsel %vm301_vm8, %v3015_v34, 0 }
  0xe6   :  { %v1619_v62 = vsel %vm301_vm8, %v3017_v36, 0  ;;  %v1640_v0 = vsel %vm330_vm9, %v3017_v36, 0  ;;  %v333_v1 = vsel %vm330_vm9, %v3015_v34, 0  ;;  %v1679_v6 = vsel %vm378_vm11, %v3017_v36, 0 }
  0xe7   :  { %v535_v7 = vsel %vm532_vm12, %v3015_v34, 0  ;;  %v1785_v11 = vsel %vm565_vm14, %v3017_v36, 0  ;;  %v381_v12 = vsel %vm378_vm11, %v3015_v34, 0  ;;  %v1806_v15 = vsel %vm594_vm0, %v3017_v36, 0  ;;  %v3166_v33 = vpop.permute.xlu0 %2574 }
  0xe8   :  { %1560 = vrot.lane.b32.xlu1 %v3017_v36, %s2737_s15  ;;  %v433_v17 = vsel %vm430_vm15, %v3015_v34, 0  ;;  %v1845_v19 = vsel %vm642_vm1, %v3017_v36, 0  ;;  %v1701_v28 = vsel %vm430_vm15, %v3017_v36, 0  ;;  %vm167_vm3 = vcmp.ne.s16.totalorder %v2993_v16, 0  ;;  %v3174_v37 = vpop.permute.xlu1 %2559 }
  0xe9   :  { %1830 = vrot.lane.b32.xlu0 %v3017_v36, %s2747_s25  ;;  %v170_v30 = vsel %vm167_vm3, %v3019_v39, 0  ;;  %vm4155_vm6 = vcmask 801792   ;;  %v1536_v16 = vsel %vm167_vm3, %v3021_v40, 0  ;;  %vm238_vm7 = vcmp.ne.s16.totalorder %v2999_v21, 0 }
  0xea   :  { %v499_v32 = vsel %vm4155_vm6, %v3009_v26, %v3049_v48  ;;  %vm251_vm9 = vcmask 121856   ;;  %v241_v35 = vsel %vm238_vm7, %v3019_v39, 0  ;;  %v1575_v21 = vsel %vm238_vm7, %v3021_v40, 0 }
  0xeb   :  { %vm501_vm8 = vcmp.ne.s16.totalorder %v499_v32, 0  ;;  %v329_v26 = vsel %vm251_vm9, %v2997_v20, %v3011_v27  ;;  %v3181_v42 = vpop.permute.xlu0 %2579  ;;  %vm180_vm15 = vcmask 138240   ;;  %v1761_v27 = vsel %vm532_vm12, %v3017_v36, 0 }
  0xec   :  { %357 = vrot.lane.b32.xlu1 %v3015_v34, %s2743_s21  ;;  %v504_v38 = vsel %vm501_vm8, %v3015_v34, 0  ;;  %vm331_vm11 = vcmp.ne.s16.totalorder %v329_v26, 0  ;;  %v377_v51 = vsel %vm180_vm15, %v3001_v22, %v3027_v41  ;;  %v597_v22 = vsel %vm594_vm0, %v3015_v34, 0 }
  0xed   :  { %176 = vrot.lane.b32.xlu0 %v169_v45, %s2731_s9  ;;  %v1740_v45 = vsel %vm501_vm8, %v3017_v36, 0  ;;  %v334_v20 = vsel %vm331_vm11, %v3019_v39, 0  ;;  %vm379_vm3 = vcmp.ne.s16.totalorder %v377_v51, 0  ;;  %vm431_vm12 = vcmp.ne.s16.totalorder %v3037_v44, 0 }
  0xee   :  { %v645_v44 = vsel %vm642_vm1, %v3015_v34, 0  ;;  %vm269_vm0 = vcmp.ne.s16.totalorder %v3003_v23, 0  ;;  %vm282_vm7 = vcmask 7168   ;;  %vm546_vm1 = vcmask 15360  }
  0xef   :  { %v3190_v50 = vpop.permute.xlu0 %2589  ;;  %vm533_vm8 = vcmp.ne.s16.totalorder %v3061_v52, 0  ;;  %v641_v52 = vsel %vm444_vm13, %v3065_v53, %v3115_v8  ;;  %vm791_vm6 = vcmask 1014784  }
  0xf0   :  { %459 = vrot.lane.b32.xlu1 %v3015_v34, %s2744_s22 }
  0xf1   :  { %1542 = vrot.lane.b32.xlu0 %v1535_v47, %s2731_s9  ;;  %v3188_v47 = vpop.permute.xlu1 %787 }
  0xf4   :  { %1726 = vrot.lane.b32.xlu1 %v3017_v36, %s2744_s22 }
  0xf5   :  { %197 = vrot.lane.b32.xlu0 %v3019_v39, %s2737_s15 }
  0xf8   :  { %621 = vrot.lane.b32.xlu1 %v3015_v34, %s2747_s25 }
  0xf9   :  { %1562 = vrot.lane.b32.xlu0 %v3021_v40, %s2737_s15 }
  0xfc   :  { %278 = vrot.lane.b32.xlu1 %v271_v54, %s2729_s30  ;;  %v1641_v54 = vsel %vm331_vm11, %v3021_v40, 0 }
  0xfd   :  { %247 = vrot.lane.b32.xlu0 %v240_v55, %s2730_s8  ;;  %v3202_v55 = vpop.permute.xlu1 %2569 }
 0x100   :  { %1602 = vrot.lane.b32.xlu1 %v1595_v58, %s2729_s30  ;;  %v568_v58 = vsel %vm565_vm14, %v3015_v34, 0  ;;  %vm502_vm14 = vcmp.ne.s16.totalorder %v3049_v48, 0  ;;  %v300_v48 = vsel %vm282_vm7, %v2995_v18, %v3007_v25  ;;  %v1762_v18 = vsel %vm533_vm8, %v3021_v40, 0 }
 0x101   :  { %1581 = vrot.lane.b32.xlu0 %v1574_v59, %s2730_s8  ;;  %v3208_v59 = vpop.permute.xlu0 %2594  ;;  %v3217_v41 = vpop.permute.xlu1 %822  ;;  %v1741_v23 = vsel %vm502_vm14, %v3021_v40, 0  ;;  %vm302_vm11 = vcmp.ne.s16.totalorder %v300_v48, 0 }
 0x102   :  { %v305_v25 = vsel %vm302_vm11, %v3019_v39, 0 }
 0x104   :  { %310 = vrot.lane.b32.xlu1 %v304_v60, %s2728_s29  ;;  %v382_v60 = vsel %vm379_vm3, %v3019_v39, 0 }
 0x105   :  { %1625 = vrot.lane.b32.xlu0 %v1619_v62, %s2728_s29  ;;  %v3219_v62 = vpop.permute.xlu0 %990  ;;  %v3227_v2 = vpop.permute.xlu1 %2584 }
 0x108   :  { %1646 = vrot.lane.b32.xlu1 %v1640_v0, %s2727_s2  ;;  %v1680_v0 = vsel %vm379_vm3, %v3021_v40, 0 }
 0x109   :  { %339 = vrot.lane.b32.xlu0 %v333_v1, %s2727_s2  ;;  %v434_v1 = vsel %vm431_vm12, %v3019_v39, 0  ;;  %v3242_v10 = vpop.permute.xlu1 %934 }
 0x10c   :  { %1685 = vrot.lane.b32.xlu1 %v1679_v6, %s2726_s1  ;;  %v3230_v6 = vpop.permute.xlu0 %2599 }
 0x10d   :  { %359 = vrot.lane.b32.xlu0 %v3019_v39, %s2743_s21 }
 0x110   :  { %542 = vrot.lane.b32.xlu1 %v535_v7, %s2735_s13  ;;  %v1702_v7 = vsel %vm431_vm12, %v3021_v40, 0  ;;  %vm515_vm12 = vcmask 244736  }
 0x111   :  { %1666 = vrot.lane.b32.xlu0 %v3021_v40, %s2743_s21 }
 0x114   :  { %1791 = vrot.lane.b32.xlu1 %v1785_v11, %s2734_s12  ;;  %v3244_v11 = vpop.permute.xlu0 %932 }
 0x115   :  { %387 = vrot.lane.b32.xlu0 %v381_v12, %s2726_s1  ;;  %v505_v12 = vsel %vm502_vm14, %v3019_v39, 0  ;;  %vm4153_vm14 = vcmask 490496  }
 0x118   :  { %1812 = vrot.lane.b32.xlu1 %v1806_v15, %s2733_s11  ;;  %v272_v15 = vsel %vm269_vm0, %v3019_v39, 0 }
 0x119   :  { %440 = vrot.lane.b32.xlu0 %v433_v17, %s2738_s16  ;;  %v3254_v17 = vpop.permute.xlu0 %2604 }
 0x11c   :  { %1851 = vrot.lane.b32.xlu1 %v1845_v19, %s2732_s10  ;;  %v3257_v19 = vpop.permute.xlu1 %988 }
 0x11d   :  { %1708 = vrot.lane.b32.xlu0 %v1701_v28, %s2738_s16  ;;  %v1596_v28 = vsel %vm269_vm0, %v3021_v40, 0 }
 0x120   :  { %178 = vrot.lane.b32.xlu1 %v170_v30, %s2731_s9  ;;  %v564_v30 = vsel %vm546_vm1, %v3031_v43, %v3073_v56  ;;  %v3270_v32 = vpop.permute.xlu1 %2609  ;;  %v1620_v56 = vsel %vm302_vm11, %v3021_v40, 0 }
 0x121   :  { %461 = vrot.lane.b32.xlu0 %v3019_v39, %s2744_s22  ;;  %vm566_vm3 = vcmp.ne.s16.totalorder %v564_v30, 0 }
 0x122   :  { %v569_v43 = vsel %vm566_vm3, %v3019_v39, 0 }
 0x124   :  { %1544 = vrot.lane.b32.xlu1 %v1536_v16, %s2731_s9  ;;  %v3273_v16 = vpop.permute.xlu0 %2614 }
 0x125   :  { %1728 = vrot.lane.b32.xlu0 %v3021_v40, %s2744_s22  ;;  %4161 = vst [vmem:[#allocation4_spill] sm:$0xff] %v3273_v16  ;;  %v2542_v16 = vunpack.i.h.bf16 %v3051_v49 }
 0x128   :  { %249 = vrot.lane.b32.xlu1 %v241_v35, %s2730_s8  ;;  %v593_v35 = vsel %vm515_vm12, %v3042_v46, %v3083_v61 }
 0x129   :  { %511 = vrot.lane.b32.xlu0 %v504_v38, %s2736_s14  ;;  %v3285_v38 = vsel %vm4153_vm14, %v3134_v13, %v3087_v63  ;;  %vm595_vm0 = vcmp.ne.s16.totalorder %v593_v35, 0  ;;  %vm4157_vm14 = vcmask 31744  }
 0x12a   :  { %vm694_vm11 = vcmp.ne.s16.totalorder %v3285_v38, 0  ;;  %v598_v61 = vsel %vm595_vm0, %v3019_v39, 0 }
 0x12b   :  { %v697_v51 = vsel %vm694_vm11, %v3015_v34, 0 }
 0x12c   :  { %1583 = vrot.lane.b32.xlu1 %v1575_v21, %s2730_s8  ;;  %v1786_v21 = vsel %vm566_vm3, %v3021_v40, 0  ;;  %vm4154_vm3 = vcmask 556032  }
 0x12d   :  { %1747 = vrot.lane.b32.xlu0 %v1740_v45, %s2736_s14 }
 0x130   :  { %341 = vrot.lane.b32.xlu1 %v334_v20, %s2727_s2  ;;  %v536_v20 = vsel %vm533_vm8, %v3019_v39, 0  ;;  %vm643_vm8 = vcmp.ne.s16.totalorder %v641_v52, 0 }
 0x131   :  { %1768 = vrot.lane.b32.xlu0 %v1761_v27, %s2735_s13  ;;  %v646_v53 = vsel %vm643_vm8, %v3019_v39, 0 }
 0x134   :  { %1648 = vrot.lane.b32.xlu1 %v1641_v54, %s2727_s2 }
 0x135   :  { %574 = vrot.lane.b32.xlu0 %v568_v58, %s2734_s12  ;;  %v1807_v58 = vsel %vm595_vm0, %v3021_v40, 0  ;;  %vm695_vm0 = vcmp.ne.s16.totalorder %v3087_v63, 0 }
 0x136   :  { %v1868_v30 = vsel %vm695_vm0, %v3021_v40, 0 }
 0x138   :  { %389 = vrot.lane.b32.xlu1 %v382_v60, %s2726_s1 }
 0x139   :  { %603 = vrot.lane.b32.xlu0 %v597_v22, %s2733_s11  ;;  %v1867_v22 = vsel %vm694_vm11, %v3017_v36, 0 }
 0x13c   :  { %1687 = vrot.lane.b32.xlu1 %v1680_v0, %s2726_s1 }
 0x13d   :  { %623 = vrot.lane.b32.xlu0 %v3019_v39, %s2747_s25 }
 0x140   :  { %442 = vrot.lane.b32.xlu1 %v434_v1, %s2738_s16 }
 0x141   :  { %1832 = vrot.lane.b32.xlu0 %v3021_v40, %s2747_s25 }
 0x144   :  { %1710 = vrot.lane.b32.xlu1 %v1702_v7, %s2738_s16  ;;  %v1846_v7 = vsel %vm643_vm8, %v3021_v40, 0 }
 0x145   :  { %651 = vrot.lane.b32.xlu0 %v645_v44, %s2732_s10 }
 0x148   :  { %513 = vrot.lane.b32.xlu1 %v505_v12, %s2736_s14  ;;  %v3341_v12 = vsel %vm4154_vm3, %v3103_v5, %v3161_v31  ;;  %vm765_vm3 = vcmp.ne.s16.totalorder %v3161_v31, 0 }
 0x149   :  { %280 = vrot.lane.b32.xlu0 %v272_v15, %s2729_s30  ;;  %vm764_vm8 = vcmp.ne.s16.totalorder %v3341_v12, 0 }
 0x14a   :  { %v1906_v35 = vsel %vm764_vm8, %v3017_v36, 0 }
 0x14c   :  { %1749 = vrot.lane.b32.xlu1 %v1741_v23, %s2736_s14  ;;  %v698_v23 = vsel %vm695_vm0, %v3019_v39, 0  ;;  %vm795_vm0 = vcmp.ne.s16.totalorder %v3118_v9, 0 }
 0x14d   :  { %1604 = vrot.lane.b32.xlu0 %v1596_v28, %s2729_s30  ;;  %v798_v52 = vsel %vm795_vm0, %v3019_v39, 0 }
 0x150   :  { %1770 = vrot.lane.b32.xlu1 %v1762_v18, %s2735_s13  ;;  %v767_v18 = vsel %vm764_vm8, %v3015_v34, 0 }
 0x151   :  { %312 = vrot.lane.b32.xlu0 %v305_v25, %s2728_s29  ;;  %v2703_v25 = vld [vmem:[%s4147_s3 + $0x4] ss:$20 sps:$4 sm:$0xff]  }
 0x152   :  { %1265 = vmatprep.mubr.bf16.mxu1 %v2703_v25  ;;  %2277 = vmatprep.mubr.bf16.mxu0 %v2703_v25  ;;  %v1907_v25 = vsel %vm765_vm3, %v3021_v40, 0 }
 0x154   :  { %576 = vrot.lane.b32.xlu1 %v569_v43, %s2734_s12 }
 0x155   :  { %1627 = vrot.lane.b32.xlu0 %v1620_v56, %s2728_s29 }
 0x156   :  { %v3287_v26 = vpop.permute.xlu1 %195 }
 0x157   :  { %v3290_v45 = vpop.permute.xlu0 %1664 }
 0x158   :  { %1793 = vrot.lane.b32.xlu1 %v1786_v21, %s2734_s12 }
 0x159   :  { %544 = vrot.lane.b32.xlu0 %v536_v20, %s2735_s13 }
 0x15a   :  { %v3298_v46 = vpop.permute.xlu1 %1560 }
 0x15b   :  { %v3301_v27 = vpop.permute.xlu0 %1830 }
 0x15c   :  { %4162 = vst [vmem:[#allocation5_spill] sm:$0xff] %v3301_v27  ;;  %605 = vrot.lane.b32.xlu1 %v598_v61, %s2733_s11 }
 0x15d   :  { %704 = vrot.lane.b32.xlu0 %v697_v51, %s2740_s18 }
 0x15e   :  { %v3311_v54 = vpop.permute.xlu1 %357 }
 0x15f   :  { %v3314_v60 = vpop.permute.xlu0 %176 }
 0x160   :  { %1814 = vrot.lane.b32.xlu1 %v1807_v58, %s2733_s11  ;;  %v826_v58 = vsel %vm4157_vm14, %v3217_v41, %v3154_v29 }
 0x161   :  { %1874 = vrot.lane.b32.xlu0 %v1867_v22, %s2740_s18  ;;  %vm828_vm10 = vcmp.ne.s16.totalorder %v826_v58, 0 }
 0x162   :  { %v3321_v0 = vpop.permute.xlu1 %459  ;;  %v1952_v58 = vsel %vm828_vm10, %v3021_v40, 0 }
 0x163   :  { %v3324_v8 = vpop.permute.xlu0 %1542 }
 0x164   :  { %653 = vrot.lane.b32.xlu1 %v646_v53, %s2732_s10 }
 0x165   :  { %2619 = vrot.lane.b32.xlu0 %v4159_v4, %s2740_s18 }
 0x166   :  { %v3329_v1 = vpop.permute.xlu1 %1726 }
 0x167   :  { %v3332_v44 = vpop.permute.xlu0 %197 }
 0x168   :  { %1853 = vrot.lane.b32.xlu1 %v1846_v7, %s2732_s10  ;;  %v768_v7 = vsel %vm765_vm3, %v3019_v39, 0  ;;  %vm827_vm3 = vcmp.ne.s16.totalorder %v3217_v41, 0 }
 0x169   :  { %725 = vrot.lane.b32.xlu0 %v3019_v39, %s2748_s26 }
 0x16a   :  { %v3343_v15 = vpop.permute.xlu1 %621 }
 0x16b   :  { %4163 = vst [vmem:[#allocation6_spill] sm:$0xff] %v3343_v15  ;;  %v3345_v48 = vpop.permute.xlu0 %1562 }
 0x16c   :  { %706 = vrot.lane.b32.xlu1 %v698_v23, %s2740_s18  ;;  %v1928_v23 = vsel %vm795_vm0, %v3021_v40, 0 }
 0x16d   :  { %1894 = vrot.lane.b32.xlu0 %v3021_v40, %s2748_s26 }
 0x16e   :  { %v3352_v63 = vpop.permute.xlu1 %278 }
 0x16f   :  { %v3354_v28 = vpop.permute.xlu0 %247 }
 0x170   :  { %1876 = vrot.lane.b32.xlu1 %v1868_v30, %s2740_s18  ;;  %v792_v30 = vsel %vm791_vm6, %v3188_v47, %v3118_v9 }
 0x171   :  { %774 = vrot.lane.b32.xlu0 %v767_v18, %s2739_s17  ;;  %vm794_vm14 = vcmp.ne.s16.totalorder %v792_v30, 0  ;;  %v1951_v30 = vsel %vm827_vm3, %v3017_v36, 0 }
 0x172   :  { %v3365_v43 = vpop.permute.xlu1 %1602  ;;  %v797_v9 = vsel %vm794_vm14, %v3015_v34, 0 }
 0x173   :  { %v3367_v56 = vpop.permute.xlu0 %1581 }
 0x174   :  { %723 = vrot.lane.b32.xlu1 %v3015_v34, %s2748_s26 }
 0x175   :  { %1913 = vrot.lane.b32.xlu0 %v1906_v35, %s2739_s17  ;;  %v831_v35 = vsel %vm828_vm10, %v3019_v39, 0  ;;  %vm693_vm10 = vcmp.ne.s16.totalorder %v3134_v13, 0 }
 0x176   :  { %v3375_v21 = vpop.permute.xlu1 %310  ;;  %v1972_v38 = vsel %vm693_vm10, %v3017_v36, 0 }
 0x177   :  { %v3377_v20 = vpop.permute.xlu0 %1625 }
 0x178   :  { %1892 = vrot.lane.b32.xlu1 %v3017_v36, %s2748_s26 }
 0x179   :  { %2629 = vrot.lane.b32.xlu0 %v4159_v4, %s2739_s17 }
 0x17a   :  { %v3384_v61 = vpop.permute.xlu1 %1646 }
 0x17b   :  { %v3386_v51 = vpop.permute.xlu0 %339 }
 0x17c   :  { %2624 = vrot.lane.b32.xlu1 %v4159_v4, %s2748_s26 }
 0x17d   :  { %806 = vrot.lane.b32.xlu0 %v798_v52, %s2742_s20 }
 0x17e   :  { %v3396_v22 = vpop.permute.xlu1 %1685 }
 0x17f   :  { %v3398_v53 = vpop.permute.xlu0 %359 }
 0x180   :  { %776 = vrot.lane.b32.xlu1 %v768_v7, %s2739_s17  ;;  %v1927_v7 = vsel %vm794_vm14, %v3017_v36, 0  ;;  %vm199_vm14 = vcmask 130048  }
 0x181   :  { %1936 = vrot.lane.b32.xlu0 %v1928_v23, %s2742_s20  ;;  %v1565_v41 = vsel %vm199_vm14, %v3298_v46, %v3345_v48 }
 0x182   :  { %v3409_v29 = vpop.permute.xlu1 %542 }
 0x183   :  { %v3411_v18 = vpop.permute.xlu0 %1666 }
 0x184   :  { %1915 = vrot.lane.b32.xlu1 %v1907_v25, %s2739_s17 }
 0x185   :  { %838 = vrot.lane.b32.xlu0 %v831_v35, %s2741_s19 }
 0x186   :  { %v3419_v52 = vpop.permute.xlu1 %1791 }
 0x187   :  { %4164 = vst [vmem:[#allocation7_spill] sm:$0xff] %v3419_v52  ;;  %v3422_v47 = vpop.permute.xlu0 %387 }
 0x188   :  { %804 = vrot.lane.b32.xlu1 %v797_v9, %s2742_s20  ;;  %v2541_v9 = vunpack.i.l.bf16 %v3051_v49  ;;  %v1546_v49 = vsel %vm180_vm15, %v2542_v16, %v3324_v8 }
 0x189   :  { %1959 = vrot.lane.b32.xlu0 %v1952_v58, %s2741_s19 }
 0x18a   :  { %v3427_v31 = vpop.permute.xlu1 %1812 }
 0x18b   :  { %4165 = vst [vmem:[#allocation8_spill] sm:$0xff] %v3427_v31  ;;  %v3431_v23 = vpop.permute.xlu0 %440  ;;  %v201_v31 = vsel %vm199_vm14, %v3287_v26, %v3332_v44 }
 0x18c   :  { %1934 = vrot.lane.b32.xlu1 %v1927_v7, %s2742_s20 }
 0x18d   :  { %1957 = vrot.lane.b32.xlu0 %v1951_v30, %s2741_s19  ;;  %v851_v30 = vsel %vm693_vm10, %v3015_v34, 0 }
 0x18e   :  { %v3438_v25 = vpop.permute.xlu1 %1851 }
 0x18f   :  { %4166 = vst [vmem:[#allocation9_spill] sm:$0xff] %v3438_v25  ;;  %v3440_v35 = vpop.permute.xlu0 %1708  ;;  %v181_v25 = vsel %vm180_vm15, %v2541_v9, %v3314_v60 }
 0x190   :  { %2634 = vrot.lane.b32.xlu1 %v4159_v4, %s2742_s20 }
 0x191   :  { %2644 = vrot.lane.b32.xlu0 %v4159_v4, %s2740_s18 }
 0x192   :  { %v179_v58 = vpop.permute.xlu1 %178 }
 0x193   :  { %v3448_v27 = vpop.permute.xlu0 %461  ;;  %v182_v7 = vsel %vm180_vm15, %v3314_v60, %v179_v58  ;;  %v2546_v58 = vunpack.i.l.bf16 %v3100_v3  ;;  %v830_v60 = vsel %vm827_vm3, %v3015_v34, 0  ;;  %vm936_vm3 = vcmask 982016  }
 0x194   :  { %2639 = vrot.lane.b32.xlu1 %v4159_v4, %s2741_s19  ;;  %1233 = vmatprep.subr.bf16.mxu1 %v182_v7 }
 0x195   :  { %857 = vrot.lane.b32.xlu0 %v851_v30, %s2740_s18  ;;  %1234 = vmatpush1.bf16.msra.mxu1 %v181_v25  ;;  %v200_v44 = vsel %vm199_vm14, %v2546_v58, %v3287_v26  ;;  %v2547_v25 = vunpack.i.h.bf16 %v3100_v3  ;;  %v852_v26 = vsel %vm694_vm11, %v3019_v39, 0  ;;  %v2552_v30 = vunpack.i.h.bf16 %v3075_v57 }
 0x196   :  { %1235 = vmatprep.subr.bf16.mxu1 %v201_v31  ;;  %v1545_v15 = vpop.permute.xlu1 %1544  ;;  %v2551_v31 = vunpack.i.l.bf16 %v3075_v57 }
 0x197   :  { %v3465_v52 = vpop.permute.xlu0 %1728  ;;  %v1547_v9 = vsel %vm180_vm15, %v3324_v8, %v1545_v15  ;;  %v1564_v3 = vsel %vm199_vm14, %v2547_v25, %v3298_v46  ;;  %v1585_v46 = vsel %vm251_vm9, %v2552_v30, %v3367_v56  ;;  %vm763_vm15 = vcmp.ne.s16.totalorder %v3103_v5, 0 }
 0x198   :  { %836 = vrot.lane.b32.xlu1 %v830_v60, %s2741_s19  ;;  %2245 = vmatprep.subr.bf16.mxu0 %v1547_v9  ;;  %v252_v8 = vsel %vm251_vm9, %v2551_v31, %v3354_v28  ;;  %v1973_v60 = vsel %vm694_vm11, %v3021_v40, 0  ;;  %vm940_vm11 = vcmp.ne.s16.totalorder %v3242_v10, 0  ;;  %vm463_vm14 = vcmask 261120  }
 0x199   :  { %877 = vrot.lane.b32.xlu0 %v3019_v39, %s2748_s26  ;;  %1236 = vmatpush1.bf16.msra.mxu1 %v200_v44 }
 0x19a   :  { %2246 = vmatpush1.bf16.msra.mxu0 %v1546_v49  ;;  %v250_v15 = vpop.permute.xlu1 %249 }
 0x19b   :  { %v3484_v7 = vpop.permute.xlu0 %511  ;;  %2247 = vmatprep.subr.bf16.mxu0 %v1565_v41  ;;  %v253_v16 = vsel %vm251_vm9, %v3354_v28, %v250_v15 }
 0x19c   :  { %859 = vrot.lane.b32.xlu1 %v852_v26, %s2740_s18  ;;  %1237 = vmatprep.subr.bf16.mxu1 %v253_v16  ;;  %v891_v26 = vsel %vm764_vm8, %v3019_v39, 0  ;;  %v2034_v16 = vsel %vm940_vm11, %v3017_v36, 0 }
 0x19d   :  { %1998 = vrot.lane.b32.xlu0 %v3021_v40, %s2748_s26  ;;  %1238 = vmatpush1.bf16.msra.mxu1 %v252_v8 }
 0x19e   :  { %2248 = vmatpush1.bf16.msra.mxu0 %v1564_v3  ;;  %v1584_v48 = vpop.permute.xlu1 %1583 }
 0x19f   :  { %v3499_v58 = vpop.permute.xlu0 %1747  ;;  %v1586_v28 = vsel %vm251_vm9, %v3367_v56, %v1584_v48  ;;  %v890_v56 = vsel %vm763_vm15, %v3015_v34, 0  ;;  %vm953_vm9 = vcmask 64512   ;;  %v2012_v48 = vsel %vm764_vm8, %v3021_v40, 0 }
 0x1a0   :  { %1980 = vrot.lane.b32.xlu1 %v1973_v60, %s2740_s18  ;;  %2249 = vmatprep.subr.bf16.mxu0 %v1586_v28  ;;  %v3543_v41 = vsel %vm953_vm9, %v3257_v19, %v3219_v62  ;;  %vm995_vm8 = vcmp.ne.s16.totalorder %v3219_v62, 0 }
 0x1a1   :  { %1996 = vrot.lane.b32.xlu0 %v3017_v36, %s2748_s26  ;;  %vm994_vm0 = vcmp.ne.s16.totalorder %v3543_v41, 0 }
 0x1a2   :  { %2250 = vmatpush1.bf16.msra.mxu0 %v1585_v46  ;;  %v3511_v57 = vpop.permute.xlu1 %341  ;;  %v997_v30 = vsel %vm994_vm0, %v3015_v34, 0  ;;  %v2011_v46 = vsel %vm763_vm15, %v3017_v36, 0  ;;  %v2058_v12 = vsel %vm994_vm0, %v3017_v36, 0  ;;  %vm627_vm15 = vcmask 785408  }
 0x1a3   :  { %v3513_v9 = vpop.permute.xlu0 %1768  ;;  %v345_v62 = vsel %vm234_vm5, %v3386_v51, %v3511_v57  ;;  %v2576_v51 = vunpack.i.l.bf16 %v3166_v33 }
 0x1a4   :  { %1978 = vrot.lane.b32.xlu1 %v1972_v38, %s2740_s18 }
 0x1a5   :  { %2654 = vrot.lane.b32.xlu0 %v4159_v4, %s2739_s17 }
 0x1a6   :  { %v3522_v44 = vpop.permute.xlu1 %1648 }
 0x1a7   :  { %v3524_v49 = vpop.permute.xlu0 %574 }
 0x1a8   :  { %2649 = vrot.lane.b32.xlu1 %v4159_v4, %s2748_s26 }
 0x1a9   :  { %896 = vrot.lane.b32.xlu0 %v890_v56, %s2739_s17  ;;  %v2556_v56 = vunpack.i.l.bf16 %v3149_v24 }
 0x1aa   :  { %v3532_v13 = vpop.permute.xlu1 %389 }
 0x1ab   :  { %v3534_v31 = vpop.permute.xlu0 %603 }
 0x1ac   :  { %875 = vrot.lane.b32.xlu1 %v3015_v34, %s2748_s26 }
 0x1ad   :  { %2659 = vrot.lane.b32.xlu0 %v4159_v4, %s2746_s24 }
 0x1ae   :  { %v3545_v15 = vpop.permute.xlu1 %1687 }
 0x1af   :  { %v3548_v25 = vpop.permute.xlu0 %623 }
 0x1b0   :  { %898 = vrot.lane.b32.xlu1 %v891_v26, %s2739_s17 }
 0x1b1   :  { %2042 = vrot.lane.b32.xlu0 %v2034_v16, %s2746_s24  ;;  %v943_v16 = vsel %vm940_vm11, %v3015_v34, 0 }
 0x1b2   :  { %v3559_v8 = vpop.permute.xlu1 %442 }
 0x1b3   :  { %v3561_v3 = vpop.permute.xlu0 %1832 }
 0x1b4   :  { %2019 = vrot.lane.b32.xlu1 %v2012_v48, %s2739_s17  ;;  %v283_v48 = vsel %vm282_vm7, %v2556_v56, %v3352_v63  ;;  %v2561_v56 = vunpack.i.l.bf16 %v3174_v37 }
 0x1b5   :  { %1004 = vrot.lane.b32.xlu0 %v997_v30, %s2745_s23 }
 0x1b6   :  { %v3571_v60 = vpop.permute.xlu1 %1710 }
 0x1b7   :  { %v3573_v28 = vpop.permute.xlu0 %651 }
 0x1b8   :  { %2017 = vrot.lane.b32.xlu1 %v2011_v46, %s2739_s17  ;;  %v2557_v46 = vunpack.i.h.bf16 %v3149_v24 }
 0x1b9   :  { %2065 = vrot.lane.b32.xlu0 %v2058_v12, %s2745_s23 }
 0x1ba   :  { %v3583_v38 = vpop.permute.xlu1 %513  ;;  %v1606_v24 = vsel %vm282_vm7, %v2557_v46, %v3365_v43  ;;  %v2080_v46 = vsel %vm940_vm11, %v3021_v40, 0 }
 0x1bb   :  { %v281_v26 = vpop.permute.xlu0 %280 }
 0x1bc   :  { %951 = vrot.lane.b32.xlu1 %v943_v16, %s2746_s24  ;;  %v284_v5 = vsel %vm282_vm7, %v3352_v63, %v281_v26  ;;  %v1019_v26 = vsel %vm940_vm11, %v3019_v39, 0 }
 0x1bd   :  { %2669 = vrot.lane.b32.xlu0 %v4159_v4, %s2745_s23  ;;  %1239 = vmatprep.subr.bf16.mxu1 %v284_v5 }
 0x1be   :  { %1240 = vmatpush1.bf16.msra.mxu1 %v283_v48  ;;  %v3596_v30 = vpop.permute.xlu1 %1749  ;;  %v998_v48 = vsel %vm995_vm8, %v3019_v39, 0 }
 0x1bf   :  { %v1605_v12 = vpop.permute.xlu0 %1604  ;;  %1241 = vmatprep.subr.bf16.mxu1 %v3019_v39 }
 0x1c0   :  { %2664 = vrot.lane.b32.xlu1 %v4159_v4, %s2746_s24  ;;  %v1607_v63 = vsel %vm282_vm7, %v3365_v43, %v1605_v12  ;;  %v2566_v12 = vunpack.i.l.bf16 %v3137_v14  ;;  %vm363_vm7 = vcmask 916480  }
 0x1c1   :  { %1027 = vrot.lane.b32.xlu0 %v1019_v26, %s2746_s24  ;;  %2251 = vmatprep.subr.bf16.mxu0 %v1607_v63  ;;  %v3630_v63 = vsel %vm936_vm3, %v3244_v11, %v3242_v10  ;;  %v2059_v10 = vsel %vm995_vm8, %v3021_v40, 0 }
 0x1c2   :  { %1242 = vmatpush1.bf16.msra.mxu1 %v3015_v34  ;;  %2252 = vmatpush1.bf16.msra.mxu0 %v1606_v24  ;;  %v3613_v16 = vpop.permute.xlu1 %1770  ;;  %v2562_v24 = vunpack.i.h.bf16 %v3174_v37  ;;  %vm939_vm10 = vcmp.ne.s16.totalorder %v3630_v63, 0 }
 0x1c3   :  { %v313_v5 = vpop.permute.xlu0 %312  ;;  %2253 = vmatprep.subr.bf16.mxu0 %v3021_v40 }
 0x1c4   :  { %v316_v43 = vsel %vm265_vm4, %v3375_v21, %v313_v5  ;;  %1006 = vrot.lane.b32.xlu1 %v998_v48, %s2745_s23  ;;  %v317_v26 = vsel %vm265_vm4, %v313_v5, %v2561_v56  ;;  %v346_v21 = vsel %vm234_vm5, %v3511_v57, %v2566_v12  ;;  %v2567_v56 = vunpack.i.h.bf16 %v3137_v14 }
 0x1c5   :  { %2088 = vrot.lane.b32.xlu0 %v2080_v46, %s2746_s24  ;;  %1243 = vmatprep.subr.bf16.mxu1 %v317_v26  ;;  %v2571_v5 = vunpack.i.l.bf16 %v3202_v55  ;;  %v1043_v12 = vsel %vm994_vm0, %v3019_v39, 0  ;;  %v2572_v57 = vunpack.i.h.bf16 %v3202_v55  ;;  %v394_v55 = vsel %vm163_vm2, %v3532_v13, %v2576_v51 }
 0x1c6   :  { %1244 = vmatpush1.bf16.msra.mxu1 %v316_v43  ;;  %2254 = vmatpush1.bf16.msra.mxu0 %v3017_v36  ;;  %v3637_v4 = vpop.permute.xlu1 %576  ;;  %v1653_v43 = vsel %vm234_vm5, %v3522_v44, %v2567_v56  ;;  %v364_v56 = vsel %vm363_vm7, %v3311_v54, %v3398_v53  ;;  %v2079_v54 = vsel %vm939_vm10, %v3017_v36, 0 }
 0x1c7   :  { %v1628_v48 = vpop.permute.xlu0 %1627  ;;  %1245 = vmatprep.subr.bf16.mxu1 %v346_v21  ;;  %v2104_v21 = vsel %vm994_vm0, %v3021_v40, 0  ;;  %v1671_v41 = vsel %vm363_vm7, %v3411_v18, %v2572_v57 }
 0x1c8   :  { %v1631_v37 = vsel %vm265_vm4, %v3377_v20, %v1628_v48  ;;  %2067 = vrot.lane.b32.xlu1 %v2059_v10, %s2745_s23  ;;  %v1632_v14 = vsel %vm265_vm4, %v1628_v48, %v2562_v24  ;;  %v365_v20 = vsel %vm363_vm7, %v3398_v53, %v2571_v5  ;;  %v1018_v24 = vsel %vm939_vm10, %v3015_v34, 0 }
 0x1c9   :  { %1050 = vrot.lane.b32.xlu0 %v1043_v12, %s2745_s23  ;;  %2255 = vmatprep.subr.bf16.mxu0 %v1632_v14  ;;  %v1652_v5 = vsel %vm234_vm5, %v3384_v61, %v3522_v44  ;;  %vm993_vm4 = vcmp.ne.s16.totalorder %v3257_v19, 0  ;;  %v2577_v61 = vunpack.i.h.bf16 %v3166_v33  ;;  %v393_v44 = vsel %vm163_vm2, %v3422_v47, %v3532_v13 }
 0x1ca   :  { %1246 = vmatpush1.bf16.msra.mxu1 %v345_v62  ;;  %2256 = vmatpush1.bf16.msra.mxu0 %v1631_v37  ;;  %v3660_v46 = vpop.permute.xlu1 %1793  ;;  %v2103_v53 = vsel %vm993_vm4, %v3017_v36, 0  ;;  %v1670_v37 = vsel %vm363_vm7, %v3290_v45, %v3411_v18  ;;  %v446_v33 = vsel %vm444_vm13, %v3431_v23, %v3559_v8  ;;  %v2581_v62 = vunpack.i.l.bf16 %v3181_v42 }
 0x1cb   :  { %v3662_v26 = vpop.permute.xlu0 %544  ;;  %1247 = vmatprep.subr.bf16.mxu1 %v365_v20  ;;  %2257 = vmatprep.subr.bf16.mxu0 %v1653_v43  ;;  %v1692_v12 = vsel %vm163_vm2, %v3545_v15, %v2577_v61  ;;  %v4167_v47 = vmov 0   ;;  %vm938_vm5 = vcmp.ne.s16.totalorder %v3244_v11, 0  ;;  %v1691_v18 = vsel %vm163_vm2, %v3396_v22, %v3545_v15 }
 0x1cc   :  { %1025 = vrot.lane.b32.xlu1 %v1018_v24, %s2746_s24  ;;  %v445_v45 = vsel %vm444_vm13, %v2581_v62, %v3431_v23  ;;  %v465_v13 = vsel %vm463_vm14, %v3321_v0, %v3448_v27  ;;  %v1713_v8 = vsel %vm444_vm13, %v3440_v35, %v3571_v60  ;;  %v2582_v24 = vunpack.i.h.bf16 %v3181_v42 }
 0x1cd   :  { %2111 = vrot.lane.b32.xlu0 %v2104_v21, %s2745_s23  ;;  %v2586_v23 = vunpack.i.l.bf16 %v3227_v2  ;;  %v1063_v22 = vsel %vm938_vm5, %v3015_v34, 0  ;;  %v517_v15 = vsel %vm515_vm12, %v3484_v7, %v3583_v38  ;;  %v1731_v60 = vsel %vm463_vm14, %v3329_v1, %v3465_v52 }
 0x1ce   :  { %1248 = vmatpush1.bf16.msra.mxu1 %v364_v56  ;;  %2258 = vmatpush1.bf16.msra.mxu0 %v1652_v5  ;;  %v3684_v48 = vpop.permute.xlu1 %605  ;;  %v1712_v42 = vsel %vm444_vm13, %v2582_v24, %v3440_v35  ;;  %v2591_v21 = vunpack.i.l.bf16 %v3190_v50  ;;  %v2587_v56 = vunpack.i.h.bf16 %v3227_v2  ;;  %v1042_v35 = vsel %vm993_vm4, %v3015_v34, 0 }
 0x1cf   :  { %v3687_v10 = vpop.permute.xlu0 %704  ;;  %1249 = vmatprep.subr.bf16.mxu1 %v394_v55  ;;  %2259 = vmatprep.subr.bf16.mxu0 %v1671_v41  ;;  %v464_v27 = vsel %vm463_vm14, %v2586_v23, %v3321_v0  ;;  %v548_v2 = vsel %vm546_vm1, %v3409_v29, %v3662_v26  ;;  %v1752_v5 = vsel %vm515_vm12, %v3499_v58, %v3596_v30  ;;  %v2592_v41 = vunpack.i.h.bf16 %v3190_v50 }
 0x1d0   :  { %2086 = vrot.lane.b32.xlu1 %v2079_v54, %s2746_s24  ;;  %v516_v52 = vsel %vm515_vm12, %v2591_v21, %v3484_v7  ;;  %v1730_v38 = vsel %vm463_vm14, %v2587_v56, %v3329_v1  ;;  %v2596_v54 = vunpack.i.l.bf16 %v3208_v59  ;;  %v1064_v1 = vsel %vm939_vm10, %v3019_v39, 0 }
 0x1d1   :  { %2109 = vrot.lane.b32.xlu0 %v2103_v53, %s2745_s23  ;;  %v1088_v26 = vsel %vm993_vm4, %v3019_v39, 0  ;;  %v1751_v30 = vsel %vm515_vm12, %v2592_v41, %v3499_v58  ;;  %v1773_v61 = vsel %vm546_vm1, %v3513_v9, %v3613_v16  ;;  %v2601_v58 = vunpack.i.l.bf16 %v3230_v6 }
 0x1d2   :  { %1250 = vmatpush1.bf16.msra.mxu1 %v393_v44  ;;  %2260 = vmatpush1.bf16.msra.mxu0 %v1670_v37  ;;  %v3709_v14 = vpop.permute.xlu1 %1814  ;;  %v547_v50 = vsel %vm546_vm1, %v2596_v54, %v3409_v29  ;;  %v2597_v44 = vunpack.i.h.bf16 %v3208_v59  ;;  %v2125_v29 = vsel %vm939_vm10, %v3021_v40, 0  ;;  %vm4168_vm2 = vcmask 1031168   ;;  %v4181_v54 = vld [vmem:[#allocation5_spill] sm:$0xff] }
 0x1d3   :  { %v3712_v20 = vpop.permute.xlu0 %1874  ;;  %1251 = vmatprep.subr.bf16.mxu1 %v446_v33  ;;  %2261 = vmatprep.subr.bf16.mxu0 %v1692_v12  ;;  %v581_v59 = vsel %vm4168_vm2, %v3637_v4, %v2601_v58  ;;  %v2124_v63 = vsel %vm938_vm5, %v3017_v36, 0  ;;  %v2602_v62 = vunpack.i.h.bf16 %v3230_v6  ;;  %vm4169_vm13 = vmmov %vm4168_vm2  ;;  %vm4180_vm10 = vcmask 769024   ;;  %v2708_v58 = vld [vmem:[%s4147_s3 + $0xc] ss:$20 sps:$4 sm:$0xff]  }
 0x1d4   :  { %2674 = vrot.lane.b32.xlu1 %v4167_v47, %s2746_s24  ;;  %v1772_v16 = vsel %vm546_vm1, %v2597_v44, %v3513_v9  ;;  %v2606_v9 = vunpack.i.l.bf16 %v3254_v17  ;;  %vm4170_vm1 = vcmask 801792   ;;  %vm4171_vm12 = vmmov %vm4168_vm2  ;;  %vm4183_vm5 = vcmask 556032  }
 0x1d5   :  { %2684 = vrot.lane.b32.xlu0 %v4167_v47, %s2746_s24  ;;  %v1798_v11 = vsel %vm4171_vm12, %v3660_v46, %v2602_v62  ;;  %vm4173_vm11 = vmmov %vm4168_vm2  ;;  %vm727_vm2 = vcmask 523264  }
 0x1d6   :  { %1252 = vmatpush1.bf16.msra.mxu1 %v445_v45  ;;  %2262 = vmatpush1.bf16.msra.mxu0 %v1691_v18  ;;  %v3730_v43 = vpop.permute.xlu1 %653  ;;  %v580_v45 = vsel %vm4169_vm13, %v3524_v49, %v3637_v4  ;;  %v610_v18 = vsel %vm4170_vm1, %v3684_v48, %v2606_v9  ;;  %v2611_v4 = vunpack.i.l.bf16 %v3270_v32  ;;  %v4172_v49 = vld [vmem:[#allocation7_spill] sm:$0xff]  ;;  %vm4174_vm0 = vmmov %vm4170_vm1  ;;  %v56_v9 = vld [vmem:[%s4149_s5] sm:$0xff] }
 0x1d7   :  { %v3734_v51 = vpop.permute.xlu0 %2619  ;;  %1253 = vmatprep.subr.bf16.mxu1 %v465_v13  ;;  %2263 = vmatprep.subr.bf16.mxu0 %v1713_v8  ;;  %v2607_v8 = vunpack.i.h.bf16 %v3254_v17  ;;  %v1797_v24 = vsel %vm4173_vm11, %v4172_v49, %v3660_v46  ;;  %v609_v23 = vsel %vm4174_vm0, %v3534_v31, %v3684_v48  ;;  %v50_v17 = vld [vmem:[%s4147_s3 + $0x28] sm:$0x33]  ;;  %vm4175_vm8 = vmmov %vm4174_vm0  ;;  %v2149_v31 = vsel %vm993_vm4, %v3021_v40, 0 }
 0x1d8   :  { %2679 = vrot.lane.b32.xlu1 %v4167_v47, %s2745_s23  ;;  %v2612_v48 = vunpack.i.h.bf16 %v3270_v32  ;;  %v2448_v56 = vcombine.high %v50_v17, %v50_v17  ;;  %vm4179_vm7 = vmmov %vm4174_vm0  ;;  %vm4190_vm11 = vcmask 490496  }
 0x1d9   :  { %1069 = vrot.lane.b32.xlu0 %v1063_v22, %s2746_s24  ;;  %v2701_v22 = vld [vmem:[%s4147_s3] ss:$20 sps:$4 sm:$0xff]   ;;  %v1819_v46 = vsel %vm4175_vm8, %v3709_v14, %v2607_v8  ;;  %vm4182_vm4 = vmmov %vm4180_vm10  ;;  %vm4192_vm8 = vcmask 31744  }
 0x1da   :  { %1254 = vmatpush1.bf16.msra.mxu1 %v464_v27  ;;  %2264 = vmatpush1.bf16.msra.mxu0 %v1712_v42  ;;  %v3752_v57 = vpop.permute.xlu1 %1853  ;;  %v629_v27 = vsel %vm627_vm15, %v3548_v25, %v2611_v4  ;;  %v1837_v32 = vsel %vm627_vm15, %v3561_v3, %v2612_v48  ;;  %vm4184_vm14 = vmmov %vm4182_vm4  ;;  %v58_v4 = vld [vmem:[%s4149_s5 + $0x10] sm:$0xf] }
 0x1db   :  { %v3756_v0 = vpop.permute.xlu0 %725  ;;  %1255 = vmatprep.subr.bf16.mxu1 %v517_v15  ;;  %2265 = vmatprep.subr.bf16.mxu0 %v1731_v60  ;;  %v4176_v60 = vld [vmem:[#allocation4_spill] sm:$0xff]  ;;  %vm4186_vm13 = vmmov %vm4182_vm4 }
 0x1dc   :  { %1048 = vrot.lane.b32.xlu1 %v1042_v35, %s2745_s23  ;;  %v2616_v21 = vunpack.i.l.bf16 %v4176_v60  ;;  %v4177_v35 = vld [vmem:[#allocation6_spill] sm:$0xff]  ;;  %vm4187_vm1 = vmmov %vm4183_vm5 }
 0x1dd   :  { %2689 = vrot.lane.b32.xlu0 %v4167_v47, %s2745_s23  ;;  %vm4188_vm12 = vmmov %vm4187_vm1 }
 0x1de   :  { %1256 = vmatpush1.bf16.msra.mxu1 %v516_v52  ;;  %2266 = vmatpush1.bf16.msra.mxu0 %v1730_v38  ;;  %v3774_v55 = vpop.permute.xlu1 %706  ;;  %v628_v52 = vsel %vm627_vm15, %v4177_v35, %v3548_v25  ;;  %v4178_v38 = vld [vmem:[#allocation8_spill] sm:$0xff]  ;;  %v658_v19 = vsel %vm4180_vm10, %v3730_v43, %v2616_v21  ;;  %v2617_v25 = vunpack.i.h.bf16 %v4176_v60  ;;  %vm4191_vm0 = vmmov %vm4190_vm11 }
 0x1df   :  { %v3778_v7 = vpop.permute.xlu0 %1894  ;;  %1257 = vmatprep.subr.bf16.mxu1 %v548_v2  ;;  %2267 = vmatprep.subr.bf16.mxu0 %v1752_v5  ;;  %v1818_v2 = vsel %vm4179_vm7, %v4178_v38, %v3709_v14  ;;  %v54_v14 = vld [vmem:[%s4148_s4 + $0x8] sm:$0xff]  ;;  %v710_v44 = vsel %vm4183_vm5, %v3687_v10, %v3774_v55  ;;  %v2622_v55 = vunpack.i.h.bf16 %v3734_v51  ;;  %vm4193_vm7 = vmmov %vm4191_vm0 }
 0x1e0   :  { %1071 = vrot.lane.b32.xlu1 %v1064_v1, %s2746_s24  ;;  %v1836_v1 = vsel %vm627_vm15, %v4181_v54, %v3561_v3  ;;  %v1858_v3 = vsel %vm4184_vm14, %v3752_v57, %v2617_v25  ;;  %vm4189_vm15 = vmmov %vm4187_vm1 }
 0x1e1   :  { %1094 = vrot.lane.b32.xlu0 %v1088_v26, %s2745_s23  ;;  %v2621_v26 = vunpack.i.l.bf16 %v3734_v51  ;;  %vm4194_vm10 = vmmov %vm4191_vm0 }
 0x1e2   :  { %1258 = vmatpush1.bf16.msra.mxu1 %v547_v50  ;;  %2268 = vmatpush1.bf16.msra.mxu0 %v1751_v30  ;;  %v3795_v53 = vpop.permute.xlu1 %1876  ;;  %v657_v50 = vsel %vm4182_vm4, %v3573_v28, %v3730_v43  ;;  %v2447_v30 = vcombine.low %v50_v17, %v50_v17  ;;  %v55_v28 = vld [vmem:[%s4148_s4 + $0x10] sm:$0xf]  ;;  %vm4195_vm4 = vmmov %vm4192_vm8 }
 0x1e3   :  { %v3798_v37 = vpop.permute.xlu0 %774  ;;  %1259 = vmatprep.subr.bf16.mxu1 %v3019_v39  ;;  %2269 = vmatprep.subr.bf16.mxu0 %v1773_v61  ;;  %v53_v61 = vld [vmem:[%s4148_s4] sm:$0xff]  ;;  %v709_v62 = vsel %vm4187_vm1, %v2621_v26, %v3687_v10  ;;  %v57_v10 = vld [vmem:[%s4149_s5 + $0x8] sm:$0xff]  ;;  %vm4196_vm5 = vmmov %vm4195_vm4 }
 0x1e4   :  { %2132 = vrot.lane.b32.xlu1 %v2125_v29, %s2746_s24  ;;  %vm4197_vm14 = vmmov %vm4195_vm4 }
 0x1e5   :  { %1388 = vperm.xlu0 %2698, %v53_v61  }
 0x1e6   :  { %1260 = vmatpush1.bf16.msra.mxu1 %v3015_v34  ;;  %2270 = vmatpush1.bf16.msra.mxu0 %v1772_v16  ;;  %v3811_v33 = vpop.permute.xlu1 %723  ;;  %v4185_v16 = vld [vmem:[#allocation9_spill] sm:$0xff] }
 0x1e7   :  { %v3813_v12 = vpop.permute.xlu0 %1913  ;;  %1261 = vmatprep.subr.bf16.mxu1 %v581_v59  ;;  %2271 = vmatprep.subr.bf16.mxu0 %v3021_v40  ;;  %v1857_v59 = vsel %vm4186_vm13, %v4185_v16, %v3752_v57  ;;  %v729_v51 = vsel %vm727_vm2, %v3811_v33, %v3756_v0  ;;  %v1879_v57 = vsel %vm4188_vm12, %v3712_v20, %v3795_v53  ;;  %vm4198_vm13 = vmmov %vm4187_vm1 }
 0x1e8   :  { %2130 = vrot.lane.b32.xlu1 %v2124_v63, %s2746_s24  ;;  %v1878_v53 = vsel %vm4189_vm15, %v2622_v55, %v3712_v20  ;;  %v59_v20 = vld [vmem:[%s4150_s6] sm:$0xff]  ;;  %vm4199_vm12 = vmmov %vm4187_vm1 }
 0x1e9   :  { %1409 = vperm.xlu0 %2698, %v56_v9   ;;  %vm4200_vm15 = vmmov %vm4187_vm1 }
 0x1ea   :  { %1262 = vmatpush1.bf16.msra.mxu1 %v580_v45  ;;  %2272 = vmatpush1.bf16.msra.mxu0 %v3017_v36  ;;  %v3830_v13 = vpop.permute.xlu1 %1892 }
 0x1eb   :  { %v3832_v6 = vpop.permute.xlu0 %2629  ;;  %1263 = vmatprep.subr.bf16.mxu1 %v610_v18  ;;  %2273 = vmatprep.subr.bf16.mxu0 %v1798_v11  ;;  %v1897_v49 = vsel %vm727_vm2, %v3830_v13, %v3778_v7 }
 0x1ec   :  { %2694 = vrot.lane.b32.xlu1 %v4167_v47, %s2745_s23  ;;  %v2631_v11 = vunpack.i.l.bf16 %v3832_v6 }
 0x1ed   :  { %1419 = vperm.xlu0 %2698, %v58_v4  }
 0x1ee   :  { %1264 = vmatpush1.bf16.msra.mxu1 %v609_v23  ;;  %2274 = vmatpush1.bf16.msra.mxu0 %v1797_v24  ;;  %v3854_v42 = vpop.permute.xlu1 %2624  ;;  %v778_v17 = vsel %vm4191_vm0, %v2631_v11, %v3798_v37 }
 0x1ef   :  { %v3856_v15 = vpop.permute.xlu0 %806  ;;  %1284 = vmatprep.subr.bf16.mxu1 %v629_v27  ;;  %2275 = vmatprep.subr.bf16.mxu0 %v1819_v46  ;;  %v2626_v63 = vunpack.i.l.bf16 %v3854_v42  ;;  %v2627_v8 = vunpack.i.h.bf16 %v3854_v42  ;;  %v60_v27 = vld [vmem:[%s4150_s6 + $0x8] sm:$0xff] }
 0x1f0   :  { %2155 = vrot.lane.b32.xlu1 %v2149_v31, %s2745_s23 }
 0x1f1   :  { %1266 = vmatmul.mubr.bf16.vlgmr.msra.gmra.mrb[4].mxu1 %v2701_v22  ;;  %v728_v0 = vsel %vm727_vm2, %v2626_v63, %v3811_v33  ;;  %v1896_v7 = vsel %vm727_vm2, %v2627_v8, %v3830_v13  ;;  %1441 = vperm.xlu0 %2698, %v60_v27  }
 0x1f2   :  { %1285 = vmatpush1.bf16.msra.mxu1 %v628_v52  ;;  %2276 = vmatpush1.bf16.msra.mxu0 %v1818_v2  ;;  %v777_v5 = vpop.permute.xlu1 %776 }
 0x1f3   :  { %v3874_v41 = vpop.permute.xlu0 %1936  ;;  %1286 = vmatprep.subr.bf16.mxu1 %v658_v19  ;;  %2296 = vmatprep.subr.bf16.mxu0 %v1837_v32  ;;  %v779_v23 = vsel %vm4190_vm11, %v3798_v37, %v777_v5  ;;  %v61_v37 = vld [vmem:[%s4150_s6 + $0x10] sm:$0xf]  ;;  %vm4202_vm11 = vmmov %vm4191_vm0 }
 0x1f4   :  { %1275 = vmatprep.mubr.bf16.mxu1 %v2448_v56  ;;  %1393 = vperm.xlu1 %2699, %v54_v14  }
 0x1f5   :  { %2278 = vmatmul.mubr.bf16.vlgmr.msra.gmra.mrb[4].mxu0 %v2701_v22  ;;  %v2632_v22 = vunpack.i.h.bf16 %v3832_v6 }
 0x1f6   :  { %1287 = vmatpush1.bf16.msra.mxu1 %v657_v50  ;;  %2297 = vmatpush1.bf16.msra.mxu0 %v1836_v1  ;;  %v1916_v29 = vpop.permute.xlu1 %1915 }
 0x1f7   :  { %v3898_v43 = vpop.permute.xlu0 %838  ;;  %1288 = vmatprep.subr.bf16.mxu1 %v710_v44  ;;  %2298 = vmatprep.subr.bf16.mxu0 %v1858_v3  ;;  %v1918_v6 = vsel %vm4193_vm7, %v3813_v12, %v1916_v29  ;;  %v1917_v60 = vsel %vm4194_vm10, %v2632_v22, %v3813_v12 }
 0x1f8   :  { %2287 = vmatprep.mubr.bf16.mxu0 %v2448_v56  ;;  %1398 = vperm.xlu1 %2699, %v55_v28  }
 0x1f9   :  { %1276 = vmatmul.mubr.bf16.gmra.mrb[8].mxu1 %v2447_v30 }
 0x1fa   :  { %1289 = vmatpush1.bf16.msra.mxu1 %v709_v62  ;;  %2299 = vmatpush1.bf16.msra.mxu0 %v1857_v59  ;;  %v805_v45 = vpop.permute.xlu1 %804 }
 0x1fb   :  { %v3922_v18 = vpop.permute.xlu0 %1959  ;;  %1290 = vmatprep.subr.bf16.mxu1 %v729_v51  ;;  %2300 = vmatprep.subr.bf16.mxu0 %v1879_v57  ;;  %v810_v42 = vsel %vm4192_vm8, %v805_v45, %v3856_v15 }
 0x1fc   :  { %1316 = vmatprep.mubr.bf16.mxu1 %v2708_v58  ;;  %1414 = vperm.xlu1 %2699, %v57_v10  }
 0x1fd   :  { %2288 = vmatmul.mubr.bf16.gmra.mrb[8].mxu0 %v2447_v30 }
 0x1fe   :  { %1291 = vmatpush1.bf16.msra.mxu1 %v728_v0  ;;  %2301 = vmatpush1.bf16.msra.mxu0 %v1878_v53  ;;  %v1935_v24 = vpop.permute.xlu1 %1934 }
 0x1ff   :  { %v1958_v33 = vpop.permute.xlu0 %1957  ;;  %2302 = vmatprep.subr.bf16.mxu0 %v1897_v49  ;;  %1292 = vmatprep.subr.bf16.mxu1 %v779_v23  ;;  %v1939_v56 = vsel %vm4196_vm5, %v1935_v24, %v3874_v41 }
 0x200   :  { %2328 = vmatprep.mubr.bf16.mxu0 %v2708_v58  ;;  %1436 = vperm.xlu1 %2699, %v59_v20   ;;  %v1963_v50 = vsel %vm791_vm6, %v1958_v33, %v3922_v18 }
 0x202   :  { %1293 = vmatpush1.bf16.msra.mxu1 %v778_v17  ;;  %2303 = vmatpush1.bf16.msra.mxu0 %v1896_v7  ;;  %v2635_v46 = vpop.permute.xlu1 %2634 }
 0x203   :  { %v2645_v31 = vpop.permute.xlu0 %2644  ;;  %v2636_v13 = vunpack.i.l.bf16 %v2635_v46  ;;  %1294 = vmatprep.subr.bf16.mxu1 %v810_v42  ;;  %2304 = vmatprep.subr.bf16.mxu0 %v1918_v6  ;;  %v2637_v48 = vunpack.i.h.bf16 %v2635_v46 }
 0x204   :  { %1446 = vperm.xlu1 %2699, %v61_v37   ;;  %v2646_v32 = vunpack.i.l.bf16 %v2645_v31  ;;  %v2647_v54 = vunpack.i.h.bf16 %v2645_v31 }
 0x205   :  { %v809_v21 = vsel %vm4195_vm4, %v2636_v13, %v805_v45  ;;  %v1938_v38 = vsel %vm4197_vm14, %v2637_v48, %v1935_v24 }
 0x206   :  { %2305 = vmatpush1.bf16.msra.mxu0 %v1917_v60  ;;  %v2640_v15 = vpop.permute.xlu1 %2639  ;;  %1295 = vmatpush1.bf16.msra.mxu1 %v809_v21 }
 0x207   :  { %v858_v35 = vpop.permute.xlu0 %857  ;;  %v2641_v52 = vunpack.i.l.bf16 %v2640_v15  ;;  %2306 = vmatprep.subr.bf16.mxu0 %v1939_v56  ;;  %1296 = vmatprep.subr.bf16.mxu1 %v3019_v39  ;;  %v2642_v12 = vunpack.i.h.bf16 %v2640_v15 }
 0x209   :  { %v843_v2 = vsel %vm791_vm6, %v3898_v43, %v2641_v52  ;;  %v1964_v14 = vsel %vm791_vm6, %v3922_v18, %v2642_v12 }
 0x20a   :  { %2307 = vmatpush1.bf16.msra.mxu0 %v1938_v38  ;;  %v837_v19 = vpop.permute.xlu1 %836  ;;  %1297 = vmatpush1.bf16.msra.mxu1 %v3015_v34 }
 0x20b   :  { %v878_v5 = vpop.permute.xlu0 %877  ;;  %2308 = vmatprep.subr.bf16.mxu0 %v3021_v40  ;;  %1298 = vmatprep.subr.bf16.mxu1 %v843_v2  ;;  %v842_v41 = vsel %vm791_vm6, %v837_v19, %v3898_v43  ;;  %vm4201_vm6 = vmmov %vm4191_vm0 }
 0x20e   :  { %2309 = vmatpush1.bf16.msra.mxu0 %v3017_v36  ;;  %v860_v25 = vpop.permute.xlu1 %859  ;;  %1299 = vmatpush1.bf16.msra.mxu1 %v842_v41 }
 0x20f   :  { %v1999_v1 = vpop.permute.xlu0 %1998  ;;  %2310 = vmatprep.subr.bf16.mxu0 %v1964_v14  ;;  %v864_v26 = vsel %vm4198_vm13, %v860_v25, %v2646_v32  ;;  %v863_v30 = vsel %vm4187_vm1, %v858_v35, %v860_v25 }
 0x210   :  { %1300 = vmatprep.subr.bf16.mxu1 %v864_v26 }
 0x212   :  { %2311 = vmatpush1.bf16.msra.mxu0 %v1963_v50  ;;  %v1981_v61 = vpop.permute.xlu1 %1980  ;;  %1301 = vmatpush1.bf16.msra.mxu1 %v863_v30 }
 0x213   :  { %v1997_v44 = vpop.permute.xlu0 %1996  ;;  %v1985_v3 = vsel %vm4199_vm12, %v1981_v61, %v2647_v54 }
 0x214   :  { %2312 = vmatprep.subr.bf16.mxu0 %v1985_v3  ;;  %v2002_v9 = vsel %vm727_vm2, %v1997_v44, %v1999_v1 }
 0x216   :  { %v1979_v29 = vpop.permute.xlu1 %1978 }
 0x217   :  { %v2655_v28 = vpop.permute.xlu0 %2654  ;;  %v1984_v43 = vsel %vm4200_vm15, %v1979_v29, %v1981_v61 }
 0x218   :  { %2313 = vmatpush1.bf16.msra.mxu0 %v1984_v43  ;;  %v2656_v57 = vunpack.i.l.bf16 %v2655_v28  ;;  %v2657_v11 = vunpack.i.h.bf16 %v2655_v28 }
 0x21a   :  { %v2650_v58 = vpop.permute.xlu1 %2649 }
 0x21b   :  { %v897_v55 = vpop.permute.xlu0 %896  ;;  %v2652_v16 = vunpack.i.h.bf16 %v2650_v58  ;;  %v2651_v59 = vunpack.i.l.bf16 %v2650_v58  ;;  %v51_v58 = vld [vmem:[%s4147_s3 + $0x30] sm:$0x33] }
 0x21d   :  { %v882_v63 = vsel %vm727_vm2, %v878_v5, %v2651_v59  ;;  %v2003_v62 = vsel %vm727_vm2, %v1999_v1, %v2652_v16 }
 0x21e   :  { %v876_v51 = vpop.permute.xlu1 %875  ;;  %1302 = vmatprep.subr.bf16.mxu1 %v882_v63  ;;  %2314 = vmatprep.subr.bf16.mxu0 %v2003_v62  ;;  %v2706_v63 = vld [vmem:[%s4147_s3 + $0x8] ss:$20 sps:$4 sm:$0xff]  }
 0x21f   :  { %v2660_v45 = vpop.permute.xlu0 %2659  ;;  %v881_v10 = vsel %vm727_vm2, %v876_v51, %v878_v5  ;;  %2315 = vmatpush1.bf16.msra.mxu0 %v2002_v9  ;;  %vm4203_vm2 = vmmov %vm4191_vm0  ;;  %v2450_v51 = vcombine.high %v51_v58, %v51_v58 }
 0x220   :  { %1303 = vmatpush1.bf16.msra.mxu1 %v881_v10  ;;  %v2662_v23 = vunpack.i.h.bf16 %v2660_v45  ;;  %v2661_v33 = vunpack.i.l.bf16 %v2660_v45 }
 0x222   :  { %v899_v18 = vpop.permute.xlu1 %898 }
 0x223   :  { %v2043_v8 = vpop.permute.xlu0 %2042  ;;  %v902_v0 = vsel %vm4201_vm6, %v897_v55, %v899_v18  ;;  %v903_v53 = vsel %vm4202_vm11, %v899_v18, %v2656_v57 }
 0x224   :  { %1304 = vmatprep.subr.bf16.mxu1 %v903_v53  ;;  %v2045_v7 = vsel %vm953_vm9, %v2662_v23, %v2043_v8 }
 0x225   :  { %1305 = vmatpush1.bf16.msra.mxu1 %v902_v0 }
 0x226   :  { %v2020_v4 = vpop.permute.xlu1 %2019 }
 0x227   :  { %v1005_v49 = vpop.permute.xlu0 %1004  ;;  %v2024_v24 = vsel %vm4191_vm0, %v2020_v4, %v2657_v11 }
 0x228   :  { %2316 = vmatprep.subr.bf16.mxu0 %v2024_v24 }
 0x22a   :  { %v2018_v20 = vpop.permute.xlu1 %2017 }
 0x22b   :  { %v2066_v22 = vpop.permute.xlu0 %2065  ;;  %v2023_v17 = vsel %vm4203_vm2, %v2018_v20, %v2020_v4  ;;  %v2449_v4 = vcombine.low %v51_v58, %v51_v58 }
 0x22c   :  { %2317 = vmatpush1.bf16.msra.mxu0 %v2023_v17 }
 0x22d   :  { %2318 = vmatprep.subr.bf16.mxu0 %v2045_v7 }
 0x22e   :  { %v952_v27 = vpop.permute.xlu1 %951 }
 0x22f   :  { %v2670_v46 = vpop.permute.xlu0 %2669  ;;  %v955_v42 = vsel %vm953_vm9, %v2661_v33, %v952_v27 }
 0x230   :  { %1306 = vmatprep.subr.bf16.mxu1 %v955_v42  ;;  %v2672_v56 = vunpack.i.h.bf16 %v2670_v46  ;;  %v2671_v35 = vunpack.i.l.bf16 %v2670_v46 }
 0x232   :  { %v2665_v6 = vpop.permute.xlu1 %2664  ;;  %v1008_v19 = vsel %vm936_vm3, %v2671_v35, %v1005_v49  ;;  %v2069_v32 = vsel %vm936_vm3, %v2672_v56, %v2066_v22 }
 0x233   :  { %v1028_v37 = vpop.permute.xlu0 %1027  ;;  %v2667_v31 = vunpack.i.h.bf16 %v2665_v6  ;;  %v2666_v13 = vunpack.i.l.bf16 %v2665_v6 }
 0x235   :  { %v954_v48 = vsel %vm953_vm9, %v2666_v13, %v2661_v33  ;;  %v2044_v60 = vsel %vm953_vm9, %v2667_v31, %v2662_v23 }
 0x236   :  { %v1007_v21 = vpop.permute.xlu1 %1006  ;;  %1307 = vmatpush1.bf16.msra.mxu1 %v954_v48  ;;  %2319 = vmatpush1.bf16.msra.mxu0 %v2044_v60 }
 0x237   :  { %v2089_v15 = vpop.permute.xlu0 %2088  ;;  %1308 = vmatprep.subr.bf16.mxu1 %v3015_v34  ;;  %2320 = vmatprep.subr.bf16.mxu0 %v3017_v36  ;;  %v1009_v38 = vsel %vm936_vm3, %v1005_v49, %v1007_v21 }
 0x23a   :  { %v2068_v52 = vpop.permute.xlu1 %2067  ;;  %1309 = vmatpush1.bf16.msra.mxu1 %v4167_v47  ;;  %2321 = vmatpush1.bf16.msra.mxu0 %v4167_v47 }
 0x23b   :  { %v1051_v2 = vpop.permute.xlu0 %1050  ;;  %1310 = vmatprep.subr.bf16.mxu1 %v1009_v38  ;;  %v2070_v12 = vsel %vm936_vm3, %v2066_v22, %v2068_v52 }
 0x23c   :  { %2322 = vmatprep.subr.bf16.mxu0 %v2070_v12 }
 0x23e   :  { %v1026_v5 = vpop.permute.xlu1 %1025  ;;  %1311 = vmatpush1.bf16.msra.mxu1 %v1008_v19  ;;  %2323 = vmatpush1.bf16.msra.mxu0 %v2069_v32  ;;  %v2715_v19 = vld [vmem:[%s4144_s0 + $0x10] sm:$0xff] }
 0x23f   :  { %v2112_v41 = vpop.permute.xlu0 %2111  ;;  %v1030_v25 = vsel %vm953_vm9, %v1026_v5, %v1028_v37  ;;  %v2711_v37 = vld [vmem:[%s4147_s3 + $0x10] ss:$20 sps:$4 sm:$0xff]  }
 0x240   :  { %1312 = vmatprep.subr.bf16.mxu1 %v1030_v25  ;;  %v2716_v25 = vld [vmem:[%s4144_s0 + $0x18] sm:$0xff] }
 0x242   :  { %v2087_v14 = vpop.permute.xlu1 %2086 }
 0x243   :  { %v2110_v54 = vpop.permute.xlu0 %2109  ;;  %v2091_v1 = vsel %vm953_vm9, %v2087_v14, %v2089_v15 }
 0x244   :  { %2324 = vmatprep.subr.bf16.mxu0 %v2091_v1  ;;  %v2115_v57 = vsel %vm936_vm3, %v2110_v54, %v2112_v41 }
 0x246   :  { %v2675_v26 = vpop.permute.xlu1 %2674 }
 0x247   :  { %v2685_v50 = vpop.permute.xlu0 %2684  ;;  %v2677_v30 = vunpack.i.h.bf16 %v2675_v26  ;;  %v2676_v61 = vunpack.i.l.bf16 %v2675_v26 }
 0x248   :  { %v2686_v9 = vunpack.i.l.bf16 %v2685_v50  ;;  %v2687_v18 = vunpack.i.h.bf16 %v2685_v50 }
 0x249   :  { %v1029_v44 = vsel %vm953_vm9, %v2676_v61, %v1026_v5  ;;  %v2090_v3 = vsel %vm953_vm9, %v2677_v30, %v2087_v14 }
 0x24a   :  { %v2680_v29 = vpop.permute.xlu1 %2679  ;;  %1313 = vmatpush1.bf16.msra.mxu1 %v1029_v44  ;;  %2325 = vmatpush1.bf16.msra.mxu0 %v2090_v3 }
 0x24b   :  { %v2682_v28 = vunpack.i.h.bf16 %v2680_v29  ;;  %v2681_v43 = vunpack.i.l.bf16 %v2680_v29  ;;  %1314 = vmatprep.subr.bf16.mxu1 %v3019_v39  ;;  %2326 = vmatprep.subr.bf16.mxu0 %v3021_v40  ;;  %v1070_v55 = vpop.permute.xlu0 %1069 }
 0x24d   :  { %v1055_v16 = vsel %vm936_vm3, %v1051_v2, %v2681_v43  ;;  %v2116_v59 = vsel %vm936_vm3, %v2112_v41, %v2682_v28  ;;  %v2717_v28 = vld [vmem:[%s4144_s0 + $0x30] sm:$0xff] }
 0x24e   :  { %v1049_v62 = vpop.permute.xlu1 %1048  ;;  %1315 = vmatpush1.bf16.msra.mxu1 %v3015_v34  ;;  %2327 = vmatpush1.bf16.msra.mxu0 %v3017_v36 }
 0x24f   :  { %1335 = vmatprep.subr.bf16.mxu1 %v1055_v16  ;;  %2347 = vmatprep.subr.bf16.mxu0 %v2116_v59  ;;  %v1054_v45 = vsel %vm936_vm3, %v1049_v62, %v1051_v2  ;;  %v2690_v11 = vpop.permute.xlu0 %2689  ;;  %v2718_v59 = vld [vmem:[%s4144_s0 + $0x38] sm:$0xff] }
 0x250   :  { %v2692_v0 = vunpack.i.h.bf16 %v2690_v11  ;;  %v2691_v49 = vunpack.i.l.bf16 %v2690_v11 }
 0x251   :  { %1317 = vmatmul.mubr.bf16.vlgmr.msra.gmra.mrb[4].mxu1 %v2706_v63  ;;  %2329 = vmatmul.mubr.bf16.vlgmr.msra.gmra.mrb[4].mxu0 %v2706_v63 }
 0x252   :  { %v1072_v10 = vpop.permute.xlu1 %1071  ;;  %1336 = vmatpush1.bf16.msra.mxu1 %v1054_v45  ;;  %2348 = vmatpush1.bf16.msra.mxu0 %v2115_v57  ;;  %v1101_v20 = vsel %vm936_vm3, %v2691_v49, %v2692_v0 }
 0x253   :  { %v1076_v8 = vsel %vm953_vm9, %v1072_v10, %v2686_v9  ;;  %1326 = vmatprep.mubr.bf16.mxu1 %v2450_v51  ;;  %2338 = vmatprep.mubr.bf16.mxu0 %v2450_v51  ;;  %v1075_v53 = vsel %vm953_vm9, %v1070_v55, %v1072_v10  ;;  %v1095_v33 = vpop.permute.xlu0 %1094 }
 0x254   :  { %1337 = vmatprep.subr.bf16.mxu1 %v1076_v8  ;;  %v1100_v7 = vsel %vm936_vm3, %v1095_v33, %v2691_v49 }
 0x256   :  { %v2133_v24 = vpop.permute.xlu1 %2132  ;;  %1338 = vmatpush1.bf16.msra.mxu1 %v1075_v53 }
 0x257   :  { %v2137_v23 = vsel %vm953_vm9, %v2133_v24, %v2687_v18  ;;  %1339 = vmatprep.subr.bf16.mxu1 %v4167_v47 }
 0x258   :  { %2349 = vmatprep.subr.bf16.mxu0 %v2137_v23 }
 0x259   :  { %1327 = vmatmul.mubr.bf16.gmra.mrb[8].mxu1 %v2449_v4  ;;  %2339 = vmatmul.mubr.bf16.gmra.mrb[8].mxu0 %v2449_v4 }
 0x25a   :  { %v2131_v22 = vpop.permute.xlu1 %2130  ;;  %1340 = vmatpush1.bf16.msra.mxu1 %v3019_v39  ;;  %1367 = vmatprep.mubr.bf16.mxu1 %v4167_v47 }
 0x25b   :  { %v2136_v17 = vsel %vm953_vm9, %v2131_v22, %v2133_v24  ;;  %1341 = vmatprep.subr.bf16.mxu1 %v1101_v20  ;;  %2379 = vmatprep.mubr.bf16.mxu0 %v4167_v47  ;;  %vm1226_vm9 = vcmask 654336   ;;  %v2719_v24 = vld [vmem:[%s4144_s0 + $0x20] sm:$0xf] }
 0x25c   :  { %2350 = vmatpush1.bf16.msra.mxu0 %v2136_v17  ;;  %v2720_v20 = vld [vmem:[%s4144_s0 + $0x40] sm:$0xff] }
 0x25d   :  { %2351 = vmatprep.subr.bf16.mxu0 %v4167_v47 }
 0x25e   :  { %v2695_v27 = vpop.permute.xlu1 %2694  ;;  %1342 = vmatpush1.bf16.msra.mxu1 %v1100_v7 }
 0x25f   :  { %v2697_v46 = vunpack.i.h.bf16 %v2695_v27  ;;  %v2696_v42 = vunpack.i.l.bf16 %v2695_v27  ;;  %1343 = vmatprep.subr.bf16.mxu1 %v3019_v39  ;;  %v2712_v39 = vld [vmem:[%s4147_s3 + $0x38] ss:$0 sps:$4 sm:$0x33]   ;;  %v2721_v27 = vld [vmem:[%s4144_s0 + $0x28] sm:$0xf] }
 0x260   :  { %2352 = vmatpush1.bf16.msra.mxu0 %v3021_v40 }
 0x261   :  { %v2162_v6 = vsel %vm936_vm3, %v2696_v42, %v2697_v46 }
 0x262   :  { %v2156_v31 = vpop.permute.xlu1 %2155  ;;  %1344 = vmatpush1.bf16.msra.mxu1 %v3015_v34  ;;  %2353 = vmatprep.subr.bf16.mxu0 %v2162_v6 }
 0x263   :  { %v2161_v13 = vsel %vm936_vm3, %v2156_v31, %v2696_v42  ;;  %v2722_v42 = vld [vmem:[%s4144_s0 + $0x48] sm:$0xff] }
 0x264   :  { %2354 = vmatpush1.bf16.msra.mxu0 %v2161_v13  ;;  %v1389_v48 = vpop.permute.xlu0 %1388 }
 0x265   :  { %2452 = vmatmul.mubr.msk.bf16.vlgmr.msra.gmra.mrb[4].mxu1 %vm1226_vm9, %v2711_v37  ;;  %2355 = vmatprep.subr.bf16.mxu0 %v3021_v40 }
 0x266   :  { %1377 = vmatprep.mubr.bf16.mxu1 %v4167_v47 }
 0x268   :  { %2356 = vmatpush1.bf16.msra.mxu0 %v3017_v36  ;;  %v1410_v21 = vpop.permute.xlu0 %1409  ;;  %v2713_v36 = vld [vmem:[%s4144_s0] sm:$0xff] }
 0x26b   :  { %2462 = vmatmul.mubr.msk.bf16.vlgmr.msra.gmra.mrb[4].mxu0 %vm1226_vm9, %v2711_v37 }
 0x26c   :  { %2389 = vmatprep.mubr.bf16.mxu0 %v4167_v47  ;;  %v4048_v56 = vpop.permute.xlu0 %1419  ;;  %v2714_v47 = vld [vmem:[%s4144_s0 + $0x8] sm:$0xff] }
 0x26d   :  { %2453 = vmatmul.mubr.msk.bf16.gmra.mrb[8].mxu1 %vm1226_vm9, %v2712_v39 }
 0x270   :  { %v4064_v44 = vpop.permute.xlu0 %1441 }
 0x273   :  { %2463 = vmatmul.mubr.msk.bf16.gmra.mrb[8].mxu0 %vm1226_vm9, %v2712_v39  ;;  %v4042_v34 = vpop.permute.xlu1 %1393 }
 0x277   :  { %v4044_v60 = vpop.permute.xlu1 %1398 }
 0x27b   :  { %v4046_v40 = vpop.permute.xlu1 %1414 }
 0x27f   :  { %v1437_v1 = vpop.permute.xlu1 %1436 }
 0x338   :  { %v1369_v15 = vpop.f32.mrb[4].mxu1 }
 0x339   :  { %v2470_v35 = vadd.f32 %v2713_v36, %v1369_v15  ;;  %v1371_v52 = vpop.f32.mrb[5].mxu1 }
 0x33a   :  { %v2471_v38 = vadd.f32 %v2714_v47, %v1371_v52  ;;  %v1373_v2 = vpop.f32.mrb[6].mxu1  ;;  %v2723_v47 = vld [vmem:[%s4144_s0 + $0x50] sm:$0xf] }
 0x33b   :  { %v1401_v12 = vmul.f32 %v2470_v35, %v1389_v48  ;;  %v2472_v32 = vadd.f32 %v2715_v19, %v1373_v2  ;;  %v1375_v5 = vpop.f32.mrb[7].mxu1 }
 0x33c   :  { %v1402_v41 = vmul.f32 %v2471_v38, %v1389_v48  ;;  %v2473_v14 = vadd.f32 %v2716_v25, %v1375_v5  ;;  %v2724_v5 = vld [vmem:[%s4144_s0 + $0x58] sm:$0xf] }
 0x33d   :  { %v1422_v54 = vadd.f32 %v1410_v21, %v1401_v12  ;;  %v1403_v26 = vmul.f32 %v2472_v32, %v4042_v34  ;;  %v1447_v12 = vpop.permute.xlu1 %1446 }
 0x33e   :  { %v1423_v50 = vadd.f32 %v1410_v21, %v1402_v41  ;;  %v1404_v30 = vmul.f32 %v2473_v14, %v4042_v34  ;;  %v2381_v61 = vpop.f32.mrb[4].mxu0 }
 0x33f   :  { %vm1428_vm3 = vcmp.ge.f32.partialorder %v1422_v54, 0.0  ;;  %v1449_v3 = vmul.f32 %v1437_v1, %v1422_v54  ;;  %v1424_v29 = vadd.f32 %v4046_v40, %v1403_v26  ;;  %v2476_v43 = vadd.f32 %v2717_v28, %v2381_v61  ;;  %v2383_v58 = vpop.f32.mrb[5].mxu0 }
 0x340   :  { %vm1429_vm8 = vcmp.ge.f32.partialorder %v1423_v50, 0.0  ;;  %v1450_v55 = vmul.f32 %v1437_v1, %v1423_v50  ;;  %v1425_v16 = vadd.f32 %v4046_v40, %v1404_v30  ;;  %v2477_v63 = vadd.f32 %v2718_v59, %v2383_v58  ;;  %v1379_v62 = vpop.f32.mrb[8].mxu1  ;;  %v2385_v9 = vpop.f32.mrb[6].mxu0 }
 0x341   :  { %v1455_v51 = vsel %vm1428_vm3, %v1422_v54, %v1449_v3  ;;  %vm1430_vm7 = vcmp.ge.f32.partialorder %v1424_v29, 0.0  ;;  %v2398_v57 = vmul.f32 %v2476_v43, %v1389_v48  ;;  %v1451_v45 = vmul.f32 %v4064_v44, %v1424_v29  ;;  %v1381_v10 = vpop.f32.mrb[9].mxu1  ;;  %v2387_v18 = vpop.f32.mrb[7].mxu0 }
 0x342   :  { %1461 = vst [vmem:[%s4151_s7] sm:$0xff] %v1455_v51  ;;  %v1456_v11 = vsel %vm1429_vm8, %v1423_v50, %v1450_v55  ;;  %vm1431_vm10 = vcmp.ge.f32.partialorder %v1425_v16, 0.0  ;;  %v2399_v8 = vmul.f32 %v2477_v63, %v1389_v48  ;;  %v1452_v0 = vmul.f32 %v4064_v44, %v1425_v16  ;;  %v1383_v53 = vpop.f32.mrb[10].mxu1 }
 0x343   :  { %1462 = vst [vmem:[%s4151_s7 + $0x8] sm:$0xff] %v1456_v11  ;;  %v2404_v4 = vadd.f32 %v2398_v57, %v1410_v21  ;;  %v1457_v49 = vsel %vm1430_vm7, %v1424_v29, %v1451_v45  ;;  %v2474_v23 = vadd.f32 %v2719_v24, %v1379_v62  ;;  %v2478_v33 = vadd.f32 %v2720_v20, %v2385_v9  ;;  %v1384_v22 = vpop.f32.mrb[11].mxu1 }
 0x344   :  { %v2405_v17 = vadd.f32 %v2399_v8, %v1410_v21  ;;  %v1458_v7 = vsel %vm1431_vm10, %v1425_v16, %v1452_v0  ;;  %1463 = vst [vmem:[%s4151_s7 + $0x10] sm:$0xff] %v1457_v49  ;;  %v2475_v46 = vadd.f32 %v2721_v27, %v1381_v10  ;;  %v2479_v6 = vadd.f32 %v2722_v42, %v2387_v18 }
 0x345   :  { %vm2410_vm4 = vcmp.ge.f32.partialorder %v2404_v4, 0.0  ;;  %v2416_v37 = vmul.f32 %v2404_v4, %v1437_v1  ;;  %1464 = vst [vmem:[%s4151_s7 + $0x18] sm:$0xff] %v1458_v7  ;;  %v1405_v31 = vmul.f32 %v2474_v23, %v4044_v60  ;;  %v2400_v13 = vmul.f32 %v2478_v33, %v4042_v34 }
 0x346   :  { %vm2411_vm5 = vcmp.ge.f32.partialorder %v2405_v17, 0.0  ;;  %v2417_v39 = vmul.f32 %v2405_v17, %v1437_v1  ;;  %v1406_v48 = vmul.f32 %v2475_v46, %v4044_v60  ;;  %v2401_v21 = vmul.f32 %v2479_v6, %v4042_v34  ;;  %v2391_v15 = vpop.f32.mrb[8].mxu0 }
 0x347   :  { %v2422_v36 = vsel %vm2410_vm4, %v2404_v4, %v2416_v37  ;;  %v1426_v35 = vadd.f32 %v4048_v56, %v1405_v31  ;;  %v2406_v52 = vadd.f32 %v2400_v13, %v4046_v40  ;;  %v2480_v38 = vadd.f32 %v2723_v47, %v2391_v15  ;;  %v2393_v2 = vpop.f32.mrb[9].mxu0 }
 0x348   :  { %2464 = vst [vmem:[%s4151_s7 + $0x30] sm:$0xff] %v2422_v36  ;;  %v2423_v19 = vsel %vm2411_vm5, %v2405_v17, %v2417_v39  ;;  %v1427_v34 = vadd.f32 %v4048_v56, %v1406_v48  ;;  %v2407_v32 = vadd.f32 %v2401_v21, %v4046_v40  ;;  %v2481_v41 = vadd.f32 %v2724_v5, %v2393_v2  ;;  %v2395_v25 = vpop.f32.mrb[10].mxu0 }
 0x349   :  { %2465 = vst [vmem:[%s4151_s7 + $0x38] sm:$0xff] %v2423_v19  ;;  %vm1432_vm14 = vcmp.ge.f32.partialorder %v1426_v35, 0.0  ;;  %v1453_v14 = vmul.f32 %v1447_v12, %v1426_v35  ;;  %vm2412_vm13 = vcmp.ge.f32.partialorder %v2406_v52, 0.0  ;;  %v2418_v54 = vmul.f32 %v2406_v52, %v4064_v44  ;;  %v2396_v1 = vpop.f32.mrb[11].mxu0 }
 0x34a   :  { %vm1433_vm1 = vcmp.ge.f32.partialorder %v1427_v34, 0.0  ;;  %v1454_v26 = vmul.f32 %v1447_v12, %v1427_v34  ;;  %vm2413_vm12 = vcmp.ge.f32.partialorder %v2407_v32, 0.0  ;;  %v2419_v40 = vmul.f32 %v2407_v32, %v4064_v44 }
 0x34b   :  { %v1459_v50 = vsel %vm1432_vm14, %v1426_v35, %v1453_v14  ;;  %v2424_v30 = vsel %vm2412_vm13, %v2406_v52, %v2418_v54  ;;  %v2402_v61 = vmul.f32 %v2480_v38, %v4044_v60  ;;  %v2403_v3 = vmul.f32 %v2481_v41, %v4044_v60 }
 0x34c   :  { %1465 = vst [vmem:[%s4151_s7 + $0x20] sm:$0xf] %v1459_v50  ;;  %2466 = vst [vmem:[%s4151_s7 + $0x40] sm:$0xff] %v2424_v30  ;;  %v1460_v29 = vsel %vm1433_vm1, %v1427_v34, %v1454_v26  ;;  %v2425_v28 = vsel %vm2413_vm12, %v2407_v32, %v2419_v40 }
 0x34d   :  { %1466 = vst [vmem:[%s4151_s7 + $0x28] sm:$0xf] %v1460_v29  ;;  %2467 = vst [vmem:[%s4151_s7 + $0x48] sm:$0xff] %v2425_v28  ;;  %v2408_v60 = vadd.f32 %v2402_v61, %v4048_v56  ;;  %v2409_v44 = vadd.f32 %v2403_v3, %v4048_v56 }
 0x34f   :  { %vm2414_vm15 = vcmp.ge.f32.partialorder %v2408_v60, 0.0  ;;  %v2420_v43 = vmul.f32 %v2408_v60, %v1447_v12  ;;  %vm2415_vm6 = vcmp.ge.f32.partialorder %v2409_v44, 0.0  ;;  %v2421_v58 = vmul.f32 %v2409_v44, %v1447_v12 }
 0x351   :  { %v2426_v55 = vsel %vm2414_vm15, %v2408_v60, %v2420_v43  ;;  %v2427_v16 = vsel %vm2415_vm6, %v2409_v44, %v2421_v58 }
 0x352   :  { %2468 = vst [vmem:[%s4151_s7 + $0x50] sm:$0xf] %v2426_v55  ;;  %2469 = vst [vmem:[%s4151_s7 + $0x58] sm:$0xf] %v2427_v16 }

</bundles_post_ra>
